<compile_context>
chip_gen: v7x
topology: tpu7x:2x2x1
jax: 0.10.0
libtpu: 0.0.40
codegen_flags: <defaults>
</compile_context>

<pallas_src>
import math

import jax
import jax.numpy as jnp
from jax import lax
from jax.experimental import pallas as pl
from jax.experimental.pallas import tpu as pltpu


# ----------------------------- configuration -------------------------------
NUM_NODES = 8                         # nodes per graph (N)
HIDDEN_DIM = 32                       # D
NUM_HEADS = 4                         # H
HEAD_DIM = HIDDEN_DIM // NUM_HEADS    # Dh = 8
LOCAL_RADIUS = 2
LN_EPS = 1e-5

TILE_GRAPHS = 16                      # graphs per grid step
TILE_ROWS = TILE_GRAPHS * NUM_NODES   # 128 rows -> full MXU / vreg height
NEG_INF = -1e30                       # f32-safe additive mask value


# ------------------------------ Pallas kernel -------------------------------
def local_attention_kernel(
    x_ref,        # [TILE_ROWS, D]          node features (TILE_GRAPHS graphs)
    bias_ref,     # [TILE_ROWS, TILE_ROWS]  block-diag additive neighbor mask (resident)
    wqkv_ref,     # [D, 3D]  fused Q|K|V weights (resident)
    bqkv_ref,     # [1, 3D]  fused bias: only the Q slice is non-zero (bk/bv folded out)
    wo_ref,       # [D, D]   output projection (resident)
    bo_ref,       # [1, D]   output bias with bv@wo folded in (resident)
    gamma_ref,    # [1, D]   LayerNorm scale (resident)
    beta_ref,     # [1, D]   LayerNorm shift (resident)
    out_ref,      # [TILE_ROWS, D]
):
    x = x_ref[...]                                     # f32 [R, D]
    bias = bias_ref[...]                               # f32 [R, R] (0 / -1e30)

    # One wide MXU matmul for Q|K|V.
    qkv = jnp.dot(x, wqkv_ref[...],
                  preferred_element_type=jnp.float32) + bqkv_ref[...]     # [R, 3D]
    q = qkv[:, :HIDDEN_DIM]                            # lane-aligned 32-wide slabs
    k = qkv[:, HIDDEN_DIM:2 * HIDDEN_DIM]
    v = qkv[:, 2 * HIDDEN_DIM:]

    wo = wo_ref[...]                                   # [D, D]
    scale = jnp.float32(1.0 / math.sqrt(HEAD_DIM))

    acc = jnp.zeros((TILE_ROWS, HIDDEN_DIM), jnp.float32)
    for h in range(NUM_HEADS):                         # static unroll over heads
        lo = h * HEAD_DIM
        hi = lo + HEAD_DIM
        qh = q[:, lo:hi]                               # [R, Dh]
        kh = k[:, lo:hi]
        vh = v[:, lo:hi]

        # q @ k^T without an explicit transpose: contract both on the head dim.
        scores = lax.dot_general(
            qh, kh, dimension_numbers=(((1,), (1,)), ((), ())),
            preferred_element_type=jnp.float32) * scale + bias            # [R, R]

        # softmax restricted to same-graph local neighbors (self-loop => >=1 entry)
        scores = scores - jnp.max(scores, axis=-1, keepdims=True)
        p = jnp.exp(scores)
        p = p / jnp.sum(p, axis=-1, keepdims=True)     # exact: bv-fold needs sum-to-1

        attended = jnp.dot(p, vh, preferred_element_type=jnp.float32)     # [R, Dh]
        # Accumulate directly into the output projection (no lane concat of heads).
        acc = acc + jnp.dot(attended, wo[lo:hi, :],
                            preferred_element_type=jnp.float32)           # [R, D]

    # output projection bias (with folded bv@wo) + residual
    y = acc + bo_ref[...] + x

    # LayerNorm over the hidden dim
    mean = jnp.mean(y, axis=-1, keepdims=True)
    var = jnp.mean((y - mean) ** 2, axis=-1, keepdims=True)
    y = (y - mean) * lax.rsqrt(var + jnp.float32(LN_EPS))
    out_ref[...] = (y * gamma_ref[...] + beta_ref[...]).astype(out_ref.dtype)


# --------------------------- one-time preparation ---------------------------
def neighbor_mask(edge_index, num_nodes, radius):
    """Dense [N, N] bool: True iff j is within `radius` hops of i (incl. self)."""
    src, dst = edge_index[0], edge_index[1]
    adj = jnp.zeros((num_nodes, num_nodes), dtype=jnp.float32)
    adj = adj.at[src, dst].set(1.0)
    adj = adj.at[dst, src].set(1.0)                    # undirected, as in the BFS
    reach = jnp.eye(num_nodes, dtype=jnp.float32)
    for _ in range(radius):
        reach = jnp.clip(reach + reach @ adj, 0.0, 1.0)
    return reach > 0.5


def prepare_attention_bias(edge_index, num_nodes=NUM_NODES, radius=LOCAL_RADIUS,
                           tile_graphs=TILE_GRAPHS):
    """Block-diagonal [tile_rows, tile_rows] additive mask for one grid tile."""
    mask = neighbor_mask(edge_index, num_nodes, radius).astype(jnp.float32)   # [N, N]
    block_diag = jnp.kron(jnp.eye(tile_graphs, dtype=jnp.float32), mask)      # [R, R]
    return jnp.where(block_diag > 0.5, jnp.float32(0.0), jnp.float32(NEG_INF))


def prepare_params(params):
    """Trace-time weight fusion (done once at parameter-load time)."""
    zeros_b = jnp.zeros_like(params["bq"])
    return {
        # [wq | wk | wv] -> one matmul; bk cancels in row softmax, bv folds into bo.
        "w_qkv": jnp.concatenate([params["wq"], params["wk"], params["wv"]], axis=1),
        "b_qkv": jnp.concatenate([params["bq"], zeros_b, zeros_b], axis=1),
        "wo": params["wo"],
        "bo": params["bo"] + params["bv"] @ params["wo"],
        "gamma": params["gamma"],
        "beta": params["beta"],
    }


# ------------------------------ JAX wrapper ---------------------------------
@jax.jit
def local_attention_forward(x_batched, tile_bias, fused):
    """x_batched: [G, N, D] -> [G, N, D].  All graphs share one topology."""
    g, n, d = x_batched.shape
    pad = (-g) % TILE_GRAPHS
    if pad:
        x_batched = jnp.concatenate(
            [x_batched, jnp.zeros((pad, n, d), x_batched.dtype)], axis=0)
    gp = g + pad
    x2d = x_batched.reshape(gp * n, d)

    const = lambda i: (0, 0)
    out2d = pl.pallas_call(
        local_attention_kernel,
        out_shape=jax.ShapeDtypeStruct((gp * n, d), jnp.float32),
        grid=(gp // TILE_GRAPHS,),
        in_specs=[
            pl.BlockSpec((TILE_ROWS, d), lambda i: (i, 0)),          # streamed x tile
            pl.BlockSpec((TILE_ROWS, TILE_ROWS), const),             # resident mask
            pl.BlockSpec((d, 3 * d), const),                         # resident weights
            pl.BlockSpec((1, 3 * d), const),
            pl.BlockSpec((d, d), const),
            pl.BlockSpec((1, d), const),
            pl.BlockSpec((1, d), const),
            pl.BlockSpec((1, d), const),
        ],
        out_specs=pl.BlockSpec((TILE_ROWS, d), lambda i: (i, 0)),
        compiler_params=pltpu.CompilerParams(
            dimension_semantics=("parallel",)),                      # 2 TCs on v7x
    )(x2d, tile_bias, fused["w_qkv"], fused["b_qkv"], fused["wo"], fused["bo"],
      fused["gamma"], fused["beta"])

    return out2d.reshape(gp, n, d)[:g]


def init_params(key, hidden_dim):
    ks = jax.random.split(key, 8)
    scale = 0.02

    def lin(kw, kb):
        w = scale * jax.random.normal(kw, (hidden_dim, hidden_dim), jnp.float32)  # [in, out]
        b = scale * jax.random.normal(kb, (1, hidden_dim), jnp.float32)
        return w, b

    wq, bq = lin(ks[0], ks[1])
    wk, bk = lin(ks[2], ks[3])
    wv, bv = lin(ks[4], ks[5])
    wo, bo = lin(ks[6], ks[7])
    return {
        "wq": wq, "bq": bq, "wk": wk, "bk": bk,
        "wv": wv, "bv": bv, "wo": wo, "bo": bo,
        "gamma": jnp.ones((1, hidden_dim), jnp.float32),
        "beta": jnp.zeros((1, hidden_dim), jnp.float32),
    }


if __name__ == "__main__":
    key = jax.random.PRNGKey(0)
    kx, kp = jax.random.split(key)

    num_graphs = 32                                    # batched graphs / timesteps
    x = jax.random.normal(kx, (num_graphs, NUM_NODES, HIDDEN_DIM), jnp.float32)
    # small fixed graph on 8 nodes (a ring with a couple of chords)
    edge_index = jnp.array(
        [[0, 1, 2, 3, 4, 5, 6, 7, 0, 2],
         [1, 2, 3, 4, 5, 6, 7, 0, 4, 6]], dtype=jnp.int32)

    params = init_params(kp, HIDDEN_DIM)

    # One-time prep, hoisted out of the per-call hot path.
    fused = prepare_params(params)
    tile_bias = prepare_attention_bias(edge_index)
    jax.block_until_ready((fused, tile_bias))

    out = local_attention_forward(x, tile_bias, fused)
    jax.block_until_ready(out)
    assert out.shape == (num_graphs, NUM_NODES, HIDDEN_DIM)
    assert bool(jnp.all(jnp.isfinite(out)))
    print("KERNEL_OK")
</pallas_src>

<mosaic_0001>
module attributes {stable_mosaic.version = 11 : i64} {
  func.func @local_attention_kernel(%arg0: i32, %arg1: memref<128x32xf32, #tpu.memory_space<vmem>>, %arg2: memref<128x128xf32, #tpu.memory_space<vmem>>, %arg3: memref<32x96xf32, #tpu.memory_space<vmem>>, %arg4: memref<1x96xf32, #tpu.memory_space<vmem>>, %arg5: memref<32x32xf32, #tpu.memory_space<vmem>>, %arg6: memref<1x32xf32, #tpu.memory_space<vmem>>, %arg7: memref<1x32xf32, #tpu.memory_space<vmem>>, %arg8: memref<1x32xf32, #tpu.memory_space<vmem>>, %arg9: memref<128x32xf32, #tpu.memory_space<vmem>>) attributes {dimension_semantics = [#tpu.dimension_semantics<parallel>], iteration_bounds = array<i64: 2>, scalar_prefetch = 0 : i64, scratch_operands = 0 : i64, tpu.core_type = #tpu.core_type<tc>, window_params = [{transform_indices = @transform_0, window_bounds = array<i64: 128, 32>}, {pipeline_mode = #tpu.pipeline_mode<synchronous>, transform_indices = @transform_1, window_bounds = array<i64: 128, 128>}, {pipeline_mode = #tpu.pipeline_mode<synchronous>, transform_indices = @transform_2, window_bounds = array<i64: 32, 96>}, {pipeline_mode = #tpu.pipeline_mode<synchronous>, transform_indices = @transform_3, window_bounds = array<i64: 1, 96>}, {pipeline_mode = #tpu.pipeline_mode<synchronous>, transform_indices = @transform_4, window_bounds = array<i64: 32, 32>}, {pipeline_mode = #tpu.pipeline_mode<synchronous>, transform_indices = @transform_5, window_bounds = array<i64: 1, 32>}, {pipeline_mode = #tpu.pipeline_mode<synchronous>, transform_indices = @transform_6, window_bounds = array<i64: 1, 32>}, {pipeline_mode = #tpu.pipeline_mode<synchronous>, transform_indices = @transform_7, window_bounds = array<i64: 1, 32>}, {transform_indices = @transform_8, window_bounds = array<i64: 128, 32>}]} {
    %c0 = arith.constant 0 : index
    %c0_0 = arith.constant 0 : index
    %0 = vector.load %arg1[%c0, %c0_0] : memref<128x32xf32, #tpu.memory_space<vmem>>, vector<128x32xf32>
    %c0_1 = arith.constant 0 : index
    %c0_2 = arith.constant 0 : index
    %1 = vector.load %arg2[%c0_1, %c0_2] : memref<128x128xf32, #tpu.memory_space<vmem>>, vector<128x128xf32>
    %c0_3 = arith.constant 0 : index
    %c0_4 = arith.constant 0 : index
    %2 = vector.load %arg3[%c0_3, %c0_4] : memref<32x96xf32, #tpu.memory_space<vmem>>, vector<32x96xf32>
    %cst = arith.constant dense<0.000000e+00> : vector<128x96xf32>
    %3 = tpu.matmul %0, %2, %cst {dimension_numbers = #tpu.dot_dimension_numbers<[1], [0], [0], [1], [0, 0, 1, 1], [], []>} : vector<128x32xf32>, vector<32x96xf32>, vector<128x96xf32> -> vector<128x96xf32>
    %c0_5 = arith.constant 0 : index
    %c0_6 = arith.constant 0 : index
    %4 = vector.load %arg4[%c0_5, %c0_6] : memref<1x96xf32, #tpu.memory_space<vmem>>, vector<1x96xf32>
    %5 = vector.broadcast %4 : vector<1x96xf32> to vector<128x96xf32>
    %6 = arith.addf %3, %5 : vector<128x96xf32>
    %7 = vector.extract_strided_slice %6 {offsets = [0, 0], sizes = [128, 32], strides = [1, 1]} : vector<128x96xf32> to vector<128x32xf32>
    %8 = vector.extract_strided_slice %6 {offsets = [0, 32], sizes = [128, 32], strides = [1, 1]} : vector<128x96xf32> to vector<128x32xf32>
    %9 = vector.extract_strided_slice %6 {offsets = [0, 64], sizes = [128, 32], strides = [1, 1]} : vector<128x96xf32> to vector<128x32xf32>
    %c0_7 = arith.constant 0 : index
    %c0_8 = arith.constant 0 : index
    %10 = vector.load %arg5[%c0_7, %c0_8] : memref<32x32xf32, #tpu.memory_space<vmem>>, vector<32x32xf32>
    %cst_9 = arith.constant 0.000000e+00 : f32
    %11 = vector.broadcast %cst_9 : f32 to vector<128x32xf32>
    %12 = vector.extract_strided_slice %7 {offsets = [0, 0], sizes = [128, 8], strides = [1, 1]} : vector<128x32xf32> to vector<128x8xf32>
    %13 = vector.extract_strided_slice %8 {offsets = [0, 0], sizes = [128, 8], strides = [1, 1]} : vector<128x32xf32> to vector<128x8xf32>
    %14 = vector.extract_strided_slice %9 {offsets = [0, 0], sizes = [128, 8], strides = [1, 1]} : vector<128x32xf32> to vector<128x8xf32>
    %cst_10 = arith.constant dense<0.000000e+00> : vector<128x128xf32>
    %15 = tpu.matmul %12, %13, %cst_10 {dimension_numbers = #tpu.dot_dimension_numbers<[1], [1], [0], [0], [0, 0, 1, 0], [], []>} : vector<128x8xf32>, vector<128x8xf32>, vector<128x128xf32> -> vector<128x128xf32>
    %cst_11 = arith.constant 0.353553385 : f32
    %16 = vector.broadcast %cst_11 : f32 to vector<128x128xf32>
    %17 = arith.mulf %15, %16 : vector<128x128xf32>
    %18 = arith.addf %17, %1 : vector<128x128xf32>
    %cst_12 = arith.constant dense<0xFF800000> : vector<128xf32>
    %19 = vector.multi_reduction <maximumf>, %18, %cst_12 [1] : vector<128x128xf32> to vector<128xf32>
    %20 = vector.shape_cast %19 : vector<128xf32> to vector<128x1xf32>
    %21 = vector.broadcast %20 : vector<128x1xf32> to vector<128x128xf32>
    %22 = arith.subf %18, %21 : vector<128x128xf32>
    %23 = math.exp %22 : vector<128x128xf32>
    %cst_13 = arith.constant dense<0.000000e+00> : vector<128xf32>
    %24 = vector.multi_reduction <add>, %23, %cst_13 [1] : vector<128x128xf32> to vector<128xf32>
    %25 = vector.shape_cast %24 : vector<128xf32> to vector<128x1xf32>
    %26 = vector.broadcast %25 : vector<128x1xf32> to vector<128x128xf32>
    %27 = arith.divf %23, %26 : vector<128x128xf32>
    %cst_14 = arith.constant dense<0.000000e+00> : vector<128x8xf32>
    %28 = tpu.matmul %27, %14, %cst_14 {dimension_numbers = #tpu.dot_dimension_numbers<[1], [0], [0], [1], [0, 0, 1, 1], [], []>} : vector<128x128xf32>, vector<128x8xf32>, vector<128x8xf32> -> vector<128x8xf32>
    %29 = vector.extract_strided_slice %10 {offsets = [0, 0], sizes = [8, 32], strides = [1, 1]} : vector<32x32xf32> to vector<8x32xf32>
    %cst_15 = arith.constant dense<0.000000e+00> : vector<128x32xf32>
    %30 = tpu.matmul %28, %29, %cst_15 {dimension_numbers = #tpu.dot_dimension_numbers<[1], [0], [0], [1], [0, 0, 1, 1], [], []>} : vector<128x8xf32>, vector<8x32xf32>, vector<128x32xf32> -> vector<128x32xf32>
    %31 = arith.addf %11, %30 : vector<128x32xf32>
    %32 = vector.extract_strided_slice %7 {offsets = [0, 8], sizes = [128, 8], strides = [1, 1]} : vector<128x32xf32> to vector<128x8xf32>
    %33 = vector.extract_strided_slice %8 {offsets = [0, 8], sizes = [128, 8], strides = [1, 1]} : vector<128x32xf32> to vector<128x8xf32>
    %34 = vector.extract_strided_slice %9 {offsets = [0, 8], sizes = [128, 8], strides = [1, 1]} : vector<128x32xf32> to vector<128x8xf32>
    %cst_16 = arith.constant dense<0.000000e+00> : vector<128x128xf32>
    %35 = tpu.matmul %32, %33, %cst_16 {dimension_numbers = #tpu.dot_dimension_numbers<[1], [1], [0], [0], [0, 0, 1, 0], [], []>} : vector<128x8xf32>, vector<128x8xf32>, vector<128x128xf32> -> vector<128x128xf32>
    %cst_17 = arith.constant 0.353553385 : f32
    %36 = vector.broadcast %cst_17 : f32 to vector<128x128xf32>
    %37 = arith.mulf %35, %36 : vector<128x128xf32>
    %38 = arith.addf %37, %1 : vector<128x128xf32>
    %cst_18 = arith.constant dense<0xFF800000> : vector<128xf32>
    %39 = vector.multi_reduction <maximumf>, %38, %cst_18 [1] : vector<128x128xf32> to vector<128xf32>
    %40 = vector.shape_cast %39 : vector<128xf32> to vector<128x1xf32>
    %41 = vector.broadcast %40 : vector<128x1xf32> to vector<128x128xf32>
    %42 = arith.subf %38, %41 : vector<128x128xf32>
    %43 = math.exp %42 : vector<128x128xf32>
    %cst_19 = arith.constant dense<0.000000e+00> : vector<128xf32>
    %44 = vector.multi_reduction <add>, %43, %cst_19 [1] : vector<128x128xf32> to vector<128xf32>
    %45 = vector.shape_cast %44 : vector<128xf32> to vector<128x1xf32>
    %46 = vector.broadcast %45 : vector<128x1xf32> to vector<128x128xf32>
    %47 = arith.divf %43, %46 : vector<128x128xf32>
    %cst_20 = arith.constant dense<0.000000e+00> : vector<128x8xf32>
    %48 = tpu.matmul %47, %34, %cst_20 {dimension_numbers = #tpu.dot_dimension_numbers<[1], [0], [0], [1], [0, 0, 1, 1], [], []>} : vector<128x128xf32>, vector<128x8xf32>, vector<128x8xf32> -> vector<128x8xf32>
    %49 = vector.extract_strided_slice %10 {offsets = [8, 0], sizes = [8, 32], strides = [1, 1]} : vector<32x32xf32> to vector<8x32xf32>
    %cst_21 = arith.constant dense<0.000000e+00> : vector<128x32xf32>
    %50 = tpu.matmul %48, %49, %cst_21 {dimension_numbers = #tpu.dot_dimension_numbers<[1], [0], [0], [1], [0, 0, 1, 1], [], []>} : vector<128x8xf32>, vector<8x32xf32>, vector<128x32xf32> -> vector<128x32xf32>
    %51 = arith.addf %31, %50 : vector<128x32xf32>
    %52 = vector.extract_strided_slice %7 {offsets = [0, 16], sizes = [128, 8], strides = [1, 1]} : vector<128x32xf32> to vector<128x8xf32>
    %53 = vector.extract_strided_slice %8 {offsets = [0, 16], sizes = [128, 8], strides = [1, 1]} : vector<128x32xf32> to vector<128x8xf32>
    %54 = vector.extract_strided_slice %9 {offsets = [0, 16], sizes = [128, 8], strides = [1, 1]} : vector<128x32xf32> to vector<128x8xf32>
    %cst_22 = arith.constant dense<0.000000e+00> : vector<128x128xf32>
    %55 = tpu.matmul %52, %53, %cst_22 {dimension_numbers = #tpu.dot_dimension_numbers<[1], [1], [0], [0], [0, 0, 1, 0], [], []>} : vector<128x8xf32>, vector<128x8xf32>, vector<128x128xf32> -> vector<128x128xf32>
    %cst_23 = arith.constant 0.353553385 : f32
    %56 = vector.broadcast %cst_23 : f32 to vector<128x128xf32>
    %57 = arith.mulf %55, %56 : vector<128x128xf32>
    %58 = arith.addf %57, %1 : vector<128x128xf32>
    %cst_24 = arith.constant dense<0xFF800000> : vector<128xf32>
    %59 = vector.multi_reduction <maximumf>, %58, %cst_24 [1] : vector<128x128xf32> to vector<128xf32>
    %60 = vector.shape_cast %59 : vector<128xf32> to vector<128x1xf32>
    %61 = vector.broadcast %60 : vector<128x1xf32> to vector<128x128xf32>
    %62 = arith.subf %58, %61 : vector<128x128xf32>
    %63 = math.exp %62 : vector<128x128xf32>
    %cst_25 = arith.constant dense<0.000000e+00> : vector<128xf32>
    %64 = vector.multi_reduction <add>, %63, %cst_25 [1] : vector<128x128xf32> to vector<128xf32>
    %65 = vector.shape_cast %64 : vector<128xf32> to vector<128x1xf32>
    %66 = vector.broadcast %65 : vector<128x1xf32> to vector<128x128xf32>
    %67 = arith.divf %63, %66 : vector<128x128xf32>
    %cst_26 = arith.constant dense<0.000000e+00> : vector<128x8xf32>
    %68 = tpu.matmul %67, %54, %cst_26 {dimension_numbers = #tpu.dot_dimension_numbers<[1], [0], [0], [1], [0, 0, 1, 1], [], []>} : vector<128x128xf32>, vector<128x8xf32>, vector<128x8xf32> -> vector<128x8xf32>
    %69 = vector.extract_strided_slice %10 {offsets = [16, 0], sizes = [8, 32], strides = [1, 1]} : vector<32x32xf32> to vector<8x32xf32>
    %cst_27 = arith.constant dense<0.000000e+00> : vector<128x32xf32>
    %70 = tpu.matmul %68, %69, %cst_27 {dimension_numbers = #tpu.dot_dimension_numbers<[1], [0], [0], [1], [0, 0, 1, 1], [], []>} : vector<128x8xf32>, vector<8x32xf32>, vector<128x32xf32> -> vector<128x32xf32>
    %71 = arith.addf %51, %70 : vector<128x32xf32>
    %72 = vector.extract_strided_slice %7 {offsets = [0, 24], sizes = [128, 8], strides = [1, 1]} : vector<128x32xf32> to vector<128x8xf32>
    %73 = vector.extract_strided_slice %8 {offsets = [0, 24], sizes = [128, 8], strides = [1, 1]} : vector<128x32xf32> to vector<128x8xf32>
    %74 = vector.extract_strided_slice %9 {offsets = [0, 24], sizes = [128, 8], strides = [1, 1]} : vector<128x32xf32> to vector<128x8xf32>
    %cst_28 = arith.constant dense<0.000000e+00> : vector<128x128xf32>
    %75 = tpu.matmul %72, %73, %cst_28 {dimension_numbers = #tpu.dot_dimension_numbers<[1], [1], [0], [0], [0, 0, 1, 0], [], []>} : vector<128x8xf32>, vector<128x8xf32>, vector<128x128xf32> -> vector<128x128xf32>
    %cst_29 = arith.constant 0.353553385 : f32
    %76 = vector.broadcast %cst_29 : f32 to vector<128x128xf32>
    %77 = arith.mulf %75, %76 : vector<128x128xf32>
    %78 = arith.addf %77, %1 : vector<128x128xf32>
    %cst_30 = arith.constant dense<0xFF800000> : vector<128xf32>
    %79 = vector.multi_reduction <maximumf>, %78, %cst_30 [1] : vector<128x128xf32> to vector<128xf32>
    %80 = vector.shape_cast %79 : vector<128xf32> to vector<128x1xf32>
    %81 = vector.broadcast %80 : vector<128x1xf32> to vector<128x128xf32>
    %82 = arith.subf %78, %81 : vector<128x128xf32>
    %83 = math.exp %82 : vector<128x128xf32>
    %cst_31 = arith.constant dense<0.000000e+00> : vector<128xf32>
    %84 = vector.multi_reduction <add>, %83, %cst_31 [1] : vector<128x128xf32> to vector<128xf32>
    %85 = vector.shape_cast %84 : vector<128xf32> to vector<128x1xf32>
    %86 = vector.broadcast %85 : vector<128x1xf32> to vector<128x128xf32>
    %87 = arith.divf %83, %86 : vector<128x128xf32>
    %cst_32 = arith.constant dense<0.000000e+00> : vector<128x8xf32>
    %88 = tpu.matmul %87, %74, %cst_32 {dimension_numbers = #tpu.dot_dimension_numbers<[1], [0], [0], [1], [0, 0, 1, 1], [], []>} : vector<128x128xf32>, vector<128x8xf32>, vector<128x8xf32> -> vector<128x8xf32>
    %89 = vector.extract_strided_slice %10 {offsets = [24, 0], sizes = [8, 32], strides = [1, 1]} : vector<32x32xf32> to vector<8x32xf32>
    %cst_33 = arith.constant dense<0.000000e+00> : vector<128x32xf32>
    %90 = tpu.matmul %88, %89, %cst_33 {dimension_numbers = #tpu.dot_dimension_numbers<[1], [0], [0], [1], [0, 0, 1, 1], [], []>} : vector<128x8xf32>, vector<8x32xf32>, vector<128x32xf32> -> vector<128x32xf32>
    %91 = arith.addf %71, %90 : vector<128x32xf32>
    %c0_34 = arith.constant 0 : index
    %c0_35 = arith.constant 0 : index
    %92 = vector.load %arg6[%c0_34, %c0_35] : memref<1x32xf32, #tpu.memory_space<vmem>>, vector<1x32xf32>
    %93 = vector.broadcast %92 : vector<1x32xf32> to vector<128x32xf32>
    %94 = arith.addf %91, %93 : vector<128x32xf32>
    %95 = arith.addf %94, %0 : vector<128x32xf32>
    %cst_36 = arith.constant dense<0.000000e+00> : vector<128xf32>
    %96 = vector.multi_reduction <add>, %95, %cst_36 [1] : vector<128x32xf32> to vector<128xf32>
    %97 = vector.shape_cast %96 : vector<128xf32> to vector<128x1xf32>
    %cst_37 = arith.constant 3.200000e+01 : f32
    %98 = vector.broadcast %cst_37 : f32 to vector<128x1xf32>
    %99 = arith.divf %97, %98 : vector<128x1xf32>
    %100 = vector.broadcast %99 : vector<128x1xf32> to vector<128x32xf32>
    %101 = arith.subf %95, %100 : vector<128x32xf32>
    %102 = arith.mulf %101, %101 : vector<128x32xf32>
    %cst_38 = arith.constant dense<0.000000e+00> : vector<128xf32>
    %103 = vector.multi_reduction <add>, %102, %cst_38 [1] : vector<128x32xf32> to vector<128xf32>
    %104 = vector.shape_cast %103 : vector<128xf32> to vector<128x1xf32>
    %cst_39 = arith.constant 3.200000e+01 : f32
    %105 = vector.broadcast %cst_39 : f32 to vector<128x1xf32>
    %106 = arith.divf %104, %105 : vector<128x1xf32>
    %107 = vector.broadcast %99 : vector<128x1xf32> to vector<128x32xf32>
    %108 = arith.subf %95, %107 : vector<128x32xf32>
    %cst_40 = arith.constant 9.99999974E-6 : f32
    %109 = vector.broadcast %cst_40 : f32 to vector<128x1xf32>
    %110 = arith.addf %106, %109 : vector<128x1xf32>
    %111 = math.rsqrt %110 : vector<128x1xf32>
    %112 = vector.broadcast %111 : vector<128x1xf32> to vector<128x32xf32>
    %113 = arith.mulf %108, %112 : vector<128x32xf32>
    %c0_41 = arith.constant 0 : index
    %c0_42 = arith.constant 0 : index
    %114 = vector.load %arg7[%c0_41, %c0_42] : memref<1x32xf32, #tpu.memory_space<vmem>>, vector<1x32xf32>
    %115 = vector.broadcast %114 : vector<1x32xf32> to vector<128x32xf32>
    %116 = arith.mulf %113, %115 : vector<128x32xf32>
    %c0_43 = arith.constant 0 : index
    %c0_44 = arith.constant 0 : index
    %117 = vector.load %arg8[%c0_43, %c0_44] : memref<1x32xf32, #tpu.memory_space<vmem>>, vector<1x32xf32>
    %118 = vector.broadcast %117 : vector<1x32xf32> to vector<128x32xf32>
    %119 = arith.addf %116, %118 : vector<128x32xf32>
    %c0_45 = arith.constant 0 : index
    %c0_46 = arith.constant 0 : index
    %120 = vector.load %arg9[%c0_45, %c0_46] : memref<128x32xf32, #tpu.memory_space<vmem>>, vector<128x32xf32>
    tpu.vector_store %arg9[%c0_45, %c0_46], %119 {strides = array<i32>} : memref<128x32xf32, #tpu.memory_space<vmem>>, vector<128x32xf32>,
    return
  }
  func.func @transform_0(%arg0: i32) -> (i32, i32) {
    %c0_i32 = arith.constant 0 : i32
    %c0_i32_0 = arith.constant 0 : i32
    return %arg0, %c0_i32 : i32, i32
  }
  func.func @transform_1(%arg0: i32) -> (i32, i32) {
    %c0_i32 = arith.constant 0 : i32
    %c0_i32_0 = arith.constant 0 : i32
    %c0_i32_1 = arith.constant 0 : i32
    return %c0_i32, %c0_i32_0 : i32, i32
  }
  func.func @transform_2(%arg0: i32) -> (i32, i32) {
    %c0_i32 = arith.constant 0 : i32
    %c0_i32_0 = arith.constant 0 : i32
    %c0_i32_1 = arith.constant 0 : i32
    return %c0_i32, %c0_i32_0 : i32, i32
  }
  func.func @transform_3(%arg0: i32) -> (i32, i32) {
    %c0_i32 = arith.constant 0 : i32
    %c0_i32_0 = arith.constant 0 : i32
    %c0_i32_1 = arith.constant 0 : i32
    return %c0_i32, %c0_i32_0 : i32, i32
  }
  func.func @transform_4(%arg0: i32) -> (i32, i32) {
    %c0_i32 = arith.constant 0 : i32
    %c0_i32_0 = arith.constant 0 : i32
    %c0_i32_1 = arith.constant 0 : i32
    return %c0_i32, %c0_i32_0 : i32, i32
  }
  func.func @transform_5(%arg0: i32) -> (i32, i32) {
    %c0_i32 = arith.constant 0 : i32
    %c0_i32_0 = arith.constant 0 : i32
    %c0_i32_1 = arith.constant 0 : i32
    return %c0_i32, %c0_i32_0 : i32, i32
  }
  func.func @transform_6(%arg0: i32) -> (i32, i32) {
    %c0_i32 = arith.constant 0 : i32
    %c0_i32_0 = arith.constant 0 : i32
    %c0_i32_1 = arith.constant 0 : i32
    return %c0_i32, %c0_i32_0 : i32, i32
  }
  func.func @transform_7(%arg0: i32) -> (i32, i32) {
    %c0_i32 = arith.constant 0 : i32
    %c0_i32_0 = arith.constant 0 : i32
    %c0_i32_1 = arith.constant 0 : i32
    return %c0_i32, %c0_i32_0 : i32, i32
  }
  func.func @transform_8(%arg0: i32) -> (i32, i32) {
    %c0_i32 = arith.constant 0 : i32
    %c0_i32_0 = arith.constant 0 : i32
    return %arg0, %c0_i32 : i32, i32
  }
}

</mosaic_0001>

<bundles_post_ra>
// kernel: local_attention_forward.1
= control target key start
LH: loop header
LB: loop body
LE: loop exit
PB: predicated region body
PF: predicated region fallthrough
CT: control target
= control target key end

     0   :  { %13 = vsyncpa [#allocation3], 0  ;;  %s8854_s0 = inlined_call_operand.hbm [shape: f32[256,32], index: 0, kind: input, shape index: {}]   ;;  %s8855_s1 = inlined_call_operand.hbm [shape: f32[128,128], index: 1, kind: input, shape index: {}]   ;;  %s8856_s2 = inlined_call_operand.hbm [shape: f32[32,96], index: 2, kind: input, shape index: {}]   ;;  %s8857_s3 = inlined_call_operand.vmem [shape: f32[1,96], index: 3, kind: input, shape index: {}]   ;;  %s8858_s4 = inlined_call_operand.hbm [shape: f32[32,32], index: 4, kind: input, shape index: {}]   ;;  %s8859_s5 = inlined_call_operand.vmem [shape: f32[1,32], index: 5, kind: input, shape index: {}]   ;;  %s8860_s6 = inlined_call_operand.vmem [shape: f32[1,32], index: 6, kind: input, shape index: {}]   ;;  %s8861_s7 = inlined_call_operand.vmem [shape: f32[1,32], index: 7, kind: input, shape index: {}]   ;;  %s8862_s8 = inlined_call_operand.hbm [shape: f32[256,32], index: 8, kind: output, shape index: {}]  }
   0x1   :  { %15 = vsyncpa [#allocation3 + $0x1], 0 }
   0x2   :  { %16 = vsyncpa [#allocation6], 0 }
   0x3   :  { %17 = vsyncpa [#allocation9], 0 }
   0x4   :  { %18 = vsyncpa [#allocation4], 0 }
   0x5   :  { %20 = vsyncpa [#allocation4 + $0x1], 0  ;;  %s6943_s27 = smov 0   ;;  %s6945_s28 = smov 0  }
   0x6   :  { %s6947_s29 = smov 0   ;;  %s6949_s30 = smov 0  }
   0x7 LB: > { %8880 = sst [smem:[#allocation15_spill]] %s6864_s27  ;;  %s6964_s9 = sadd.s32 4294967295, %s6876_s30   ;;  %s6876_s30 = sphi %s6949_s30, %s8985_s30   ;;  %s6872_s29 = sphi %s6947_s29, %s8984_s29   ;;  %s6868_s28 = sphi %s6945_s28, %s8983_s28   ;;  %s6864_s27 = sphi %s6943_s27, %s8982_s27  }
   0x8   : > { %s4394_s10 = sadd.s32 4294967294, %s6876_s30   ;;  %p46_p0 = scmp.ne.s32.totalorder %s6868_s28, %s6864_s27 }
   0x9   : > { %p8863_p1 = scmp.eq.s32.totalorder %s6964_s9, 0  ;;  %p223_p3 = scmp.eq.s32.totalorder %s4394_s10, 1 }
   0xa   : > { %p4395_p5 = scmp.ge.s32.totalorder %s6876_s30, 1  ;;  %p230_p7 = scmp.lt.s32.totalorder %s6876_s30, 3 }
   0xb   : > { %p6973_p4 = por %p8863_p1, %p46_p0  ;;  %p6978_p6 = por %p223_p3, %p46_p0 }
   0xc   : > { %p6983_p8 = pnand %p4395_p5, %p230_p7  ;;  %s6878_s14 = smov [#allocation5]  }
   0xd   : > { %s8881_s11 = scalar_select %p6973_p4, 1, 0 }
   0xe   : > { %s8882_s12 = scalar_select %p6978_p6, 1, 0 }
   0xf   : > { %s8884_s13 = scalar_select %p6983_p8, 1, 0 }
  0x10   : > { %8883 = sst [smem:[#allocation16_spill]] %s8882_s12  ;;  %s242_s15 = sshll.u32 %s6878_s14, 4  ;;  %s6987_s15 = int_to_ptr.vmem [resolvable:$true] %s242_s15 }
  0x11   : > { %p5964_p9 = pneg %p6983_p8  ;;  %s6879_s17 = smov [#allocation7]  }
  0x12   : > { %s255_s18 = sshll.u32 %s6879_s17, 4  ;;  %s6880_s19 = smov [#allocation8]   ;;  %s6998_s18 = int_to_ptr.vmem [resolvable:$true] %s255_s18 }
  0x13   : > { %p6994_p11 = pnand %p5964_p9, %p8863_p1  ;;  %s7000_s20 = sshll.u32 %s6880_s19, 4  ;;  %s272_s20 = int_to_ptr.vmem [resolvable:$true] %s7000_s20 }
  0x14   : > { %s6688_s23 = scalar_lea.hbm %s8855_s1, 2048 }
  0x15   : > { %p6689_p12 = scmp.ne.s32.totalorder %s8855_s1, %s6688_s23  ;;  %p7010_p13 = pneg %p6994_p11 }
  0x16   : > { %p6695_p5 = scmp.lt.u32.totalorder %s6688_s23, %s8855_s1 }
  0x17   : > { %p6691_p0 = pnand %p7010_p13, %p6689_p12 }
  0x19   : > { %p6692_p3 = pneg %p6691_p0 }
  0x1b   : > { %p6697_p7 = pnand %p6695_p5, %p6692_p3 }
  0x1d   : > { %6700 = shalt.err (!%p6697_p7)
}
  0x1e   : > { %s6701_s17 = scalar_lea.vmem %s6987_s15, 2048  ;;  %p6709_p2 = scmp.lt.s32.totalorder %s6987_s15, %s6987_s15 }
  0x1f   : > { %p6702_p9 = scmp.ne.s32.totalorder %s6987_s15, %s6701_s17  ;;  %p6710_p6 = scmp.lt.s32.totalorder %s6701_s17, %s6701_s17 }
  0x21   : > { %p6704_p10 = pnand %p6702_p9, %p7010_p13  ;;  %p6711_p12 = por %p6710_p6, %p6709_p2 }
  0x23   : > { %p6705_p1 = pneg %p6704_p10 }
  0x25   : > { %p6712_p0 = pnand %p6711_p12, %p6705_p1 }
  0x27   : > { %6715 = shalt.err (!%p6712_p0)
}
  0x28   : > { %s6881_s19 = smov 128   ;;  %s6882_s21 = smov 8  }
  0x29   : > { %5967 = dma.hbm_to_vmem [thread:$0]  (!%p6994_p11), %s8855_s1, 2048, %s6987_s15, [#allocation6], %s6881_s19, %s6881_s19, %s6882_s21  }
  0x2a   : > { %s6716_s10 = scalar_lea.hbm %s8856_s2, 512 }
  0x2b   : > { %p6717_p1 = scmp.ne.s32.totalorder %s8856_s2, %s6716_s10  ;;  %p6723_p10 = scmp.lt.u32.totalorder %s6716_s10, %s8856_s2 }
  0x2d   : > { %p6719_p2 = pnand %p6717_p1, %p7010_p13 }
  0x2f   : > { %p6720_p6 = pneg %p6719_p2 }
  0x31   : > { %p6725_p3 = pnand %p6723_p10, %p6720_p6 }
  0x33   : > { %6728 = shalt.err (!%p6725_p3)
}
  0x34   : > { %s6729_s15 = scalar_lea.vmem %s6998_s18, 512  ;;  %p6737_p12 = scmp.lt.s32.totalorder %s6998_s18, %s6998_s18 }
  0x35   : > { %p6730_p5 = scmp.ne.s32.totalorder %s6998_s18, %s6729_s15  ;;  %p6738_p0 = scmp.lt.s32.totalorder %s6729_s15, %s6729_s15 }
  0x37   : > { %p6732_p7 = pnand %p6730_p5, %p7010_p13  ;;  %p6739_p1 = por %p6738_p0, %p6737_p12 }
  0x39   : > { %p6733_p9 = pneg %p6732_p7 }
  0x3b   : > { %p6740_p2 = pnand %p6739_p1, %p6733_p9 }
  0x3d   : > { %6743 = shalt.err (!%p6740_p2)
}
  0x3e   : > { %5970 = dma.hbm_to_vmem [thread:$0]  (!%p6994_p11), %s8856_s2, 512, %s6998_s18, [#allocation6], %s6881_s19, %s6881_s19, %s6882_s21  }
  0x3f   : > { %s6744_s24 = scalar_lea.hbm %s8858_s4, 512 }
  0x40   : > { %p6745_p6 = scmp.ne.s32.totalorder %s8858_s4, %s6744_s24  ;;  %p6751_p5 = scmp.lt.u32.totalorder %s6744_s24, %s8858_s4 }
  0x42   : > { %p6747_p10 = pnand %p6745_p6, %p7010_p13 }
  0x44   : > { %p6748_p3 = pneg %p6747_p10 }
  0x46   : > { %p6753_p7 = pnand %p6751_p5, %p6748_p3 }
  0x48   : > { %6756 = shalt.err (!%p6753_p7)
}
  0x49   : > { %s6757_s15 = scalar_lea.vmem %s272_s20, 512  ;;  %p6765_p1 = scmp.lt.s32.totalorder %s272_s20, %s272_s20 }
  0x4a   : > { %p6758_p9 = scmp.ne.s32.totalorder %s272_s20, %s6757_s15  ;;  %p6766_p2 = scmp.lt.s32.totalorder %s6757_s15, %s6757_s15 }
  0x4c   : > { %p6760_p12 = pnand %p6758_p9, %p7010_p13  ;;  %p6767_p4 = por %p6766_p2, %p6765_p1 }
  0x4e   : > { %p6761_p0 = pneg %p6760_p12 }
  0x50   : > { %p6768_p8 = pnand %p6767_p4, %p6761_p0 }
  0x52   : > { %6771 = shalt.err (!%p6768_p8)
}
  0x53   : > { %5973 = dma.hbm_to_vmem [thread:$0]  (!%p6994_p11), %s8858_s4, 512, %s272_s20, [#allocation9], %s6881_s19, %s6881_s19, %s6882_s21  }
  0x54   : > { %s7083_s26 = sadd.s32 1, %s6876_s30   ;;  %s33_s12 = sadd.s32 1, %s6872_s29 }
  0x55   : > { %s30_s16 = ssub.s32 %s6876_s30, %s7083_s26  ;;  %p40_p8 = scmp.ne.s32.totalorder %s6872_s29, %s6868_s28 }
  0x56   : > { %p31_p4 = scmp.eq.s32.totalorder %s30_s16, 0  ;;  %p41_p13 = scmp.eq.s32.totalorder %s6876_s30, 0 }
  0x57   : > { %p5985_p6 = scmp.lt.s32.totalorder %s6876_s30, 2  ;;  %p8887_p3 = scmp.eq.s32.totalorder %s6964_s9, 1 }
  0x58   : > { %s7093_s22 = scalar_select %p31_p4, %s6872_s29, %s33_s12  }
  0x59   : > { %p42_p10 = por %p41_p13, %p40_p8  ;;  %p7097_p5 = por %p8887_p3, %p40_p8 }
  0x5a   : > { %s294_s24 = sand.u32 1, %s6872_s29   ;;  %s4626_s25 = sshll.u32 %s6876_s30, 11 }
  0x5b   : > { %s4400_s20 = sshll.u32 %s294_s24, 7  ;;  %s7106_s17 = scalar_lea.hbm %s8854_s0, %s4626_s25 }
  0x5c   : > { %s298_s15 = scalar_lea.vmem [#allocation2], %s4400_s20  ;;  %p7108_p11 = pnand %p5985_p6, %p42_p10 }
  0x5d   : > { %s305_s18 = sshll.u32 %s298_s15, 4  ;;  %s7114_s16 = scalar_lea.sflag [#allocation3], %s294_s24  ;;  %s7112_s18 = int_to_ptr.vmem [resolvable:$true] %s305_s18 }
  0x5e   : > { %s6772_s12 = scalar_lea.hbm %s7106_s17, 2048  ;;  %p6774_p9 = pneg %p7108_p11 }
  0x5f   : > { %p6773_p7 = scmp.ne.s32.totalorder %s7106_s17, %s6772_s12  ;;  %s6777_s10 = scalar_lea.hbm %s8854_s0, 4096 }
  0x60   : > { %p6778_p1 = scmp.lt.u32.totalorder %s7106_s17, %s8854_s0  ;;  %p6779_p2 = scmp.lt.u32.totalorder %s6777_s10, %s6772_s12 }
  0x61   : > { %p6775_p12 = pnand %p6774_p9, %p6773_p7  ;;  %p6781_p8 = scmp.lt.u32.totalorder %s6772_s12, %s7106_s17 }
  0x62   : > { %p6780_p4 = por %p6779_p2, %p6778_p1 }
  0x63   : > { %p6776_p0 = pneg %p6775_p12 }
  0x64   : > { %p6782_p13 = por %p6781_p8, %p6780_p4 }
  0x66   : > { %p6783_p6 = pnand %p6782_p13, %p6776_p0 }
  0x68   : > { %6786 = shalt.err (!%p6783_p6)
}
  0x69   : > { %s6787_s24 = scalar_lea.vmem %s7112_s18, 2048  ;;  %s6883_s25 = smov [#allocation2]  }
  0x6a   : > { %p6788_p10 = scmp.ne.s32.totalorder %s7112_s18, %s6787_s24  ;;  %s6792_s20 = sshll.u32 %s6883_s25, 4  ;;  %s6793_s20 = int_to_ptr.vmem [resolvable:$false] %s6792_s20 }
  0x6b   : > { %s6794_s14 = scalar_lea.vmem %s6793_s20, 4096  ;;  %p6795_p12 = scmp.lt.s32.totalorder %s7112_s18, %s6793_s20 }
  0x6c   : > { %p6790_p3 = pnand %p6788_p10, %p6774_p9  ;;  %p6796_p1 = scmp.lt.s32.totalorder %s6794_s14, %s6787_s24 }
  0x6e   : > { %p6791_p7 = pneg %p6790_p3  ;;  %p6797_p2 = por %p6796_p1, %p6795_p12 }
  0x70   : > { %p6798_p4 = pnand %p6797_p2, %p6791_p7 }
  0x72   : > { %6801 = shalt.err (!%p6798_p4)
}
  0x73   : > { %5977 = dma.hbm_to_vmem [thread:$0]  (!%p7108_p11), %s7106_s17, 2048, %s7112_s18, %s7114_s16, %s6881_s19, %s6881_s19, %s6882_s21  }
  0x74   : > { %p8890_p9 = scmp.ne.s32.totalorder %s8884_s13, 0 }
  0x76   : > { %317 = sbr.rel (%p8890_p9) target bundleno = 3242 (0xcaa), region = 52 }
  0x7d   : > { %s7148_s12 = sand.u32 1, %s6868_s28   ;;  %p8891_p0 = scmp.ne.s32.totalorder %s8881_s11, 0 }
  0x7e   : > { %s4404_s10 = sshll.u32 %s7148_s12, 7  ;;  %s320_s15 = scalar_lea.sflag [#allocation3], %s7148_s12 }
  0x7f   : > { %s7154_s27 = scalar_lea.vmem [#allocation2], %s4404_s10 }
  0x80   : > { %6847 = dma.done.wait (%p8891_p0), %s320_s15, 2048  }
  0x81   : > { %6849 = vsyncadd (%p8891_p0), %s320_s15, 4294965248  ;;  %p8892_p11 = scmp.eq.s32.totalorder %s6964_s9, 0 }
  0x83   : > { %6851 = dma.done.wait (%p8892_p11), [#allocation6], 2560   ;;  %p8893_p8 = pmov %p8892_p11 }
  0x85   : > { %6853 = vsyncadd (%p8893_p8), [#allocation6], 4294964736  ;;  %p8894_p13 = pmov %p8893_p8 }
  0x86   : > { %p8895_p6 = pmov %p8893_p8 }
  0x87   : > { %6855 = dma.done.wait (%p8894_p13), [#allocation9], 512  }
  0x88   : > { %6857 = vsyncadd (%p8895_p6), [#allocation9], 4294966784  ;;  %vm413_vm0 = vcmask 261120   ;;  %v402_v0 = vld [vmem:[#allocation7] sm:$0xff]  ;;  %v403_v1 = vld [vmem:[#allocation7 + $0x8] sm:$0xff]  ;;  %vm659_vm1 = vcmask 64512  }
  0x89   : > { %v404_v2 = vld [vmem:[#allocation7 + $0x10] sm:$0xff]  ;;  %v5556_v3 = vpack.c.bf16 %v403_v1, %v402_v0  ;;  %v405_v4 = vld [vmem:[#allocation7 + $0x18] sm:$0xff]  ;;  %v370_v5 = vld [vmem:[%s7154_s27] sm:$0xff]  ;;  %s6884_s19 = smov 96   ;;  %s6885_s21 = smov 64  }
  0x8a   : > { %v5560_v6 = vpack.c.bf16 %v405_v4, %v404_v2  ;;  %4980 = vmatprep.mubr.msk.f32.mxu0 %vm413_vm0, %v370_v5  ;;  %v371_v7 = vld [vmem:[%s7154_s27 + $0x8] sm:$0xff]  ;;  %v372_v8 = vld [vmem:[%s7154_s27 + $0x10] sm:$0xff]  ;;  %v373_v9 = vld [vmem:[%s7154_s27 + $0x18] sm:$0xff]  ;;  %v8896_v2 = vmov 0  ;;  %s6886_s17 = smov 88   ;;  %s6887_s18 = smov 120  }
  0x8b   : > { %5557 = vmatprep.subr.bf16.mxu0 %v5556_v3  ;;  %v374_v10 = vld [vmem:[%s7154_s27 + $0x20] sm:$0xff]  ;;  %v375_v11 = vld [vmem:[%s7154_s27 + $0x28] sm:$0xff]  ;;  %v376_v12 = vld [vmem:[%s7154_s27 + $0x30] sm:$0xff]  ;;  %s6888_s16 = smov 80   ;;  %s6889_s24 = smov 112  }
  0x8c   : > { %5559 = vmatpush3.bf16.msra.mxu0 %v5556_v3  ;;  %v377_v13 = vld [vmem:[%s7154_s27 + $0x38] sm:$0xff]  ;;  %v378_v14 = vld [vmem:[%s7154_s27 + $0x40] sm:$0xff]  ;;  %v379_v15 = vld [vmem:[%s7154_s27 + $0x48] sm:$0xff]  ;;  %s6890_s25 = smov 56   ;;  %s6891_s20 = smov 72  }
  0x8d   : > { %5561 = vmatprep.subr.bf16.mxu0 %v5560_v6  ;;  %v380_v16 = vld [vmem:[%s7154_s27 + $0x50] sm:$0xff]  ;;  %v381_v17 = vld [vmem:[%s7154_s27 + $0x58] sm:$0xff]  ;;  %v382_v18 = vld [vmem:[%s7154_s27 + $0x60] sm:$0xff]  ;;  %s6892_s14 = smov 104   ;;  %s6893_s15 = smov 48  }
  0x8e   : > { %v383_v19 = vld [vmem:[%s7154_s27 + $0x68] sm:$0xff]  ;;  %v384_v20 = vld [vmem:[%s7154_s27 + $0x70] sm:$0xff]  ;;  %v385_v21 = vld [vmem:[%s7154_s27 + $0x78] sm:$0xff]  ;;  %s6894_s11 = smov 40  }
  0x8f   : > { %v4409_v22 = vld [vmem:[%s8857_s3] ss:$0 sm:$0xff]  ;;  %vm7295_vm2 = vmpackc.low %vm659_vm1, %vm659_vm1 }
  0x90   : > { %5563 = vmatpush3.bf16.msra.mxu0 %v5560_v6  ;;  %v8897_v2 = vsel %vm7295_vm2, 4294967295, %v8896_v2 }
  0x91   : > { %8898 = vst [vmem:[#allocation17_spill] sm:$0xff] %v8897_v2 }
  0x93   : > { %4981 = vmatmul.mubr.msk.f32.vlgmr.msra.gmra.mrb[0].mxu0 %vm413_vm0, %v371_v7 }
  0x94   : > { %4983 = vmatprep.mubr.msk.f32.mxu0 %vm413_vm0, %v372_v8 }
  0x97   : > { %4984 = vmatmul.mubr.msk.f32.gmra.mrb[2].mxu0 %vm413_vm0, %v373_v9 }
  0x98   : > { %4986 = vmatprep.mubr.msk.f32.mxu0 %vm413_vm0, %v374_v10 }
  0x9b   : > { %4987 = vmatmul.mubr.msk.f32.gmra.mrb[4].mxu0 %vm413_vm0, %v375_v11 }
  0x9c   : > { %4989 = vmatprep.mubr.msk.f32.mxu0 %vm413_vm0, %v376_v12 }
  0x9f   : > { %4990 = vmatmul.mubr.msk.f32.gmra.mrb[6].mxu0 %vm413_vm0, %v377_v13 }
  0xa0   : > { %4992 = vmatprep.mubr.msk.f32.mxu0 %vm413_vm0, %v378_v14 }
  0xa3   : > { %4993 = vmatmul.mubr.msk.f32.gmra.mrb[8].mxu0 %vm413_vm0, %v379_v15 }
  0xa4   : > { %4995 = vmatprep.mubr.msk.f32.mxu0 %vm413_vm0, %v380_v16 }
  0xa7   : > { %4996 = vmatmul.mubr.msk.f32.gmra.mrb[10].mxu0 %vm413_vm0, %v381_v17 }
  0xa8   : > { %4998 = vmatprep.mubr.msk.f32.mxu0 %vm413_vm0, %v382_v18 }
  0xab   : > { %4999 = vmatmul.mubr.msk.f32.gmra.mrb[12].mxu0 %vm413_vm0, %v383_v19 }
  0xac   : > { %5001 = vmatprep.mubr.msk.f32.mxu0 %vm413_vm0, %v384_v20 }
  0xaf   : > { %5002 = vmatmul.mubr.msk.f32.gmra.mrb[14].mxu0 %vm413_vm0, %v385_v21 }
 0x166   : > { %v4982_v23 = vpop.f32.mrb[0].mxu0 }
 0x167   : > { %v7203_v24 = vadd.f32 %v4982_v23, %v4409_v22  ;;  %v528_v25 = vpop.f32.mrb[1].mxu0 }
 0x168   : > { %v7205_v26 = vadd.f32 %v4409_v22, %v528_v25 }
 0x16a   : > { %5036 = vmatprep.mubr.msk.f32.mxu1 %vm659_vm1, %v7205_v26  ;;  %v7211_v27 = vpack.i.bf16 %v7203_v24, %v7205_v26  ;;  %v4985_v28 = vpop.f32.mrb[2].mxu0 }
 0x16b   : > { %v7213_v29 = vadd.f32 %v4985_v28, %v4409_v22  ;;  %v538_v30 = vpop.f32.mrb[3].mxu0 }
 0x16c   : > { %6041 = vrot.lane.b32.xlu0 %v7211_v27, %s6884_s19  ;;  %v7217_v31 = vadd.f32 %v4409_v22, %v538_v30 }
 0x16e   : > { %v7221_v32 = vpack.i.bf16 %v7213_v29, %v7217_v31  ;;  %v4988_v33 = vpop.f32.mrb[4].mxu0 }
 0x16f   : > { %v7223_v34 = vadd.f32 %v4988_v33, %v4409_v22  ;;  %v548_v35 = vpop.f32.mrb[5].mxu0 }
 0x170   : > { %6046 = vrot.lane.b32.xlu0 %v7221_v32, %s6884_s19  ;;  %v7227_v36 = vadd.f32 %v4409_v22, %v548_v35 }
 0x172   : > { %v4991_v37 = vpop.f32.mrb[6].mxu0  ;;  %v7231_v38 = vpack.i.bf16 %v7223_v34, %v7227_v36 }
 0x173   : > { %v7233_v39 = vadd.f32 %v4991_v37, %v4409_v22  ;;  %v558_v40 = vpop.f32.mrb[7].mxu0 }
 0x174   : > { %v7235_v41 = vadd.f32 %v4409_v22, %v558_v40  ;;  %6051 = vrot.lane.b32.xlu1 %v7231_v38, %s6884_s19 }
 0x176   : > { %v4994_v42 = vpop.f32.mrb[8].mxu0  ;;  %v7241_v43 = vpack.i.bf16 %v7233_v39, %v7235_v41 }
 0x177   : > { %v7243_v44 = vadd.f32 %v4994_v42, %v4409_v22  ;;  %v568_v45 = vpop.f32.mrb[9].mxu0 }
 0x178   : > { %v7245_v46 = vadd.f32 %v4409_v22, %v568_v45  ;;  %6056 = vrot.lane.b32.xlu1 %v7241_v43, %s6884_s19 }
 0x17a   : > { %v4997_v47 = vpop.f32.mrb[10].mxu0  ;;  %v7251_v48 = vpack.i.bf16 %v7243_v44, %v7245_v46 }
 0x17b   : > { %v7253_v49 = vadd.f32 %v4997_v47, %v4409_v22  ;;  %v578_v50 = vpop.f32.mrb[11].mxu0 }
 0x17c   : > { %v7255_v51 = vadd.f32 %v4409_v22, %v578_v50  ;;  %6061 = vrot.lane.b32.xlu0 %v7251_v48, %s6884_s19 }
 0x17e   : > { %v5000_v52 = vpop.f32.mrb[12].mxu0  ;;  %v7261_v53 = vpack.i.bf16 %v7253_v49, %v7255_v51 }
 0x17f   : > { %v7263_v54 = vadd.f32 %v5000_v52, %v4409_v22  ;;  %v588_v55 = vpop.f32.mrb[13].mxu0 }
 0x180   : > { %v7265_v56 = vadd.f32 %v4409_v22, %v588_v55  ;;  %6066 = vrot.lane.b32.xlu1 %v7261_v53, %s6884_s19 }
 0x182   : > { %v5003_v57 = vpop.f32.mrb[14].mxu0  ;;  %v7271_v58 = vpack.i.bf16 %v7263_v54, %v7265_v56 }
 0x183   : > { %v7273_v59 = vadd.f32 %v5003_v57, %v4409_v22  ;;  %v598_v60 = vpop.f32.mrb[15].mxu0 }
 0x184   : > { %v7275_v61 = vadd.f32 %v4409_v22, %v598_v60  ;;  %6071 = vrot.lane.b32.xlu0 %v7271_v58, %s6884_s19 }
 0x186   : > { %v7281_v62 = vpack.i.bf16 %v7273_v59, %v7275_v61 }
 0x188   : > { %6076 = vrot.lane.b32.xlu1 %v7281_v62, %s6884_s19  ;;  %6086 = vrot.lane.b32.xlu0 %v7221_v32, %s6885_s21 }
 0x18c   : > { %6081 = vrot.lane.b32.xlu1 %v7211_v27, %s6885_s21  ;;  %6096 = vrot.lane.b32.xlu0 %v7241_v43, %s6885_s21 }
 0x190   : > { %6091 = vrot.lane.b32.xlu1 %v7231_v38, %s6885_s21  ;;  %6106 = vrot.lane.b32.xlu0 %v7261_v53, %s6885_s21 }
 0x194   : > { %6101 = vrot.lane.b32.xlu1 %v7251_v48, %s6885_s21 }
 0x198   : > { %6111 = vrot.lane.b32.xlu1 %v7271_v58, %s6885_s21 }
 0x19c   : > { %6116 = vrot.lane.b32.xlu1 %v7281_v62, %s6885_s21 }
 0x1de   : > { %v6042_v63 = vpop.permute.xlu0 %6041 }
 0x1df   : > { %v6044_v0 = vunpack.i.h.bf16 %v6042_v63  ;;  %v6043_v1 = vunpack.i.l.bf16 %v6042_v63 }
 0x1e1   : > { %v5564_v3 = vpack.c.bf16 %v6044_v0, %v6043_v1 }
 0x1e2   : > { %v6047_v4 = vpop.permute.xlu0 %6046 }
 0x1e3   : > { %5566 = vmatprep.subr.msk.bf16.mxu1 %vm7295_vm2, %v5564_v3  ;;  %v6049_v5 = vunpack.i.h.bf16 %v6047_v4  ;;  %v6048_v6 = vunpack.i.l.bf16 %v6047_v4 }
 0x1e4   : > { %5569 = vmatpush3.bf16.xpose.msk.msra.mxu1 %vm7295_vm2, %v5564_v3 }
 0x1e5   : > { %v5570_v7 = vpack.c.bf16 %v6049_v5, %v6048_v6 }
 0x1e6   : > { %v6052_v8 = vpop.permute.xlu1 %6051 }
 0x1e7   : > { %5572 = vmatprep.subr.msk.bf16.mxu1 %vm7295_vm2, %v5570_v7  ;;  %v6054_v9 = vunpack.i.h.bf16 %v6052_v8  ;;  %v6053_v10 = vunpack.i.l.bf16 %v6052_v8 }
 0x1e9   : > { %v5576_v11 = vpack.c.bf16 %v6054_v9, %v6053_v10 }
 0x1ea   : > { %v6057_v12 = vpop.permute.xlu1 %6056 }
 0x1eb   : > { %v6059_v13 = vunpack.i.h.bf16 %v6057_v12  ;;  %v6058_v14 = vunpack.i.l.bf16 %v6057_v12 }
 0x1ec   : > { %5575 = vmatpush3.bf16.xpose.msk.msra.mxu1 %vm7295_vm2, %v5570_v7 }
 0x1ed   : > { %5578 = vmatprep.subr.msk.bf16.mxu1 %vm7295_vm2, %v5576_v11  ;;  %v5582_v16 = vpack.c.bf16 %v6059_v13, %v6058_v14 }
 0x1ee   : > { %v6062_v15 = vpop.permute.xlu0 %6061 }
 0x1ef   : > { %v6064_v18 = vunpack.i.h.bf16 %v6062_v15  ;;  %v6063_v19 = vunpack.i.l.bf16 %v6062_v15 }
 0x1f1   : > { %v5588_v21 = vpack.c.bf16 %v6064_v18, %v6063_v19 }
 0x1f2   : > { %v6067_v17 = vpop.permute.xlu1 %6066 }
 0x1f3   : > { %v6069_v25 = vunpack.i.h.bf16 %v6067_v17  ;;  %v6068_v28 = vunpack.i.l.bf16 %v6067_v17 }
 0x1f4   : > { %5581 = vmatpush3.bf16.xpose.msk.msra.mxu1 %vm7295_vm2, %v5576_v11 }
 0x1f5   : > { %5584 = vmatprep.subr.msk.bf16.mxu1 %vm7295_vm2, %v5582_v16  ;;  %v5594_v42 = vpack.c.bf16 %v6069_v25, %v6068_v28 }
 0x1f6   : > { %v6072_v20 = vpop.permute.xlu0 %6071 }
 0x1f7   : > { %v6074_v60 = vunpack.i.h.bf16 %v6072_v20  ;;  %v6073_v63 = vunpack.i.l.bf16 %v6072_v20 }
 0x1f9   : > { %v5600_v5 = vpack.c.bf16 %v6074_v60, %v6073_v63 }
 0x1fa   : > { %v6077_v22 = vpop.permute.xlu1 %6076  ;;  %v6087_v23 = vpop.permute.xlu0 %6086 }
 0x1fb   : > { %v6089_v33 = vunpack.i.h.bf16 %v6087_v23  ;;  %v6088_v35 = vunpack.i.l.bf16 %v6087_v23  ;;  %v6079_v10 = vunpack.i.h.bf16 %v6077_v22  ;;  %v6078_v11 = vunpack.i.l.bf16 %v6077_v22 }
 0x1fc   : > { %5587 = vmatpush3.bf16.xpose.msk.msra.mxu1 %vm7295_vm2, %v5582_v16 }
 0x1fd   : > { %5590 = vmatprep.subr.msk.bf16.mxu1 %vm7295_vm2, %v5588_v21  ;;  %v5616_v55 = vpack.c.bf16 %v6089_v33, %v6088_v35  ;;  %v5606_v16 = vpack.c.bf16 %v6079_v10, %v6078_v11 }
 0x1fe   : > { %v6082_v30 = vpop.permute.xlu1 %6081  ;;  %v6097_v57 = vpop.permute.xlu0 %6096 }
 0x1ff   : > { %v6084_v37 = vunpack.i.h.bf16 %v6082_v30  ;;  %v6083_v40 = vunpack.i.l.bf16 %v6082_v30  ;;  %v6099_v0 = vunpack.i.h.bf16 %v6097_v57  ;;  %v6098_v1 = vunpack.i.l.bf16 %v6097_v57  ;;  %v387_v30 = vld [vmem:[#allocation5 + $0x8] sm:$0xff] }
 0x201   : > { %v5612_v45 = vpack.c.bf16 %v6084_v37, %v6083_v40  ;;  %v5624_v8 = vpack.c.bf16 %v6099_v0, %v6098_v1  ;;  %v386_v37 = vld [vmem:[#allocation5] sm:$0xff] }
 0x202   : > { %v6092_v47 = vpop.permute.xlu1 %6091  ;;  %v6107_v9 = vpop.permute.xlu0 %6106 }
 0x203   : > { %v6094_v50 = vunpack.i.h.bf16 %v6092_v47  ;;  %v6093_v52 = vunpack.i.l.bf16 %v6092_v47  ;;  %5613 = vmatprep.subr.bf16.mxu0 %v5612_v45  ;;  %v6109_v12 = vunpack.i.h.bf16 %v6107_v9  ;;  %v6108_v13 = vunpack.i.l.bf16 %v6107_v9  ;;  %v7375_v9 = vld [vmem:[#allocation5 + $0x18] sm:$0xff] }
 0x204   : > { %5593 = vmatpush3.bf16.xpose.msk.msra.mxu1 %vm7295_vm2, %v5588_v21  ;;  %5615 = vmatpush3.bf16.msra.mxu0 %v5612_v45 }
 0x205   : > { %5617 = vmatprep.subr.bf16.mxu0 %v5616_v55  ;;  %5596 = vmatprep.subr.msk.bf16.mxu1 %vm7295_vm2, %v5594_v42  ;;  %v5620_v3 = vpack.c.bf16 %v6094_v50, %v6093_v52  ;;  %v5632_v19 = vpack.c.bf16 %v6109_v12, %v6108_v13  ;;  %v7380_v12 = vld [vmem:[#allocation5 + $0x10] sm:$0xff] }
 0x206   : > { %v6102_v4 = vpop.permute.xlu1 %6101 }
 0x207   : > { %v6104_v6 = vunpack.i.h.bf16 %v6102_v4  ;;  %v6103_v7 = vunpack.i.l.bf16 %v6102_v4 }
 0x208   : > { %5619 = vmatpush3.bf16.msra.mxu0 %v5616_v55 }
 0x209   : > { %5621 = vmatprep.subr.bf16.mxu0 %v5620_v3  ;;  %v5628_v14 = vpack.c.bf16 %v6104_v6, %v6103_v7 }
 0x20a   : > { %v6112_v15 = vpop.permute.xlu1 %6111 }
 0x20b   : > { %v6114_v17 = vunpack.i.h.bf16 %v6112_v15  ;;  %v6113_v18 = vunpack.i.l.bf16 %v6112_v15 }
 0x20c   : > { %5599 = vmatpush3.bf16.xpose.msk.msra.mxu1 %vm7295_vm2, %v5594_v42  ;;  %5623 = vmatpush3.bf16.msra.mxu0 %v5620_v3 }
 0x20d   : > { %5625 = vmatprep.subr.bf16.mxu0 %v5624_v8  ;;  %5602 = vmatprep.subr.msk.bf16.mxu1 %vm7295_vm2, %v5600_v5  ;;  %v5636_v23 = vpack.c.bf16 %v6114_v17, %v6113_v18  ;;  %v7386_v17 = vld [vmem:[#allocation5 + $0x28] sm:$0xff] }
 0x20e   : > { %v6117_v20 = vpop.permute.xlu1 %6116 }
 0x20f   : > { %v6119_v21 = vunpack.i.h.bf16 %v6117_v20  ;;  %v6118_v22 = vunpack.i.l.bf16 %v6117_v20 }
 0x210   : > { %5627 = vmatpush3.bf16.msra.mxu0 %v5624_v8 }
 0x211   : > { %5629 = vmatprep.subr.bf16.mxu0 %v5628_v14  ;;  %v5640_v25 = vpack.c.bf16 %v6119_v21, %v6118_v22  ;;  %v392_v22 = vld [vmem:[#allocation5 + $0x30] sm:$0xff] }
 0x214   : > { %5605 = vmatpush3.bf16.xpose.msk.msra.mxu1 %vm7295_vm2, %v5600_v5  ;;  %5631 = vmatpush3.bf16.msra.mxu0 %v5628_v14 }
 0x215   : > { %5633 = vmatprep.subr.bf16.mxu0 %v5632_v19  ;;  %5608 = vmatprep.subr.msk.bf16.mxu1 %vm7295_vm2, %v5606_v16 }
 0x218   : > { %5635 = vmatpush3.bf16.msra.mxu0 %v5632_v19 }
 0x219   : > { %5637 = vmatprep.subr.bf16.mxu0 %v5636_v23 }
 0x21c   : > { %5611 = vmatpush3.bf16.xpose.msk.msra.mxu1 %vm7295_vm2, %v5606_v16  ;;  %5639 = vmatpush3.bf16.msra.mxu0 %v5636_v23  ;;  %v390_v16 = vld [vmem:[#allocation5 + $0x20] sm:$0xff]  ;;  %v7395_v23 = vld [vmem:[#allocation5 + $0x38] sm:$0xff] }
 0x21d   : > { %5641 = vmatprep.subr.bf16.mxu0 %v5640_v25 }
 0x220   : > { %5643 = vmatpush3.bf16.msra.mxu0 %v5640_v25 }
 0x223   : > { %5037 = vmatmul.mubr.msk.f32.vlgmr.msra.gmra.mrb[0].mxu1 %vm659_vm1, %v7203_v24 }
 0x224   : > { %5039 = vmatprep.mubr.msk.f32.mxu1 %vm659_vm1, %v7217_v31 }
 0x227   : > { %5040 = vmatmul.mubr.msk.f32.gmra.mrb[2].mxu1 %vm659_vm1, %v7213_v29 }
 0x228   : > { %5042 = vmatprep.mubr.msk.f32.mxu1 %vm659_vm1, %v7227_v36 }
 0x22b   : > { %5043 = vmatmul.mubr.msk.f32.gmra.mrb[4].mxu1 %vm659_vm1, %v7223_v34 }
 0x22c   : > { %5045 = vmatprep.mubr.msk.f32.mxu1 %vm659_vm1, %v7235_v41 }
 0x22f   : > { %5046 = vmatmul.mubr.msk.f32.gmra.mrb[6].mxu1 %vm659_vm1, %v7233_v39 }
 0x230   : > { %5048 = vmatprep.mubr.msk.f32.mxu1 %vm659_vm1, %v7245_v46 }
 0x233   : > { %5049 = vmatmul.mubr.msk.f32.gmra.mrb[8].mxu1 %vm659_vm1, %v7243_v44 }
 0x234   : > { %5051 = vmatprep.mubr.msk.f32.mxu1 %vm659_vm1, %v7255_v51 }
 0x237   : > { %5052 = vmatmul.mubr.msk.f32.gmra.mrb[10].mxu1 %vm659_vm1, %v7253_v49 }
 0x238   : > { %5054 = vmatprep.mubr.msk.f32.mxu1 %vm659_vm1, %v7265_v56 }
 0x23b   : > { %5055 = vmatmul.mubr.msk.f32.gmra.mrb[12].mxu1 %vm659_vm1, %v7263_v54 }
 0x23c   : > { %5057 = vmatprep.mubr.msk.f32.mxu1 %vm659_vm1, %v7275_v61 }
 0x23f   : > { %5058 = vmatmul.mubr.msk.f32.gmra.mrb[14].mxu1 %vm659_vm1, %v7273_v59 }
 0x2f6   : > { %v5038_v28 = vpop.f32.mrb[0].mxu1 }
 0x2f7   : > { %v870_v33 = vmul.f32 0.35355338, %v5038_v28  ;;  %v790_v35 = vpop.f32.mrb[1].mxu1 }
 0x2f8   : > { %v869_v40 = vmul.f32 0.35355338, %v790_v35  ;;  %v394_v35 = vld [vmem:[#allocation5 + $0x40] sm:$0xff] }
 0x2f9   : > { %v7361_v42 = vadd.f32 %v870_v33, %v387_v30 }
 0x2fa   : > { %v5041_v45 = vpop.f32.mrb[2].mxu1  ;;  %v7363_v47 = vadd.f32 %v869_v40, %v386_v37  ;;  %v7404_v37 = vld [vmem:[#allocation5 + $0x48] sm:$0xff] }
 0x2fb   : > { %903 = vmax.xlane.f32.xlu1 %v7361_v42  ;;  %v800_v50 = vpop.f32.mrb[3].mxu1  ;;  %v872_v8 = vmul.f32 0.35355338, %v5041_v45 }
 0x2fc   : > { %901 = vmax.xlane.f32.xlu0 %v7363_v47  ;;  %v871_v10 = vmul.f32 0.35355338, %v800_v50 }
 0x2fd   : > { %v7378_v11 = vadd.f32 %v872_v8, %v7375_v9 }
 0x2fe   : > { %v5044_v52 = vpop.f32.mrb[4].mxu1  ;;  %v7384_v15 = vadd.f32 %v871_v10, %v7380_v12 }
 0x2ff   : > { %v810_v55 = vpop.f32.mrb[5].mxu1  ;;  %v874_v14 = vmul.f32 0.35355338, %v5044_v52 }
 0x300   : > { %v873_v13 = vmul.f32 0.35355338, %v810_v55  ;;  %v396_v55 = vld [vmem:[#allocation5 + $0x50] sm:$0xff] }
 0x301   : > { %v7392_v21 = vadd.f32 %v874_v14, %v7386_v17 }
 0x302   : > { %v5047_v57 = vpop.f32.mrb[6].mxu1  ;;  %v7389_v19 = vadd.f32 %v873_v13, %v390_v16 }
 0x303   : > { %v820_v60 = vpop.f32.mrb[7].mxu1  ;;  %v876_v20 = vmul.f32 0.35355338, %v5047_v57  ;;  %v7413_v57 = vld [vmem:[#allocation5 + $0x58] sm:$0xff] }
 0x304   : > { %v875_v18 = vmul.f32 0.35355338, %v820_v60 }
 0x305   : > { %v7401_v33 = vadd.f32 %v876_v20, %v7395_v23 }
 0x306   : > { %v5050_v63 = vpop.f32.mrb[8].mxu1  ;;  %v7398_v28 = vadd.f32 %v875_v18, %v392_v22 }
 0x307   : > { %v830_v0 = vpop.f32.mrb[9].mxu1  ;;  %v878_v30 = vmul.f32 0.35355338, %v5050_v63 }
 0x308   : > { %v877_v25 = vmul.f32 0.35355338, %v830_v0 }
 0x309   : > { %v7410_v52 = vadd.f32 %v878_v30, %v7404_v37 }
 0x30a   : > { %v5053_v1 = vpop.f32.mrb[10].mxu1  ;;  %v7407_v45 = vadd.f32 %v877_v25, %v394_v35 }
 0x30b   : > { %v840_v3 = vpop.f32.mrb[11].mxu1  ;;  %v880_v50 = vmul.f32 0.35355338, %v5053_v1  ;;  %v7422_v1 = vld [vmem:[#allocation5 + $0x68] sm:$0xff] }
 0x30c   : > { %6126 = vrot.lane.b32.xlu1 %v7221_v32, %s6886_s17  ;;  %v879_v40 = vmul.f32 0.35355338, %v840_v3  ;;  %v398_v3 = vld [vmem:[#allocation5 + $0x60] sm:$0xff]  ;;  %8899 = vst [vmem:[#allocation18_spill] sm:$0xff] %v7422_v1 }
 0x30d   : > { %v7419_v8 = vadd.f32 %v880_v50, %v7413_v57 }
 0x30e   : > { %v5056_v4 = vpop.f32.mrb[12].mxu1  ;;  %v7416_v63 = vadd.f32 %v879_v40, %v396_v55 }
 0x30f   : > { %v850_v5 = vpop.f32.mrb[13].mxu1  ;;  %v882_v0 = vmul.f32 0.35355338, %v5056_v4  ;;  %v7431_v4 = vld [vmem:[#allocation5 + $0x78] sm:$0xff] }
 0x310   : > { %6131 = vrot.lane.b32.xlu1 %v7231_v38, %s6886_s17  ;;  %v881_v60 = vmul.f32 0.35355338, %v850_v5  ;;  %v400_v5 = vld [vmem:[#allocation5 + $0x70] sm:$0xff]  ;;  %8900 = vst [vmem:[#allocation19_spill] sm:$0xff] %v7431_v4 }
 0x311   : > { %v7428_v16 = vadd.f32 %v882_v0, %v7422_v1 }
 0x312   : > { %6121 = vrot.lane.b32.xlu0 %v7211_v27, %s6886_s17  ;;  %v5059_v6 = vpop.f32.mrb[14].mxu1  ;;  %v7425_v13 = vadd.f32 %v881_v60, %v398_v3 }
 0x313   : > { %v860_v7 = vpop.f32.mrb[15].mxu1  ;;  %v884_v14 = vmul.f32 0.35355338, %v5059_v6 }
 0x314   : > { %6136 = vrot.lane.b32.xlu1 %v7241_v43, %s6886_s17  ;;  %v883_v10 = vmul.f32 0.35355338, %v860_v7 }
 0x315   : > { %v7437_v20 = vadd.f32 %v884_v14, %v7431_v4 }
 0x316   : > { %v7434_v18 = vadd.f32 %v883_v10, %v400_v5 }
 0x331   : > { %907 = vmax.xlane.f32.xlu0 %v7378_v11 }
 0x335   : > { %905 = vmax.xlane.f32.xlu0 %v7384_v15 }
 0x338   : > { %909 = vmax.xlane.f32.xlu1 %v7389_v19 }
 0x339   : > { %911 = vmax.xlane.f32.xlu0 %v7392_v21 }
 0x33c   : > { %913 = vmax.xlane.f32.xlu1 %v7398_v28 }
 0x33d   : > { %915 = vmax.xlane.f32.xlu0 %v7401_v33 }
 0x340   : > { %917 = vmax.xlane.f32.xlu1 %v7407_v45 }
 0x341   : > { %919 = vmax.xlane.f32.xlu0 %v7410_v52 }
 0x344   : > { %921 = vmax.xlane.f32.xlu1 %v7416_v63 }
 0x345   : > { %923 = vmax.xlane.f32.xlu0 %v7419_v8 }
 0x348   : > { %925 = vmax.xlane.f32.xlu1 %v7425_v13 }
 0x349   : > { %927 = vmax.xlane.f32.xlu0 %v7428_v16 }
 0x34c   : > { %929 = vmax.xlane.f32.xlu1 %v7434_v18 }
 0x34d   : > { %931 = vmax.xlane.f32.xlu0 %v7437_v20 }
 0x35d   : > { %6146 = vrot.lane.b32.xlu1 %v7261_v53, %s6886_s17 }
 0x361   : > { %6151 = vrot.lane.b32.xlu1 %v7271_v58, %s6886_s17 }
 0x388   : > { %v904_v6 = vpop.xlane.xlu1 %903 }
 0x389   : > { %v934_v7 = vsub.f32 %v7361_v42, %v904_v6  ;;  %v902_v22 = vpop.xlane.xlu0 %901 }
 0x38a   : > { %v933_v25 = vsub.f32 %v7363_v47, %v902_v22 }
 0x38b   : > { %v951_v30 = vmul.f32 1.442695, %v934_v7 }
 0x38c   : > { %v949_v35 = vmul.f32 1.442695, %v933_v25  ;;  %v7460_v42 = vpop.permute.xlu1 %6126 }
 0x38d   : > { %6360 = vpow2.f32 %v951_v30  ;;  %v6122_v40 = vpop.permute.xlu0 %6121 }
 0x38e   : > { %6362 = vpow2.f32 %v949_v35  ;;  %v6124_v50 = vunpack.i.h.bf16 %v6122_v40  ;;  %v6123_v55 = vunpack.i.l.bf16 %v6122_v40 }
 0x390   : > { %v7447_v60 = vpack.c.bf16 %v6124_v50, %v6123_v55  ;;  %v7462_v47 = vpop.permute.xlu1 %6131 }
 0x392   : > { %5646 = vmatprep.subr.msk.bf16.mxu0 %vm7295_vm2, %v7447_v60 }
 0x394   : > { %v7465_v5 = vpop.permute.xlu1 %6136 }
 0x397   : > { %v7452_v0 = vpop.eup %6360 }
 0x398   : > { %v7454_v3 = vpop.eup %6362  ;;  %983 = vadd.xlane.f32.xlu0 %v7452_v0 }
 0x399   : > { %981 = vadd.xlane.f32.xlu1 %v7454_v3 }
 0x3ae   : > { %6141 = vrot.lane.b32.xlu0 %v7251_v48, %s6886_s17 }
 0x3be   : > { %v908_v10 = vpop.xlane.xlu0 %907 }
 0x3bf   : > { %v936_v14 = vsub.f32 %v7378_v11, %v908_v10 }
 0x3c1   : > { %v955_v6 = vmul.f32 1.442695, %v936_v14 }
 0x3c2   : > { %v906_v7 = vpop.xlane.xlu0 %905 }
 0x3c3   : > { %6364 = vpow2.f32 %v955_v6  ;;  %v935_v22 = vsub.f32 %v7384_v15, %v906_v7 }
 0x3c5   : > { %v953_v25 = vmul.f32 1.442695, %v935_v22  ;;  %v910_v30 = vpop.xlane.xlu1 %909 }
 0x3c6   : > { %v912_v35 = vpop.xlane.xlu0 %911  ;;  %v937_v40 = vsub.f32 %v7389_v19, %v910_v30 }
 0x3c7   : > { %6366 = vpow2.f32 %v953_v25  ;;  %v938_v50 = vsub.f32 %v7392_v21, %v912_v35 }
 0x3c8   : > { %v957_v1 = vmul.f32 1.442695, %v937_v40 }
 0x3c9   : > { %v959_v55 = vmul.f32 1.442695, %v938_v50  ;;  %v914_v10 = vpop.xlane.xlu1 %913 }
 0x3ca   : > { %v916_v4 = vpop.xlane.xlu0 %915  ;;  %v939_v15 = vsub.f32 %v7398_v28, %v914_v10 }
 0x3cb   : > { %6368 = vpow2.f32 %v959_v55  ;;  %v940_v11 = vsub.f32 %v7401_v33, %v916_v4 }
 0x3cc   : > { %6370 = vpow2.f32 %v957_v1  ;;  %v961_v21 = vmul.f32 1.442695, %v939_v15 }
 0x3cd   : > { %v7471_v14 = vpop.eup %6364  ;;  %v963_v6 = vmul.f32 1.442695, %v940_v11  ;;  %v918_v19 = vpop.xlane.xlu1 %917 }
 0x3ce   : > { %987 = vadd.xlane.f32.xlu1 %v7471_v14  ;;  %v920_v7 = vpop.xlane.xlu0 %919  ;;  %v941_v1 = vsub.f32 %v7407_v45, %v918_v19 }
 0x3cf   : > { %6372 = vpow2.f32 %v963_v6  ;;  %v942_v25 = vsub.f32 %v7410_v52, %v920_v7 }
 0x3d0   : > { %6374 = vpow2.f32 %v961_v21  ;;  %v965_v40 = vmul.f32 1.442695, %v941_v1 }
 0x3d1   : > { %v7475_v22 = vpop.eup %6366  ;;  %v967_v28 = vmul.f32 1.442695, %v942_v25  ;;  %v922_v30 = vpop.xlane.xlu1 %921 }
 0x3d2   : > { %985 = vadd.xlane.f32.xlu0 %v7475_v22  ;;  %v924_v4 = vpop.xlane.xlu0 %923  ;;  %v943_v50 = vsub.f32 %v7416_v63, %v922_v30 }
 0x3d3   : > { %6376 = vpow2.f32 %v967_v28 }
 0x3d4   : > { %6378 = vpow2.f32 %v965_v40  ;;  %v969_v10 = vmul.f32 1.442695, %v943_v50 }
 0x3d5   : > { %v7479_v33 = vpop.eup %6368  ;;  %v926_v11 = vpop.xlane.xlu1 %925 }
 0x3d6   : > { %991 = vadd.xlane.f32.xlu0 %v7479_v33  ;;  %v7483_v35 = vpop.eup %6370  ;;  %v928_v55 = vpop.xlane.xlu0 %927  ;;  %6380 = vpow2.f32 %v969_v10  ;;  %v945_v63 = vsub.f32 %v7425_v13, %v926_v11  ;;  %v944_v13 = vsub.f32 %v7419_v8, %v924_v4 }
 0x3d7   : > { %v946_v45 = vsub.f32 %v7428_v16, %v928_v55 }
 0x3d8   : > { %v973_v21 = vmul.f32 1.442695, %v945_v63  ;;  %v971_v50 = vmul.f32 1.442695, %v944_v13 }
 0x3d9   : > { %v7487_v52 = vpop.eup %6372  ;;  %v975_v6 = vmul.f32 1.442695, %v946_v45  ;;  %v930_v7 = vpop.xlane.xlu1 %929 }
 0x3da   : > { %989 = vadd.xlane.f32.xlu0 %v7483_v35  ;;  %v7493_v15 = vpop.eup %6374  ;;  %v947_v16 = vsub.f32 %v7434_v18, %v930_v7  ;;  %v932_v40 = vpop.xlane.xlu0 %931 }
 0x3db   : > { %6382 = vpow2.f32 %v975_v6  ;;  %v948_v18 = vsub.f32 %v7437_v20, %v932_v40 }
 0x3dc   : > { %6384 = vpow2.f32 %v973_v21  ;;  %v977_v1 = vmul.f32 1.442695, %v947_v16  ;;  %v6129_v16 = vunpack.i.h.bf16 %v7460_v42 }
 0x3dd   : > { %v7497_v19 = vpop.eup %6376  ;;  %v979_v11 = vmul.f32 1.442695, %v948_v18  ;;  %v7532_v20 = vpop.permute.xlu1 %6146 }
 0x3de   : > { %995 = vadd.xlane.f32.xlu0 %v7487_v52  ;;  %v7501_v25 = vpop.eup %6378  ;;  %6386 = vpow2.f32 %v977_v1  ;;  %v6128_v1 = vunpack.i.l.bf16 %v7460_v42  ;;  %v6139_v42 = vunpack.i.h.bf16 %v7465_v5 }
 0x3df   : > { %6156 = vrot.lane.b32.xlu1 %v7281_v62, %s6886_s17  ;;  %6388 = vpow2.f32 %v971_v50 }
 0x3e0   : > { %v7504_v28 = vpop.eup %6380  ;;  %6390 = vpow2.f32 %v979_v11  ;;  %v5650_v50 = vpack.c.bf16 %v6129_v16, %v6128_v1 }
 0x3e1   : > { %v7542_v45 = vpop.permute.xlu1 %6151 }
 0x3e2   : > { %993 = vadd.xlane.f32.xlu0 %v7493_v15  ;;  %v6153_v1 = vunpack.i.l.bf16 %v7542_v45 }
 0x3e5   : > { %v7508_v30 = vpop.eup %6382 }
 0x3e6   : > { %999 = vadd.xlane.f32.xlu0 %v7497_v19  ;;  %v7512_v55 = vpop.eup %6384 }
 0x3e8   : > { %v7515_v10 = vpop.eup %6386 }
 0x3e9   : > { %v7518_v8 = vpop.eup %6388 }
 0x3ea   : > { %997 = vadd.xlane.f32.xlu0 %v7501_v25  ;;  %v7521_v4 = vpop.eup %6390 }
 0x3ee   : > { %1001 = vadd.xlane.f32.xlu0 %v7504_v28 }
 0x3f2   : > { %1007 = vadd.xlane.f32.xlu0 %v7508_v30 }
 0x3f6   : > { %1005 = vadd.xlane.f32.xlu0 %v7512_v55 }
 0x3fa   : > { %1009 = vadd.xlane.f32.xlu0 %v7515_v10 }
 0x403   : > { %1003 = vadd.xlane.f32.xlu1 %v7518_v8 }
 0x407   : > { %1011 = vadd.xlane.f32.xlu1 %v7521_v4 }
 0x410   : > { %1238 = vrot.lane.b32.xlu0 %v7205_v26, %s6887_s18 }
 0x414   : > { %1250 = vrot.lane.b32.xlu0 %v7235_v41, %s6887_s18 }
 0x418   : > { %1240 = vrot.lane.b32.xlu1 %v7203_v24, %s6887_s18  ;;  %1254 = vrot.lane.b32.xlu0 %v7245_v46, %s6887_s18 }
 0x41c   : > { %1242 = vrot.lane.b32.xlu1 %v7217_v31, %s6887_s18  ;;  %1258 = vrot.lane.b32.xlu0 %v7255_v51, %s6887_s18 }
 0x420   : > { %1244 = vrot.lane.b32.xlu1 %v7213_v29, %s6887_s18  ;;  %1262 = vrot.lane.b32.xlu0 %v7265_v56, %s6887_s18 }
 0x424   : > { %1246 = vrot.lane.b32.xlu1 %v7227_v36, %s6887_s18  ;;  %1266 = vrot.lane.b32.xlu0 %v7275_v61, %s6887_s18 }
 0x425   : > { %v984_v63 = vpop.xlane.xlu0 %983 }
 0x426   : > { %6392 = vrcp.f32 %v984_v63  ;;  %v982_v6 = vpop.xlane.xlu1 %981 }
 0x427   : > { %6394 = vrcp.f32 %v982_v6 }
 0x428   : > { %1248 = vrot.lane.b32.xlu1 %v7223_v34, %s6887_s18  ;;  %6161 = vrot.lane.b32.xlu0 %v7211_v27, %s6888_s16 }
 0x429   : > { %v6142_v11 = vpop.permute.xlu0 %6141 }
 0x42a   : > { %v6143_v63 = vunpack.i.l.bf16 %v6142_v11 }
 0x42c   : > { %1252 = vrot.lane.b32.xlu1 %v7233_v39, %s6887_s18  ;;  %6171 = vrot.lane.b32.xlu0 %v7231_v38, %s6888_s16 }
 0x430   : > { %v6393_v7 = vpop.eup %6392  ;;  %1256 = vrot.lane.b32.xlu1 %v7243_v44, %s6887_s18  ;;  %6181 = vrot.lane.b32.xlu0 %v7251_v48, %s6888_s16 }
 0x431   : > { %v6395_v21 = vpop.eup %6394  ;;  %v1016_v40 = vmul.f32 %v6393_v7, %v7452_v0  ;;  %v6133_v0 = vunpack.i.l.bf16 %v7462_v47  ;;  %v6149_v7 = vunpack.i.h.bf16 %v7532_v20 }
 0x432   : > { %v1014_v13 = vmul.f32 %v6395_v21, %v7454_v3  ;;  %v6134_v3 = vunpack.i.h.bf16 %v7462_v47  ;;  %v6138_v47 = vunpack.i.l.bf16 %v7465_v5  ;;  %v6144_v5 = vunpack.i.h.bf16 %v6142_v11 }
 0x433   : > { %v6148_v21 = vunpack.i.l.bf16 %v7532_v20  ;;  %v6154_v20 = vunpack.i.h.bf16 %v7542_v45 }
 0x434   : > { %1260 = vrot.lane.b32.xlu1 %v7253_v49, %s6887_s18  ;;  %6191 = vrot.lane.b32.xlu0 %v7271_v58, %s6888_s16  ;;  %v5662_v18 = vpack.c.bf16 %v6139_v42, %v6138_v47  ;;  %v5668_v6 = vpack.c.bf16 %v6144_v5, %v6143_v63 }
 0x435   : > { %5092 = vmatprep.mubr.f32.mxu0 %v1014_v13  ;;  %v5674_v16 = vpack.c.bf16 %v6149_v7, %v6148_v21 }
 0x436   : > { %5093 = vmatmul.mubr.f32.vlgmr.msra.gmra.mrb[16].mxu0 %v1016_v40  ;;  %v5680_v40 = vpack.c.bf16 %v6154_v20, %v6153_v1 }
 0x437   : > { %5649 = vmatpush3.bf16.xpose.msk.msra.mxu0 %vm7295_vm2, %v7447_v60  ;;  %v5656_v60 = vpack.c.bf16 %v6134_v3, %v6133_v0 }
 0x438   : > { %5652 = vmatprep.subr.msk.bf16.mxu0 %vm7295_vm2, %v5650_v50  ;;  %1264 = vrot.lane.b32.xlu1 %v7263_v54, %s6887_s18 }
 0x439   : > { %2266 = vrot.lane.b32.xlu0 %v7205_v26, %s6889_s24 }
 0x43c   : > { %1268 = vrot.lane.b32.xlu1 %v7273_v59, %s6887_s18 }
 0x43d   : > { %2270 = vrot.lane.b32.xlu0 %v7217_v31, %s6889_s24 }
 0x43f   : > { %5655 = vmatpush3.bf16.xpose.msk.msra.mxu0 %vm7295_vm2, %v5650_v50 }
 0x440   : > { %5658 = vmatprep.subr.msk.bf16.mxu0 %vm7295_vm2, %v5656_v60  ;;  %6166 = vrot.lane.b32.xlu1 %v7221_v32, %s6888_s16 }
 0x441   : > { %2274 = vrot.lane.b32.xlu0 %v7227_v36, %s6889_s24 }
 0x444   : > { %6176 = vrot.lane.b32.xlu1 %v7241_v43, %s6888_s16 }
 0x445   : > { %2278 = vrot.lane.b32.xlu0 %v7235_v41, %s6889_s24 }
 0x447   : > { %5661 = vmatpush3.bf16.xpose.msk.msra.mxu0 %vm7295_vm2, %v5656_v60 }
 0x448   : > { %5664 = vmatprep.subr.msk.bf16.mxu0 %vm7295_vm2, %v5662_v18  ;;  %6186 = vrot.lane.b32.xlu1 %v7261_v53, %s6888_s16 }
 0x449   : > { %2282 = vrot.lane.b32.xlu0 %v7245_v46, %s6889_s24 }
 0x44c   : > { %6196 = vrot.lane.b32.xlu1 %v7281_v62, %s6888_s16  ;;  %s8726_s16 = scalar_lea.vmem [#allocation10], %s4404_s10  ;;  %s4627_s10 = sshll.u32 %s6964_s9, 11 }
 0x44d   : > { %2286 = vrot.lane.b32.xlu0 %v7255_v51, %s6889_s24  ;;  %s4279_s9 = scalar_lea.sflag [#allocation4], %s7148_s12 }
 0x44f   : > { %5667 = vmatpush3.bf16.xpose.msk.msra.mxu0 %vm7295_vm2, %v5662_v18 }
 0x450   : > { %5670 = vmatprep.subr.msk.bf16.mxu0 %vm7295_vm2, %v5668_v6  ;;  %2268 = vrot.lane.b32.xlu1 %v7203_v24, %s6889_s24 }
 0x451   : > { %2290 = vrot.lane.b32.xlu0 %v7265_v56, %s6889_s24 }
 0x454   : > { %2272 = vrot.lane.b32.xlu1 %v7213_v29, %s6889_s24 }
 0x455   : > { %2294 = vrot.lane.b32.xlu0 %v7275_v61, %s6889_s24 }
 0x457   : > { %5673 = vmatpush3.bf16.xpose.msk.msra.mxu0 %vm7295_vm2, %v5668_v6 }
 0x458   : > { %5676 = vmatprep.subr.msk.bf16.mxu0 %vm7295_vm2, %v5674_v16  ;;  %2276 = vrot.lane.b32.xlu1 %v7223_v34, %s6889_s24 }
 0x459   : > { %6201 = vrot.lane.b32.xlu0 %v7211_v27, %s6890_s25 }
 0x45b   : > { %v988_v13 = vpop.xlane.xlu1 %987 }
 0x45c   : > { %2280 = vrot.lane.b32.xlu1 %v7233_v39, %s6889_s24  ;;  %6396 = vrcp.f32 %v988_v13 }
 0x45d   : > { %6211 = vrot.lane.b32.xlu0 %v7231_v38, %s6890_s25 }
 0x45f   : > { %5679 = vmatpush3.bf16.xpose.msk.msra.mxu0 %vm7295_vm2, %v5674_v16  ;;  %v986_v50 = vpop.xlane.xlu0 %985  ;;  %v6157_v3 = vpop.permute.xlu1 %6156 }
 0x460   : > { %5682 = vmatprep.subr.msk.bf16.mxu0 %vm7295_vm2, %v5680_v40  ;;  %6398 = vrcp.f32 %v986_v50  ;;  %2284 = vrot.lane.b32.xlu1 %v7243_v44, %s6889_s24  ;;  %v6159_v45 = vunpack.i.h.bf16 %v6157_v3  ;;  %v6158_v0 = vunpack.i.l.bf16 %v6157_v3 }
 0x462   : > { %v5686_v42 = vpack.c.bf16 %v6159_v45, %v6158_v0 }
 0x463   : > { %v992_v60 = vpop.xlane.xlu0 %991 }
 0x464   : > { %2288 = vrot.lane.b32.xlu1 %v7253_v49, %s6889_s24  ;;  %6400 = vrcp.f32 %v992_v60 }
 0x466   : > { %v6397_v18 = vpop.eup %6396 }
 0x467   : > { %5685 = vmatpush3.bf16.xpose.msk.msra.mxu0 %vm7295_vm2, %v5680_v40  ;;  %v990_v47 = vpop.xlane.xlu0 %989  ;;  %v1020_v6 = vmul.f32 %v6397_v18, %v7471_v14 }
 0x468   : > { %5688 = vmatprep.subr.msk.bf16.mxu0 %vm7295_vm2, %v5686_v42  ;;  %6402 = vrcp.f32 %v990_v47  ;;  %2292 = vrot.lane.b32.xlu1 %v7263_v54, %s6889_s24 }
 0x46a   : > { %v6399_v11 = vpop.eup %6398 }
 0x46b   : > { %v996_v5 = vpop.xlane.xlu0 %995  ;;  %v1018_v63 = vmul.f32 %v6399_v11, %v7475_v22 }
 0x46c   : > { %2296 = vrot.lane.b32.xlu1 %v7273_v59, %s6889_s24  ;;  %6404 = vrcp.f32 %v996_v5  ;;  %s4292_s24 = sshll.u32 %s8726_s16, 4  ;;  %s8805_s24 = int_to_ptr.vmem [resolvable:$true] %s4292_s24 }
 0x46d   : > { %5095 = vmatprep.mubr.f32.mxu0 %v1018_v63 }
 0x46e   : > { %5096 = vmatmul.mubr.f32.gmra.mrb[18].mxu0 %v1020_v6  ;;  %v6401_v21 = vpop.eup %6400 }
 0x46f   : > { %5691 = vmatpush3.bf16.xpose.msk.msra.mxu0 %vm7295_vm2, %v5686_v42  ;;  %v994_v7 = vpop.xlane.xlu0 %993  ;;  %v1024_v14 = vmul.f32 %v6401_v21, %v7479_v33 }
 0x470   : > { %6406 = vrcp.f32 %v994_v7  ;;  %6206 = vrot.lane.b32.xlu1 %v7221_v32, %s6890_s25 }
 0x472   : > { %v6403_v16 = vpop.eup %6402 }
 0x473   : > { %v1000_v20 = vpop.xlane.xlu0 %999  ;;  %v1022_v22 = vmul.f32 %v6403_v16, %v7483_v35 }
 0x474   : > { %6216 = vrot.lane.b32.xlu1 %v7241_v43, %s6890_s25  ;;  %6408 = vrcp.f32 %v1000_v20 }
 0x475   : > { %5098 = vmatprep.mubr.f32.mxu0 %v1022_v22 }
 0x476   : > { %5099 = vmatmul.mubr.f32.gmra.mrb[20].mxu0 %v1024_v14  ;;  %v6405_v13 = vpop.eup %6404 }
 0x477   : > { %v998_v1 = vpop.xlane.xlu0 %997  ;;  %v1028_v45 = vmul.f32 %v6405_v13, %v7487_v52 }
 0x478   : > { %6410 = vrcp.f32 %v998_v1 }
 0x47a   : > { %v6407_v40 = vpop.eup %6406 }
 0x47b   : > { %v1002_v50 = vpop.xlane.xlu0 %1001  ;;  %v1026_v3 = vmul.f32 %v6407_v40, %v7493_v15 }
 0x47c   : > { %6412 = vrcp.f32 %v1002_v50 }
 0x47d   : > { %5101 = vmatprep.mubr.f32.mxu0 %v1026_v3 }
 0x47e   : > { %5102 = vmatmul.mubr.f32.gmra.mrb[22].mxu0 %v1028_v45  ;;  %v6409_v0 = vpop.eup %6408 }
 0x47f   : > { %v1008_v35 = vpop.xlane.xlu0 %1007  ;;  %v1032_v47 = vmul.f32 %v6409_v0, %v7497_v19 }
 0x482   : > { %v6411_v60 = vpop.eup %6410 }
 0x483   : > { %v1006_v42 = vpop.xlane.xlu0 %1005  ;;  %v1030_v33 = vmul.f32 %v6411_v60, %v7501_v25 }
 0x484   : > { %6414 = vrcp.f32 %v1006_v42 }
 0x485   : > { %5104 = vmatprep.mubr.f32.mxu0 %v1030_v33 }
 0x486   : > { %v6413_v18 = vpop.eup %6412  ;;  %5105 = vmatmul.mubr.f32.gmra.mrb[24].mxu0 %v1032_v47 }
 0x487   : > { %v1010_v11 = vpop.xlane.xlu0 %1009  ;;  %v1034_v5 = vmul.f32 %v6413_v18, %v7504_v28 }
 0x489   : > { %5107 = vmatprep.mubr.f32.mxu0 %v1034_v5 }
 0x48b   : > { %v1239_v15 = vpop.permute.xlu0 %1238 }
 0x48e   : > { %v6415_v19 = vpop.eup %6414 }
 0x48f   : > { %v1251_v63 = vpop.permute.xlu0 %1250  ;;  %v1038_v1 = vmul.f32 %v6415_v19, %v7512_v55 }
 0x490   : > { %v1004_v52 = vpop.xlane.xlu1 %1003 }
 0x491   : > { %6416 = vrcp.f32 %v1004_v52 }
 0x492   : > { %6418 = vrcp.f32 %v1008_v35 }
 0x493   : > { %v1255_v6 = vpop.permute.xlu0 %1254  ;;  %6420 = vrcp.f32 %v1010_v11 }
 0x494   : > { %v1012_v7 = vpop.xlane.xlu1 %1011 }
 0x495   : > { %6422 = vrcp.f32 %v1012_v7 }
 0x497   : > { %v1259_v25 = vpop.permute.xlu0 %1258 }
 0x498   : > { %v1241_v21 = vpop.permute.xlu1 %1240 }
 0x49b   : > { %v6417_v16 = vpop.eup %6416  ;;  %v1263_v20 = vpop.permute.xlu0 %1262 }
 0x49c   : > { %v1243_v22 = vpop.permute.xlu1 %1242  ;;  %v1036_v14 = vmul.f32 %v6417_v16, %v7518_v8  ;;  %v6419_v28 = vpop.eup %6418 }
 0x49d   : > { %v6421_v13 = vpop.eup %6420  ;;  %v1040_v3 = vmul.f32 %v6419_v28, %v7508_v30 }
 0x49e   : > { %5108 = vmatmul.mubr.f32.gmra.mrb[26].mxu0 %v1036_v14  ;;  %v1042_v35 = vmul.f32 %v6421_v13, %v7515_v10 }
 0x49f   : > { %v1267_v40 = vpop.permute.xlu0 %1266  ;;  %5110 = vmatprep.mubr.f32.mxu0 %v1038_v1  ;;  %v6423_v45 = vpop.eup %6422 }
 0x4a0   : > { %v1245_v50 = vpop.permute.xlu1 %1244  ;;  %v1044_v8 = vmul.f32 %v6423_v45, %v7521_v4 }
 0x4a2   : > { %5111 = vmatmul.mubr.f32.gmra.mrb[28].mxu0 %v1040_v3 }
 0x4a3   : > { %v6162_v0 = vpop.permute.xlu0 %6161  ;;  %5113 = vmatprep.mubr.f32.mxu0 %v1042_v35 }
 0x4a4   : > { %v6164_v60 = vunpack.i.h.bf16 %v6162_v0  ;;  %v6163_v42 = vunpack.i.l.bf16 %v6162_v0  ;;  %v1247_v33 = vpop.permute.xlu1 %1246 }
 0x4a6   : > { %v5724_v47 = vpack.c.bf16 %v6164_v60, %v6163_v42  ;;  %5114 = vmatmul.mubr.f32.gmra.mrb[30].mxu0 %v1044_v8 }
 0x4a7   : > { %v6172_v55 = vpop.permute.xlu0 %6171  ;;  %5148 = vmatprep.mubr.msk.f32.mxu0 %vm659_vm1, %v1239_v15 }
 0x4a8   : > { %v1249_v18 = vpop.permute.xlu1 %1248  ;;  %5726 = vmatprep.subr.msk.bf16.mxu0 %vm7295_vm2, %v5724_v47  ;;  %v6174_v28 = vunpack.i.h.bf16 %v6172_v55  ;;  %v6173_v1 = vunpack.i.l.bf16 %v6172_v55 }
 0x4aa   : > { %5149 = vmatmul.mubr.msk.f32.vlgmr.msra.gmra.mrb[32].mxu0 %vm659_vm1, %v1241_v21 }
 0x4ab   : > { %5729 = vmatpush3.bf16.xpose.msk.msra.mxu0 %vm7295_vm2, %v5724_v47  ;;  %v6182_v30 = vpop.permute.xlu0 %6181  ;;  %5151 = vmatprep.mubr.msk.f32.mxu0 %vm659_vm1, %v1243_v22 }
 0x4ac   : > { %v1253_v10 = vpop.permute.xlu1 %1252  ;;  %v6184_v8 = vunpack.i.h.bf16 %v6182_v30  ;;  %v6183_v47 = vunpack.i.l.bf16 %v6182_v30 }
 0x4ae   : > { %5152 = vmatmul.mubr.msk.f32.gmra.mrb[34].mxu0 %vm659_vm1, %v1245_v50  ;;  %v5736_v50 = vpack.c.bf16 %v6174_v28, %v6173_v1 }
 0x4af   : > { %v7681_v4 = vpop.permute.xlu0 %6191  ;;  %5154 = vmatprep.mubr.msk.f32.mxu0 %vm659_vm1, %v1247_v33 }
 0x4b0   : > { %v1257_v11 = vpop.permute.xlu1 %1256  ;;  %v6194_v28 = vunpack.i.h.bf16 %v7681_v4  ;;  %v6193_v1 = vunpack.i.l.bf16 %v7681_v4 }
 0x4b2   : > { %5155 = vmatmul.mubr.msk.f32.gmra.mrb[36].mxu0 %vm659_vm1, %v1249_v18 }
 0x4b3   : > { %v2267_v5 = vpop.permute.xlu0 %2266  ;;  %5157 = vmatprep.mubr.msk.f32.mxu0 %vm659_vm1, %v1251_v63 }
 0x4b4   : > { %v1261_v15 = vpop.permute.xlu1 %1260 }
 0x4b6   : > { %5158 = vmatmul.mubr.msk.f32.gmra.mrb[38].mxu0 %vm659_vm1, %v1253_v10 }
 0x4b7   : > { %v7687_v52 = vpop.permute.xlu0 %2270  ;;  %5160 = vmatprep.mubr.msk.f32.mxu0 %vm659_vm1, %v1255_v6 }
 0x4b8   : > { %v1265_v7 = vpop.permute.xlu1 %1264 }
 0x4ba   : > { %5161 = vmatmul.mubr.msk.f32.gmra.mrb[40].mxu0 %vm659_vm1, %v1257_v11 }
 0x4bb   : > { %v7691_v21 = vpop.permute.xlu0 %2274  ;;  %5163 = vmatprep.mubr.msk.f32.mxu0 %vm659_vm1, %v1259_v25 }
 0x4bc   : > { %v1269_v19 = vpop.permute.xlu1 %1268 }
 0x4be   : > { %5164 = vmatmul.mubr.msk.f32.gmra.mrb[42].mxu0 %vm659_vm1, %v1261_v15 }
 0x4bf   : > { %v7695_v16 = vpop.permute.xlu0 %2278  ;;  %5166 = vmatprep.mubr.msk.f32.mxu0 %vm659_vm1, %v1263_v20 }
 0x4c0   : > { %v6167_v63 = vpop.permute.xlu1 %6166 }
 0x4c1   : > { %v6169_v22 = vunpack.i.h.bf16 %v6167_v63  ;;  %v6168_v14 = vunpack.i.l.bf16 %v6167_v63 }
 0x4c2   : > { %5167 = vmatmul.mubr.msk.f32.gmra.mrb[44].mxu0 %vm659_vm1, %v1265_v7 }
 0x4c3   : > { %v5730_v6 = vpack.c.bf16 %v6169_v22, %v6168_v14  ;;  %v7699_v13 = vpop.permute.xlu0 %2282  ;;  %5169 = vmatprep.mubr.msk.f32.mxu0 %vm659_vm1, %v1267_v40 }
 0x4c4   : > { %v6177_v25 = vpop.permute.xlu1 %6176 }
 0x4c5   : > { %5732 = vmatprep.subr.msk.bf16.mxu0 %vm7295_vm2, %v5730_v6  ;;  %v6179_v45 = vunpack.i.h.bf16 %v6177_v25  ;;  %v6178_v40 = vunpack.i.l.bf16 %v6177_v25  ;;  %v5760_v25 = vpack.c.bf16 %v6194_v28, %v6193_v1 }
 0x4c6   : > { %5170 = vmatmul.mubr.msk.f32.gmra.mrb[46].mxu0 %vm659_vm1, %v1269_v19 }
 0x4c7   : > { %5735 = vmatpush3.bf16.xpose.msk.msra.mxu0 %vm7295_vm2, %v5730_v6  ;;  %v7707_v20 = vpop.permute.xlu0 %2286  ;;  %5312 = vmatprep.mubr.msk.f32.mxu0 %vm659_vm1, %v2267_v5  ;;  %v5742_v60 = vpack.c.bf16 %v6179_v45, %v6178_v40  ;;  %v5748_v5 = vpack.c.bf16 %v6184_v8, %v6183_v47 }
 0x4c8   : > { %5738 = vmatprep.subr.msk.bf16.mxu0 %vm7295_vm2, %v5736_v50  ;;  %v6187_v3 = vpop.permute.xlu1 %6186 }
 0x4c9   : > { %v6189_v19 = vunpack.i.h.bf16 %v6187_v3  ;;  %v6188_v63 = vunpack.i.l.bf16 %v6187_v3 }
 0x4cb   : > { %v7712_v35 = vpop.permute.xlu0 %2290  ;;  %v5754_v14 = vpack.c.bf16 %v6189_v19, %v6188_v63 }
 0x4cc   : > { %v6197_v0 = vpop.permute.xlu1 %6196 }
 0x4cd   : > { %v6199_v3 = vunpack.i.h.bf16 %v6197_v0  ;;  %v6198_v45 = vunpack.i.l.bf16 %v6197_v0 }
 0x4cf   : > { %5741 = vmatpush3.bf16.xpose.msk.msra.mxu0 %vm7295_vm2, %v5736_v50  ;;  %v7716_v42 = vpop.permute.xlu0 %2294 }
 0x4d0   : > { %5744 = vmatprep.subr.msk.bf16.mxu0 %vm7295_vm2, %v5742_v60  ;;  %v2269_v33 = vpop.permute.xlu1 %2268 }
 0x4d3   : > { %v6202_v55 = vpop.permute.xlu0 %6201 }
 0x4d4   : > { %v6204_v18 = vunpack.i.h.bf16 %v6202_v55  ;;  %v6203_v10 = vunpack.i.l.bf16 %v6202_v55  ;;  %v2273_v11 = vpop.permute.xlu1 %2272 }
 0x4d6   : > { %v5692_v15 = vpack.c.bf16 %v6204_v18, %v6203_v10 }
 0x4d7   : > { %5747 = vmatpush3.bf16.xpose.msk.msra.mxu0 %vm7295_vm2, %v5742_v60  ;;  %v5766_v60 = vpack.c.bf16 %v6199_v3, %v6198_v45  ;;  %v6212_v8 = vpop.permute.xlu0 %6211 }
 0x4d8   : > { %5750 = vmatprep.subr.msk.bf16.mxu0 %vm7295_vm2, %v5748_v5  ;;  %5693 = vmatprep.subr.bf16.mxu1 %v5692_v15  ;;  %v2277_v7 = vpop.permute.xlu1 %2276  ;;  %v6214_v47 = vunpack.i.h.bf16 %v6212_v8  ;;  %v6213_v55 = vunpack.i.l.bf16 %v6212_v8 }
 0x4d9   : > { %5695 = vmatpush3.bf16.msra.mxu1 %v5692_v15 }
 0x4da   : > { %v5700_v0 = vpack.c.bf16 %v6214_v47, %v6213_v55 }
 0x4dc   : > { %v2281_v22 = vpop.permute.xlu1 %2280 }
 0x4df   : > { %5753 = vmatpush3.bf16.xpose.msk.msra.mxu0 %vm7295_vm2, %v5748_v5 }
 0x4e0   : > { %5756 = vmatprep.subr.msk.bf16.mxu0 %vm7295_vm2, %v5754_v14  ;;  %v2285_v30 = vpop.permute.xlu1 %2284 }
 0x4e4   : > { %v2289_v6 = vpop.permute.xlu1 %2288 }
 0x4e7   : > { %5759 = vmatpush3.bf16.xpose.msk.msra.mxu0 %vm7295_vm2, %v5754_v14 }
 0x4e8   : > { %5762 = vmatprep.subr.msk.bf16.mxu0 %vm7295_vm2, %v5760_v25  ;;  %v2293_v50 = vpop.permute.xlu1 %2292 }
 0x4ec   : > { %v2297_v40 = vpop.permute.xlu1 %2296 }
 0x4ef   : > { %5765 = vmatpush3.bf16.xpose.msk.msra.mxu0 %vm7295_vm2, %v5760_v25 }
 0x4f0   : > { %5768 = vmatprep.subr.msk.bf16.mxu0 %vm7295_vm2, %v5766_v60  ;;  %v6207_v4 = vpop.permute.xlu1 %6206 }
 0x4f1   : > { %v6209_v18 = vunpack.i.h.bf16 %v6207_v4  ;;  %v6208_v10 = vunpack.i.l.bf16 %v6207_v4  ;;  %v7799_v4 = vld [vmem:[#allocation5] sm:$0xff] }
 0x4f2   : > { %8917 = vst [vmem:[#allocation36_spill] sm:$0xff] %v7799_v4 }
 0x4f3   : > { %v5696_v5 = vpack.c.bf16 %v6209_v18, %v6208_v10 }
 0x4f4   : > { %v6217_v15 = vpop.permute.xlu1 %6216 }
 0x4f5   : > { %v6219_v19 = vunpack.i.h.bf16 %v6217_v15  ;;  %v6218_v63 = vunpack.i.l.bf16 %v6217_v15  ;;  %5697 = vmatprep.subr.bf16.mxu1 %v5696_v5 }
 0x4f6   : > { %5699 = vmatpush3.bf16.msra.mxu1 %v5696_v5 }
 0x4f7   : > { %5771 = vmatpush3.bf16.xpose.msk.msra.mxu0 %vm7295_vm2, %v5766_v60  ;;  %5701 = vmatprep.subr.bf16.mxu1 %v5700_v0  ;;  %v5704_v14 = vpack.c.bf16 %v6219_v19, %v6218_v63  ;;  %v7794_v60 = vld [vmem:[#allocation5 + $0x8] sm:$0xff] }
 0x4fa   : > { %5703 = vmatpush3.bf16.msra.mxu1 %v5700_v0 }
 0x4fb   : > { %5705 = vmatprep.subr.bf16.mxu1 %v5704_v14 }
 0x4fe   : > { %5313 = vmatmul.mubr.msk.f32.vlgmr.msra.gmra.mrb[48].mxu0 %vm659_vm1, %v2269_v33  ;;  %5707 = vmatpush3.bf16.msra.mxu1 %v5704_v14 }
 0x4ff   : > { %5315 = vmatprep.mubr.msk.f32.mxu0 %vm659_vm1, %v7687_v52 }
 0x502   : > { %5316 = vmatmul.mubr.msk.f32.gmra.mrb[50].mxu0 %vm659_vm1, %v2273_v11 }
 0x503   : > { %5318 = vmatprep.mubr.msk.f32.mxu0 %vm659_vm1, %v7691_v21 }
 0x506   : > { %5319 = vmatmul.mubr.msk.f32.gmra.mrb[52].mxu0 %vm659_vm1, %v2277_v7 }
 0x507   : > { %5321 = vmatprep.mubr.msk.f32.mxu0 %vm659_vm1, %v7695_v16 }
 0x509   : > { %v7749_v28 = vpop.f32.mrb[16].mxu0 }
 0x50a   : > { %8901 = vst [vmem:[#allocation20_spill] sm:$0xff] %v7749_v28  ;;  %v7751_v1 = vpop.f32.mrb[17].mxu0  ;;  %5322 = vmatmul.mubr.msk.f32.gmra.mrb[54].mxu0 %vm659_vm1, %v2281_v22 }
 0x50b   : > { %8902 = vst [vmem:[#allocation21_spill] sm:$0xff] %v7751_v1  ;;  %5324 = vmatprep.mubr.msk.f32.mxu0 %vm659_vm1, %v7699_v13 }
 0x50e   : > { %5325 = vmatmul.mubr.msk.f32.gmra.mrb[56].mxu0 %vm659_vm1, %v2285_v30 }
 0x50f   : > { %5327 = vmatprep.mubr.msk.f32.mxu0 %vm659_vm1, %v7707_v20 }
 0x512   : > { %5328 = vmatmul.mubr.msk.f32.gmra.mrb[58].mxu0 %vm659_vm1, %v2289_v6 }
 0x513   : > { %5330 = vmatprep.mubr.msk.f32.mxu0 %vm659_vm1, %v7712_v35 }
 0x516   : > { %5331 = vmatmul.mubr.msk.f32.gmra.mrb[60].mxu0 %vm659_vm1, %v2293_v50 }
 0x517   : > { %5333 = vmatprep.mubr.msk.f32.mxu0 %vm659_vm1, %v7716_v42 }
 0x51a   : > { %5334 = vmatmul.mubr.msk.f32.gmra.mrb[62].mxu0 %vm659_vm1, %v2297_v40 }
 0x541   : > { %v7766_v52 = vpop.f32.mrb[18].mxu0 }
 0x542   : > { %8903 = vst [vmem:[#allocation22_spill] sm:$0xff] %v7766_v52  ;;  %v7768_v21 = vpop.f32.mrb[19].mxu0 }
 0x543   : > { %8904 = vst [vmem:[#allocation23_spill] sm:$0xff] %v7768_v21 }
 0x549   : > { %v7770_v16 = vpop.f32.mrb[20].mxu0 }
 0x54a   : > { %8905 = vst [vmem:[#allocation24_spill] sm:$0xff] %v7770_v16  ;;  %v7772_v13 = vpop.f32.mrb[21].mxu0 }
 0x54b   : > { %8906 = vst [vmem:[#allocation25_spill] sm:$0xff] %v7772_v13 }
 0x551   : > { %v7774_v20 = vpop.f32.mrb[22].mxu0 }
 0x552   : > { %8907 = vst [vmem:[#allocation26_spill] sm:$0xff] %v7774_v20  ;;  %v7776_v33 = vpop.f32.mrb[23].mxu0 }
 0x553   : > { %8908 = vst [vmem:[#allocation27_spill] sm:$0xff] %v7776_v33 }
 0x559   : > { %v7778_v35 = vpop.f32.mrb[24].mxu0 }
 0x55a   : > { %8909 = vst [vmem:[#allocation28_spill] sm:$0xff] %v7778_v35  ;;  %v7780_v11 = vpop.f32.mrb[25].mxu0  ;;  %v8924_v35 = vld [vmem:[#allocation19_spill] sm:$0xff] }
 0x55b   : > { %8910 = vst [vmem:[#allocation29_spill] sm:$0xff] %v7780_v11  ;;  %v7867_v11 = vld [vmem:[#allocation5 + $0x70] sm:$0xff] }
 0x55c   : > { %8925 = vst [vmem:[#allocation19_spill] sm:$0xff] %v7867_v11 }
 0x571   : > { %v7782_v7 = vpop.f32.mrb[26].mxu0 }
 0x572   : > { %8911 = vst [vmem:[#allocation30_spill] sm:$0xff] %v7782_v7  ;;  %v7784_v42 = vpop.f32.mrb[27].mxu0  ;;  %v7857_v7 = vld [vmem:[#allocation5 + $0x60] sm:$0xff] }
 0x573   : > { %8912 = vst [vmem:[#allocation31_spill] sm:$0xff] %v7784_v42 }
 0x575   : > { %v7786_v22 = vpop.f32.mrb[28].mxu0 }
 0x576   : > { %8913 = vst [vmem:[#allocation32_spill] sm:$0xff] %v7786_v22  ;;  %v7788_v30 = vpop.f32.mrb[29].mxu0 }
 0x577   : > { %8914 = vst [vmem:[#allocation33_spill] sm:$0xff] %v7788_v30  ;;  %v8922_v30 = vld [vmem:[#allocation18_spill] sm:$0xff] }
 0x578   : > { %8923 = vst [vmem:[#allocation18_spill] sm:$0xff] %v7857_v7 }
 0x579   : > { %v7790_v6 = vpop.f32.mrb[30].mxu0 }
 0x57a   : > { %8915 = vst [vmem:[#allocation34_spill] sm:$0xff] %v7790_v6  ;;  %v7792_v25 = vpop.f32.mrb[31].mxu0 }
 0x57b   : > { %8916 = vst [vmem:[#allocation35_spill] sm:$0xff] %v7792_v25  ;;  %v7847_v25 = vld [vmem:[#allocation5 + $0x50] sm:$0xff] }
 0x57c   : > { %8921 = vst [vmem:[#allocation40_spill] sm:$0xff] %v7847_v25 }
 0x57d   : > { %v5150_v50 = vpop.f32.mrb[32].mxu0 }
 0x57e   : > { %v1512_v3 = vmul.f32 0.35355338, %v5150_v50  ;;  %v1432_v45 = vpop.f32.mrb[33].mxu0 }
 0x57f   : > { %v1511_v40 = vmul.f32 0.35355338, %v1432_v45  ;;  %v7817_v45 = vld [vmem:[#allocation5 + $0x20] sm:$0xff] }
 0x580   : > { %v7797_v8 = vadd.f32 %v7794_v60, %v1512_v3  ;;  %8918 = vst [vmem:[#allocation37_spill] sm:$0xff] %v7817_v45 }
 0x581   : > { %v7802_v47 = vadd.f32 %v7799_v4, %v1511_v40  ;;  %v5153_v55 = vpop.f32.mrb[34].mxu0 }
 0x582   : > { %v1514_v18 = vmul.f32 0.35355338, %v5153_v55  ;;  %1545 = vmax.xlane.f32.xlu1 %v7797_v8  ;;  %v1442_v10 = vpop.f32.mrb[35].mxu0 }
 0x583   : > { %v1513_v5 = vmul.f32 0.35355338, %v1442_v10  ;;  %1543 = vmax.xlane.f32.xlu0 %v7802_v47 }
 0x584   : > { %v7807_v15 = vadd.f32 %v1514_v18, %v7375_v9 }
 0x585   : > { %v7810_v19 = vadd.f32 %v1513_v5, %v7380_v12  ;;  %v5156_v63 = vpop.f32.mrb[36].mxu0  ;;  %v7827_v5 = vld [vmem:[#allocation5 + $0x30] sm:$0xff] }
 0x586   : > { %v1516_v0 = vmul.f32 0.35355338, %v5156_v63  ;;  %1549 = vmax.xlane.f32.xlu1 %v7807_v15  ;;  %v1452_v14 = vpop.f32.mrb[37].mxu0  ;;  %8919 = vst [vmem:[#allocation38_spill] sm:$0xff] %v7827_v5 }
 0x587   : > { %v1515_v50 = vmul.f32 0.35355338, %v1452_v14  ;;  %1547 = vmax.xlane.f32.xlu0 %v7810_v19 }
 0x588   : > { %v7815_v3 = vadd.f32 %v1516_v0, %v7386_v17 }
 0x589   : > { %v7820_v40 = vadd.f32 %v7817_v45, %v1515_v50  ;;  %v5159_v9 = vpop.f32.mrb[38].mxu0 }
 0x58a   : > { %v1518_v55 = vmul.f32 0.35355338, %v5159_v9  ;;  %1553 = vmax.xlane.f32.xlu1 %v7815_v3  ;;  %v1462_v12 = vpop.f32.mrb[39].mxu0 }
 0x58b   : > { %v1517_v18 = vmul.f32 0.35355338, %v1462_v12  ;;  %1551 = vmax.xlane.f32.xlu0 %v7820_v40  ;;  %v7837_v12 = vld [vmem:[#allocation5 + $0x40] sm:$0xff] }
 0x58c   : > { %v7825_v10 = vadd.f32 %v1518_v55, %v7395_v23  ;;  %8920 = vst [vmem:[#allocation39_spill] sm:$0xff] %v7837_v12 }
 0x58d   : > { %v7830_v17 = vadd.f32 %v7827_v5, %v1517_v18  ;;  %v5162_v63 = vpop.f32.mrb[40].mxu0 }
 0x58e   : > { %v1520_v0 = vmul.f32 0.35355338, %v5162_v63  ;;  %1557 = vmax.xlane.f32.xlu1 %v7825_v10  ;;  %v1472_v14 = vpop.f32.mrb[41].mxu0 }
 0x58f   : > { %v1519_v50 = vmul.f32 0.35355338, %v1472_v14  ;;  %1555 = vmax.xlane.f32.xlu0 %v7830_v17 }
 0x590   : > { %v7835_v9 = vadd.f32 %v1520_v0, %v7404_v37 }
 0x591   : > { %v7840_v23 = vadd.f32 %v7837_v12, %v1519_v50  ;;  %v5165_v55 = vpop.f32.mrb[42].mxu0 }
 0x592   : > { %v1522_v6 = vmul.f32 0.35355338, %v5165_v55  ;;  %1561 = vmax.xlane.f32.xlu1 %v7835_v9  ;;  %v1482_v18 = vpop.f32.mrb[43].mxu0 }
 0x593   : > { %v1521_v63 = vmul.f32 0.35355338, %v1482_v18  ;;  %1559 = vmax.xlane.f32.xlu0 %v7840_v23 }
 0x594   : > { %v7845_v14 = vadd.f32 %v1522_v6, %v7413_v57 }
 0x595   : > { %v7850_v37 = vadd.f32 %v7847_v25, %v1521_v63  ;;  %v5168_v0 = vpop.f32.mrb[44].mxu0 }
 0x596   : > { %v1524_v22 = vmul.f32 0.35355338, %v5168_v0  ;;  %1565 = vmax.xlane.f32.xlu1 %v7845_v14  ;;  %v1492_v50 = vpop.f32.mrb[45].mxu0 }
 0x597   : > { %v1523_v55 = vmul.f32 0.35355338, %v1492_v50  ;;  %1563 = vmax.xlane.f32.xlu0 %v7850_v37 }
 0x598   : > { %v7855_v18 = vadd.f32 %v1524_v22, %v8922_v30 }
 0x599   : > { %v7860_v57 = vadd.f32 %v7857_v7, %v1523_v55  ;;  %v5171_v6 = vpop.f32.mrb[46].mxu0 }
 0x59a   : > { %v1526_v42 = vmul.f32 0.35355338, %v5171_v6  ;;  %1569 = vmax.xlane.f32.xlu1 %v7855_v18  ;;  %v1502_v63 = vpop.f32.mrb[47].mxu0 }
 0x59b   : > { %v1525_v0 = vmul.f32 0.35355338, %v1502_v63  ;;  %1567 = vmax.xlane.f32.xlu0 %v7860_v57 }
 0x59c   : > { %v7865_v50 = vadd.f32 %v1526_v42, %v8924_v35 }
 0x59d   : > { %v7870_v22 = vadd.f32 %v7867_v11, %v1525_v0 }
 0x59e   : > { %1573 = vmax.xlane.f32.xlu1 %v7865_v50 }
 0x59f   : > { %1571 = vmax.xlane.f32.xlu0 %v7870_v22 }
 0x5af   : > { %6226 = vrot.lane.b32.xlu1 %v7261_v53, %s6890_s25 }
 0x5b5   : > { %6221 = vrot.lane.b32.xlu0 %v7251_v48, %s6890_s25 }
 0x5d1   : > { %v7878_v30 = vpop.f32.mrb[48].mxu0 }
 0x5d2   : > { %v7880_v55 = vpop.f32.mrb[49].mxu0 }
 0x5d5   : > { %v7882_v35 = vpop.f32.mrb[50].mxu0 }
 0x5d6   : > { %8926 = vst [vmem:[#allocation41_spill] sm:$0xff] %v7882_v35  ;;  %v7884_v42 = vpop.f32.mrb[51].mxu0 }
 0x5d7   : > { %8927 = vst [vmem:[#allocation42_spill] sm:$0xff] %v7884_v42 }
 0x5d9   : > { %v7886_v6 = vpop.f32.mrb[52].mxu0 }
 0x5da   : > { %8928 = vst [vmem:[#allocation43_spill] sm:$0xff] %v7886_v6  ;;  %v7888_v63 = vpop.f32.mrb[53].mxu0 }
 0x5dd   : > { %v7890_v0 = vpop.f32.mrb[54].mxu0 }
 0x5de   : > { %8929 = vst [vmem:[#allocation44_spill] sm:$0xff] %v7890_v0  ;;  %v7892_v20 = vpop.f32.mrb[55].mxu0 }
 0x5df   : > { %8930 = vst [vmem:[#allocation45_spill] sm:$0xff] %v7892_v20 }
 0x5e1   : > { %v7894_v33 = vpop.f32.mrb[56].mxu0 }
 0x5e2   : > { %8931 = vst [vmem:[#allocation46_spill] sm:$0xff] %v7894_v33  ;;  %v7896_v16 = vpop.f32.mrb[57].mxu0 }
 0x5e3   : > { %8932 = vst [vmem:[#allocation47_spill] sm:$0xff] %v7896_v16 }
 0x5e5   : > { %v7898_v13 = vpop.f32.mrb[58].mxu0 }
 0x5e6   : > { %8933 = vst [vmem:[#allocation48_spill] sm:$0xff] %v7898_v13  ;;  %v7900_v52 = vpop.f32.mrb[59].mxu0 }
 0x5e7   : > { %8934 = vst [vmem:[#allocation49_spill] sm:$0xff] %v7900_v52 }
 0x5e9   : > { %v7902_v21 = vpop.f32.mrb[60].mxu0 }
 0x5ea   : > { %8935 = vst [vmem:[#allocation50_spill] sm:$0xff] %v7902_v21  ;;  %v7904_v28 = vpop.f32.mrb[61].mxu0 }
 0x5eb   : > { %8936 = vst [vmem:[#allocation51_spill] sm:$0xff] %v7904_v28 }
 0x5ed   : > { %v7906_v1 = vpop.f32.mrb[62].mxu0 }
 0x5ee   : > { %8937 = vst [vmem:[#allocation52_spill] sm:$0xff] %v7906_v1  ;;  %v7908_v2 = vpop.f32.mrb[63].mxu0 }
 0x5ef   : > { %8938 = vst [vmem:[#allocation53_spill] sm:$0xff] %v7908_v2 }
 0x60f   : > { %v1546_v11 = vpop.xlane.xlu1 %1545 }
 0x610   : > { %v1576_v7 = vsub.f32 %v7797_v8, %v1546_v11  ;;  %v1544_v0 = vpop.xlane.xlu0 %1543 }
 0x611   : > { %v1575_v33 = vsub.f32 %v7802_v47, %v1544_v0 }
 0x612   : > { %v1593_v25 = vmul.f32 1.442695, %v1576_v7 }
 0x613   : > { %v1591_v6 = vmul.f32 1.442695, %v1575_v33  ;;  %v1550_v12 = vpop.xlane.xlu1 %1549 }
 0x614   : > { %6424 = vpow2.f32 %v1593_v25  ;;  %v1578_v13 = vsub.f32 %v7807_v15, %v1550_v12  ;;  %v1548_v52 = vpop.xlane.xlu0 %1547 }
 0x615   : > { %6426 = vpow2.f32 %v1591_v6  ;;  %v1577_v21 = vsub.f32 %v7810_v19, %v1548_v52 }
 0x616   : > { %v1597_v28 = vmul.f32 1.442695, %v1578_v13 }
 0x617   : > { %v1554_v1 = vpop.xlane.xlu1 %1553  ;;  %v1595_v2 = vmul.f32 1.442695, %v1577_v21 }
 0x618   : > { %6428 = vpow2.f32 %v1597_v28  ;;  %v1580_v35 = vsub.f32 %v7815_v3, %v1554_v1  ;;  %v1552_v11 = vpop.xlane.xlu0 %1551 }
 0x619   : > { %v1579_v8 = vsub.f32 %v7820_v40, %v1552_v11  ;;  %6430 = vpow2.f32 %v1595_v2 }
 0x61a   : > { %v1601_v33 = vmul.f32 1.442695, %v1580_v35 }
 0x61b   : > { %v1599_v47 = vmul.f32 1.442695, %v1579_v8  ;;  %v1558_v7 = vpop.xlane.xlu1 %1557 }
 0x61c   : > { %v1556_v25 = vpop.xlane.xlu0 %1555  ;;  %v1582_v45 = vsub.f32 %v7825_v10, %v1558_v7 }
 0x61d   : > { %6432 = vpow2.f32 %v1599_v47 }
 0x61e   : > { %v7916_v15 = vpop.eup %6424  ;;  %6434 = vpow2.f32 %v1601_v33 }
 0x61f   : > { %v7918_v12 = vpop.eup %6426  ;;  %v1562_v52 = vpop.xlane.xlu1 %1561  ;;  %1625 = vadd.xlane.f32.xlu1 %v7916_v15 }
 0x620   : > { %v1560_v28 = vpop.xlane.xlu0 %1559  ;;  %1623 = vadd.xlane.f32.xlu0 %v7918_v12 }
 0x621   : > { %v1583_v20 = vsub.f32 %v7840_v23, %v1560_v28 }
 0x622   : > { %v7922_v1 = vpop.eup %6428 }
 0x623   : > { %v1566_v21 = vpop.xlane.xlu1 %1565  ;;  %1629 = vadd.xlane.f32.xlu1 %v7922_v1  ;;  %v7925_v13 = vpop.eup %6430 }
 0x624   : > { %v1564_v2 = vpop.xlane.xlu0 %1563 }
 0x627   : > { %v7927_v19 = vpop.eup %6432  ;;  %v1570_v3 = vpop.xlane.xlu1 %1569  ;;  %1627 = vadd.xlane.f32.xlu1 %v7925_v13 }
 0x628   : > { %v1568_v40 = vpop.xlane.xlu0 %1567  ;;  %1631 = vadd.xlane.f32.xlu0 %v7927_v19  ;;  %v7931_v35 = vpop.eup %6434 }
 0x629   : > { %8939 = vst [vmem:[#allocation54_spill] sm:$0xff] %v7931_v35  ;;  %v1587_v7 = vsub.f32 %v7860_v57, %v1568_v40 }
 0x62b   : > { %1633 = vadd.xlane.f32.xlu1 %v7931_v35  ;;  %v1574_v6 = vpop.xlane.xlu1 %1573  ;;  %v1607_v35 = vmul.f32 1.442695, %v1583_v20  ;;  %v1585_v20 = vsub.f32 %v7850_v37, %v1564_v2  ;;  %v1615_v37 = vmul.f32 1.442695, %v1587_v7  ;;  %v8947_v7 = vld [vmem:[#allocation41_spill] sm:$0xff] }
 0x62c   : > { %v1572_v0 = vpop.xlane.xlu0 %1571 }
 0x62d   : > { %6436 = vpow2.f32 %v1607_v35  ;;  %v1589_v23 = vsub.f32 %v7870_v22, %v1572_v0 }
 0x62f   : > { %v6227_v11 = vpop.permute.xlu1 %6226 }
 0x630   : > { %v6222_v8 = vpop.permute.xlu0 %6221  ;;  %v6229_v47 = vunpack.i.h.bf16 %v6227_v11  ;;  %v6228_v33 = vunpack.i.l.bf16 %v6227_v11  ;;  %v1586_v11 = vsub.f32 %v7845_v14, %v1566_v21 }
 0x631   : > { %v6224_v16 = vunpack.i.h.bf16 %v6222_v8  ;;  %v6223_v5 = vunpack.i.l.bf16 %v6222_v8  ;;  %v1605_v8 = vmul.f32 1.442695, %v1582_v45  ;;  %v1590_v45 = vsub.f32 %v7865_v50, %v1574_v6 }
 0x632   : > { %v5712_v4 = vpack.c.bf16 %v6229_v47, %v6228_v33  ;;  %v1584_v47 = vsub.f32 %v7835_v9, %v1562_v52 }
 0x633   : > { %v5708_v42 = vpack.c.bf16 %v6224_v16, %v6223_v5  ;;  %v1581_v16 = vsub.f32 %v7830_v17, %v1556_v25  ;;  %v1613_v5 = vmul.f32 1.442695, %v1586_v11  ;;  %6438 = vpow2.f32 %v1605_v8 }
 0x634   : > { %v1609_v10 = vmul.f32 1.442695, %v1584_v47  ;;  %v1619_v17 = vmul.f32 1.442695, %v1589_v23  ;;  %v1621_v9 = vmul.f32 1.442695, %v1590_v45 }
 0x635   : > { %5709 = vmatprep.subr.bf16.mxu1 %v5708_v42  ;;  %6440 = vpow2.f32 %v1613_v5  ;;  %v2540_v8 = vmul.f32 0.35355338, %v7878_v30  ;;  %v2543_v47 = vmul.f32 0.35355338, %v7888_v63  ;;  %v8941_v30 = vld [vmem:[#allocation37_spill] sm:$0xff] }
 0x636   : > { %5711 = vmatpush3.bf16.msra.mxu1 %v5708_v42  ;;  %v1603_v42 = vmul.f32 1.442695, %v1581_v16 }
 0x637   : > { %5713 = vmatprep.subr.bf16.mxu1 %v5712_v4  ;;  %v7947_v14 = vpop.eup %6436  ;;  %v8016_v23 = vadd.f32 %v8941_v30, %v2543_v47 }
 0x638   : > { %6442 = vpow2.f32 %v1603_v42  ;;  %v8009_v42 = vadd.f32 %v7794_v60, %v2540_v8  ;;  %v8944_v60 = vld [vmem:[#allocation42_spill] sm:$0xff] }
 0x639   : > { %v2541_v45 = vmul.f32 0.35355338, %v8944_v60 }
 0x63a   : > { %5715 = vmatpush3.bf16.msra.mxu1 %v5712_v4  ;;  %v1588_v4 = vsub.f32 %v7855_v18, %v1570_v3  ;;  %v1611_v18 = vmul.f32 1.442695, %v1585_v20 }
 0x63c   : > { %6236 = vrot.lane.b32.xlu1 %v7281_v62, %s6890_s25  ;;  %v1617_v33 = vmul.f32 1.442695, %v1588_v4 }
 0x63d   : > { %v7951_v25 = vpop.eup %6438 }
 0x63e   : > { %6231 = vrot.lane.b32.xlu0 %v7271_v58, %s6890_s25  ;;  %6444 = vpow2.f32 %v1617_v33 }
 0x63f   : > { %6446 = vpow2.f32 %v1609_v10  ;;  %v7953_v22 = vpop.eup %6440 }
 0x640   : > { %6448 = vpow2.f32 %v1619_v17  ;;  %v8946_v17 = vld [vmem:[#allocation47_spill] sm:$0xff] }
 0x641   : > { %6450 = vpow2.f32 %v1611_v18  ;;  %v2547_v18 = vmul.f32 0.35355338, %v8946_v17 }
 0x642   : > { %6452 = vpow2.f32 %v1621_v9  ;;  %v7957_v50 = vpop.eup %6442  ;;  %v2542_v9 = vmul.f32 0.35355338, %v8947_v7 }
 0x643   : > { %6454 = vpow2.f32 %v1615_v37  ;;  %v8030_v37 = vld [vmem:[#allocation5 + $0x10] sm:$0xff] }
 0x648   : > { %v7959_v52 = vpop.eup %6444 }
 0x649   : > { %v7963_v57 = vpop.eup %6446 }
 0x64a   : > { %v7965_v28 = vpop.eup %6448 }
 0x64b   : > { %v7969_v21 = vpop.eup %6450 }
 0x64c   : > { %v7971_v2 = vpop.eup %6452 }
 0x64d   : > { %v7975_v3 = vpop.eup %6454 }
 0x65d   : > { %1639 = vadd.xlane.f32.xlu0 %v7947_v14 }
 0x660   : > { %1637 = vadd.xlane.f32.xlu1 %v7951_v25 }
 0x661   : > { %1645 = vadd.xlane.f32.xlu0 %v7953_v22 }
 0x664   : > { %1635 = vadd.xlane.f32.xlu1 %v7957_v50 }
 0x665   : > { %1649 = vadd.xlane.f32.xlu0 %v7959_v52 }
 0x668   : > { %1641 = vadd.xlane.f32.xlu1 %v7963_v57 }
 0x669   : > { %1651 = vadd.xlane.f32.xlu0 %v7965_v28 }
 0x66c   : > { %1643 = vadd.xlane.f32.xlu1 %v7969_v21 }
 0x66d   : > { %1653 = vadd.xlane.f32.xlu0 %v7971_v2 }
 0x670   : > { %1647 = vadd.xlane.f32.xlu1 %v7975_v3 }
 0x681   : > { %6246 = vrot.lane.b32.xlu1 %v7221_v32, %s6891_s20 }
 0x683   : > { %6241 = vrot.lane.b32.xlu0 %v7211_v27, %s6891_s20 }
 0x685   : > { %6266 = vrot.lane.b32.xlu1 %v7261_v53, %s6891_s20 }
 0x687   : > { %6251 = vrot.lane.b32.xlu0 %v7231_v38, %s6891_s20 }
 0x689   : > { %6276 = vrot.lane.b32.xlu1 %v7281_v62, %s6891_s20 }
 0x68b   : > { %6256 = vrot.lane.b32.xlu0 %v7241_v43, %s6891_s20 }
 0x68d   : > { %3119 = vrot.lane.b32.xlu1 %v7203_v24, %s6892_s14 }
 0x68f   : > { %6261 = vrot.lane.b32.xlu0 %v7251_v48, %s6891_s20 }
 0x691   : > { %3123 = vrot.lane.b32.xlu1 %v7213_v29, %s6892_s14 }
 0x693   : > { %6271 = vrot.lane.b32.xlu0 %v7271_v58, %s6891_s20 }
 0x695   : > { %3127 = vrot.lane.b32.xlu1 %v7223_v34, %s6892_s14 }
 0x697   : > { %3117 = vrot.lane.b32.xlu0 %v7205_v26, %s6892_s14 }
 0x699   : > { %3131 = vrot.lane.b32.xlu1 %v7233_v39, %s6892_s14 }
 0x69b   : > { %3121 = vrot.lane.b32.xlu0 %v7217_v31, %s6892_s14 }
 0x69d   : > { %3135 = vrot.lane.b32.xlu1 %v7243_v44, %s6892_s14 }
 0x69f   : > { %3125 = vrot.lane.b32.xlu0 %v7227_v36, %s6892_s14 }
 0x6a1   : > { %3139 = vrot.lane.b32.xlu1 %v7253_v49, %s6892_s14 }
 0x6a3   : > { %3129 = vrot.lane.b32.xlu0 %v7235_v41, %s6892_s14 }
 0x6a5   : > { %3143 = vrot.lane.b32.xlu1 %v7263_v54, %s6892_s14 }
 0x6a7   : > { %3133 = vrot.lane.b32.xlu0 %v7245_v46, %s6892_s14 }
 0x6a9   : > { %3147 = vrot.lane.b32.xlu1 %v7273_v59, %s6892_s14 }
 0x6ab   : > { %3137 = vrot.lane.b32.xlu0 %v7255_v51, %s6892_s14 }
 0x6ac   : > { %v1626_v24 = vpop.xlane.xlu1 %1625 }
 0x6ad   : > { %v1624_v26 = vpop.xlane.xlu0 %1623 }
 0x6ae   : > { %6456 = vrcp.f32 %v1624_v26  ;;  %v8948_v26 = vld [vmem:[#allocation39_spill] sm:$0xff] }
 0x6af   : > { %3141 = vrot.lane.b32.xlu0 %v7265_v56, %s6892_s14  ;;  %6458 = vrcp.f32 %v1626_v24  ;;  %v8033_v24 = vadd.f32 %v8030_v37, %v2541_v45 }
 0x6b0   : > { %v1630_v29 = vpop.xlane.xlu1 %1629 }
 0x6b3   : > { %3145 = vrot.lane.b32.xlu0 %v7275_v61, %s6892_s14  ;;  %s8803_s14 = scalar_lea.hbm %s8862_s8, %s4627_s10 }
 0x6b4   : > { %v1628_v31 = vpop.xlane.xlu1 %1627 }
 0x6b5   : > { %v1632_v34 = vpop.xlane.xlu0 %1631  ;;  %6460 = vrcp.f32 %v1628_v31  ;;  %v8949_v31 = vld [vmem:[#allocation49_spill] sm:$0xff] }
 0x6b6   : > { %6462 = vrcp.f32 %v1630_v29  ;;  %v8038_v29 = vadd.f32 %v8948_v26, %v2547_v18  ;;  %v8960_v18 = vld [vmem:[#allocation52_spill] sm:$0xff] }
 0x6b7   : > { %6464 = vrcp.f32 %v1632_v34  ;;  %v2549_v34 = vmul.f32 0.35355338, %v8949_v31  ;;  %v2554_v7 = vmul.f32 0.35355338, %v8960_v18  ;;  %v8098_v31 = vld [vmem:[#allocation5 + $0x78] sm:$0xff] }
 0x6b8   : > { %v6457_v36 = vpop.eup %6456  ;;  %v1634_v39 = vpop.xlane.xlu1 %1633 }
 0x6b9   : > { %v6232_v41 = vpop.permute.xlu0 %6231  ;;  %v1656_v44 = vmul.f32 %v6457_v36, %v7918_v12  ;;  %6466 = vrcp.f32 %v1634_v39  ;;  %v6459_v40 = vpop.eup %6458  ;;  %v8041_v36 = vld [vmem:[#allocation5 + $0x18] sm:$0xff] }
 0x6ba   : > { %v6234_v46 = vunpack.i.h.bf16 %v6232_v41  ;;  %v6233_v49 = vunpack.i.l.bf16 %v6232_v41  ;;  %v1658_v6 = vmul.f32 %v6459_v40, %v7916_v15  ;;  %v2539_v15 = vmul.f32 0.35355338, %v7880_v55  ;;  %v8945_v55 = vld [vmem:[#allocation38_spill] sm:$0xff]  ;;  %v8950_v41 = vld [vmem:[#allocation43_spill] sm:$0xff] }
 0x6bb   : > { %5204 = vmatprep.mubr.f32.mxu1 %v1656_v44  ;;  %v8044_v39 = vadd.f32 %v8041_v36, %v2542_v9  ;;  %v2544_v44 = vmul.f32 0.35355338, %v8950_v41 }
 0x6bc   : > { %v6237_v51 = vpop.permute.xlu1 %6236  ;;  %v5716_v54 = vpack.c.bf16 %v6234_v46, %v6233_v49  ;;  %v8951_v46 = vld [vmem:[#allocation40_spill] sm:$0xff] }
 0x6bd   : > { %v6239_v56 = vunpack.i.h.bf16 %v6237_v51  ;;  %v6238_v59 = vunpack.i.l.bf16 %v6237_v51  ;;  %v8050_v49 = vadd.f32 %v8951_v46, %v2549_v34  ;;  %v8952_v51 = vld [vmem:[#allocation51_spill] sm:$0xff]  ;;  %v8101_v34 = vadd.f32 %v8098_v31, %v2554_v7 }
 0x6be   : > { %5717 = vmatprep.subr.bf16.mxu1 %v5716_v54 }
 0x6bf   : > { %5719 = vmatpush3.bf16.msra.mxu1 %v5716_v54  ;;  %v5720_v61 = vpack.c.bf16 %v6239_v56, %v6238_v59  ;;  %v6461_v35 = vpop.eup %6460  ;;  %v2551_v54 = vmul.f32 0.35355338, %v8952_v51  ;;  %v8053_v56 = vld [vmem:[#allocation5 + $0x28] sm:$0xff] }
 0x6c0   : > { %v6463_v12 = vpop.eup %6462  ;;  %v1660_v0 = vmul.f32 %v6461_v35, %v7925_v13  ;;  %v8940_v13 = vld [vmem:[#allocation54_spill] sm:$0xff]  ;;  %v8056_v59 = vadd.f32 %v8053_v56, %v2544_v44 }
 0x6c1   : > { %5721 = vmatprep.subr.bf16.mxu1 %v5720_v61  ;;  %v6465_v11 = vpop.eup %6464  ;;  %v1662_v16 = vmul.f32 %v6463_v12, %v7922_v1  ;;  %v8942_v1 = vld [vmem:[#allocation45_spill] sm:$0xff]  ;;  %v8954_v35 = vld [vmem:[#allocation18_spill] sm:$0xff] }
 0x6c2   : > { %v1664_v4 = vmul.f32 %v6465_v11, %v7927_v19  ;;  %v2545_v10 = vmul.f32 0.35355338, %v8942_v1  ;;  %v8943_v19 = vld [vmem:[#allocation36_spill] sm:$0xff]  ;;  %v8955_v12 = vld [vmem:[#allocation53_spill] sm:$0xff] }
 0x6c3   : > { %5723 = vmatpush3.bf16.msra.mxu1 %v5720_v61  ;;  %v6467_v5 = vpop.eup %6466  ;;  %v8020_v20 = vadd.f32 %v8943_v19, %v2539_v15  ;;  %v8953_v61 = vld [vmem:[#allocation44_spill] sm:$0xff]  ;;  %v8076_v15 = vld [vmem:[#allocation5 + $0x48] sm:$0xff] }
 0x6c4   : > { %v1666_v33 = vmul.f32 %v6467_v5, %v8940_v13  ;;  %v8026_v63 = vadd.f32 %v8945_v55, %v2545_v10  ;;  %v2546_v40 = vmul.f32 0.35355338, %v8953_v61  ;;  %v8065_v11 = vld [vmem:[#allocation5 + $0x38] sm:$0xff]  ;;  %v8959_v19 = vld [vmem:[#allocation50_spill] sm:$0xff] }
 0x6c5   : > { %v8084_v1 = vld [vmem:[#allocation5 + $0x58] sm:$0xff]  ;;  %v2552_v60 = vmul.f32 0.35355338, %v8959_v19  ;;  %v8091_v55 = vld [vmem:[#allocation5 + $0x68] sm:$0xff] }
 0x6c6   : > { %5205 = vmatmul.mubr.f32.vlgmr.msra.gmra.mrb[16].mxu1 %v1658_v6  ;;  %v8062_v6 = vadd.f32 %v8954_v35, %v2551_v54  ;;  %v8068_v8 = vadd.f32 %v8065_v11, %v2546_v40 }
 0x6c7   : > { %5207 = vmatprep.mubr.f32.mxu1 %v1660_v0  ;;  %v2553_v0 = vmul.f32 0.35355338, %v8955_v12  ;;  %v8094_v17 = vadd.f32 %v8091_v55, %v2552_v60 }
 0x6ca   : > { %5208 = vmatmul.mubr.f32.gmra.mrb[18].mxu1 %v1662_v16  ;;  %v8956_v16 = vld [vmem:[#allocation46_spill] sm:$0xff] }
 0x6cb   : > { %5210 = vmatprep.mubr.f32.mxu1 %v1664_v4  ;;  %v2548_v5 = vmul.f32 0.35355338, %v8956_v16  ;;  %v8957_v4 = vld [vmem:[#allocation19_spill] sm:$0xff] }
 0x6cc   : > { %v8074_v47 = vadd.f32 %v8957_v4, %v2553_v0 }
 0x6cd   : > { %2573 = vmax.xlane.f32.xlu1 %v8009_v42  ;;  %v8079_v13 = vadd.f32 %v8076_v15, %v2548_v5 }
 0x6ce   : > { %5211 = vmatmul.mubr.f32.gmra.mrb[20].mxu1 %v1666_v33  ;;  %v8958_v33 = vld [vmem:[#allocation48_spill] sm:$0xff] }
 0x6cf   : > { %v2550_v30 = vmul.f32 0.35355338, %v8958_v33 }
 0x6d1   : > { %2579 = vmax.xlane.f32.xlu1 %v8016_v23  ;;  %v8087_v10 = vadd.f32 %v8084_v1, %v2550_v30 }
 0x6d2   : > { %2571 = vmax.xlane.f32.xlu0 %v8020_v20 }
 0x6d5   : > { %2583 = vmax.xlane.f32.xlu1 %v8026_v63 }
 0x6d6   : > { %2575 = vmax.xlane.f32.xlu0 %v8033_v24 }
 0x6d9   : > { %2587 = vmax.xlane.f32.xlu1 %v8038_v29 }
 0x6da   : > { %2577 = vmax.xlane.f32.xlu0 %v8044_v39 }
 0x6dd   : > { %2591 = vmax.xlane.f32.xlu1 %v8050_v49 }
 0x6de   : > { %2581 = vmax.xlane.f32.xlu0 %v8056_v59 }
 0x6e1   : > { %2595 = vmax.xlane.f32.xlu1 %v8062_v6 }
 0x6e2   : > { %2585 = vmax.xlane.f32.xlu0 %v8068_v8 }
 0x6e5   : > { %2599 = vmax.xlane.f32.xlu1 %v8074_v47 }
 0x6e6   : > { %2589 = vmax.xlane.f32.xlu0 %v8079_v13 }
 0x6ea   : > { %2593 = vmax.xlane.f32.xlu0 %v8087_v10  ;;  %v1640_v45 = vpop.xlane.xlu0 %1639 }
 0x6eb   : > { %6468 = vrcp.f32 %v1640_v45 }
 0x6ed   : > { %v1638_v9 = vpop.xlane.xlu1 %1637 }
 0x6ee   : > { %2597 = vmax.xlane.f32.xlu0 %v8094_v17  ;;  %v1646_v26 = vpop.xlane.xlu0 %1645  ;;  %6470 = vrcp.f32 %v1638_v9 }
 0x6f1   : > { %v1636_v41 = vpop.xlane.xlu1 %1635 }
 0x6f2   : > { %6472 = vrcp.f32 %v1636_v41  ;;  %2601 = vmax.xlane.f32.xlu0 %v8101_v34  ;;  %v1650_v44 = vpop.xlane.xlu0 %1649 }
 0x6f5   : > { %v1642_v46 = vpop.xlane.xlu1 %1641  ;;  %v6469_v61 = vpop.eup %6468 }
 0x6f6   : > { %6474 = vrcp.f32 %v1642_v46  ;;  %6281 = vrot.lane.b32.xlu1 %v7211_v27, %s6893_s15  ;;  %v1652_v51 = vpop.xlane.xlu0 %1651  ;;  %v1672_v19 = vmul.f32 %v6469_v61, %v7947_v14 }
 0x6f7   : > { %6476 = vrcp.f32 %v1646_v26 }
 0x6f8   : > { %v6471_v35 = vpop.eup %6470 }
 0x6f9   : > { %v1644_v54 = vpop.xlane.xlu1 %1643  ;;  %v1670_v4 = vmul.f32 %v6471_v35, %v7951_v25 }
 0x6fa   : > { %6478 = vrcp.f32 %v1644_v54  ;;  %6291 = vrot.lane.b32.xlu1 %v7231_v38, %s6893_s15  ;;  %v1654_v40 = vpop.xlane.xlu0 %1653 }
 0x6fb   : > { %6480 = vrcp.f32 %v1650_v44 }
 0x6fc   : > { %v6473_v12 = vpop.eup %6472  ;;  %6482 = vrcp.f32 %v1652_v51 }
 0x6fd   : > { %v1648_v0 = vpop.xlane.xlu1 %1647  ;;  %v1668_v16 = vmul.f32 %v6473_v12, %v7957_v50 }
 0x6fe   : > { %6484 = vrcp.f32 %v1648_v0  ;;  %6301 = vrot.lane.b32.xlu1 %v7251_v48, %s6893_s15  ;;  %v6242_v5 = vpop.permute.xlu0 %6241 }
 0x6ff   : > { %v6244_v33 = vunpack.i.h.bf16 %v6242_v5  ;;  %v6243_v30 = vunpack.i.l.bf16 %v6242_v5  ;;  %5213 = vmatprep.mubr.f32.mxu1 %v1668_v16  ;;  %6486 = vrcp.f32 %v1654_v40 }
 0x700   : > { %v6475_v60 = vpop.eup %6474  ;;  %5214 = vmatmul.mubr.f32.gmra.mrb[22].mxu1 %v1670_v4 }
 0x701   : > { %v5804_v45 = vpack.c.bf16 %v6244_v33, %v6243_v30  ;;  %v6247_v18 = vpop.permute.xlu1 %6246  ;;  %5216 = vmatprep.mubr.f32.mxu1 %v1672_v19  ;;  %v1674_v50 = vmul.f32 %v6475_v60, %v7963_v57  ;;  %v6477_v25 = vpop.eup %6476 }
 0x702   : > { %v6249_v7 = vunpack.i.h.bf16 %v6247_v18  ;;  %v6248_v9 = vunpack.i.l.bf16 %v6247_v18  ;;  %6306 = vrot.lane.b32.xlu1 %v7261_v53, %s6893_s15  ;;  %v6252_v26 = vpop.permute.xlu0 %6251  ;;  %v1678_v54 = vmul.f32 %v6477_v25, %v7953_v22  ;;  %v608_v18 = vld [vmem:[#allocation8 + $0x8] sm:$0xff] }
 0x703   : > { %5806 = vmatprep.subr.msk.bf16.mxu0 %vm7295_vm2, %v5804_v45  ;;  %v6254_v35 = vunpack.i.h.bf16 %v6252_v26  ;;  %v6253_v12 = vunpack.i.l.bf16 %v6252_v26  ;;  %5228 = vmatprep.subr.mxu1 %v608_v18 }
 0x704   : > { %v6479_v44 = vpop.eup %6478  ;;  %v5810_v14 = vpack.c.bf16 %v6249_v7, %v6248_v9  ;;  %5217 = vmatmul.mubr.f32.gmra.mrb[24].mxu1 %v1674_v50  ;;  %5809 = vmatpush3.bf16.xpose.msk.msra.mxu0 %vm7295_vm2, %v5804_v45 }
 0x705   : > { %v1676_v46 = vmul.f32 %v6479_v44, %v7969_v21  ;;  %v6481_v51 = vpop.eup %6480  ;;  %v5816_v33 = vpack.c.bf16 %v6254_v35, %v6253_v12  ;;  %5229 = vmatpush3.msra.mxu1 %v608_v18  ;;  %v6267_v7 = vpop.permute.xlu1 %6266 }
 0x706   : > { %v6257_v57 = vpop.permute.xlu0 %6256  ;;  %5812 = vmatprep.subr.msk.bf16.mxu0 %vm7295_vm2, %v5810_v14  ;;  %v6483_v61 = vpop.eup %6482  ;;  %v1682_v21 = vmul.f32 %v6481_v51, %v7959_v52  ;;  %v6269_v9 = vunpack.i.h.bf16 %v6267_v7  ;;  %v6268_v26 = vunpack.i.l.bf16 %v6267_v7 }
 0x707   : > { %5219 = vmatprep.mubr.f32.mxu1 %v1676_v46  ;;  %v1684_v4 = vmul.f32 %v6483_v61, %v7965_v28  ;;  %v6259_v52 = vunpack.i.h.bf16 %v6257_v57  ;;  %v6258_v30 = vunpack.i.l.bf16 %v6257_v57 }
 0x708   : > { %v6485_v40 = vpop.eup %6484  ;;  %6286 = vrot.lane.b32.xlu0 %v7221_v32, %s6893_s15  ;;  %5220 = vmatmul.mubr.f32.gmra.mrb[26].mxu1 %v1678_v54  ;;  %v5834_v25 = vpack.c.bf16 %v6269_v9, %v6268_v26 }
 0x709   : > { %v1680_v0 = vmul.f32 %v6485_v40, %v7975_v3  ;;  %v6487_v5 = vpop.eup %6486  ;;  %v5822_v19 = vpack.c.bf16 %v6259_v52, %v6258_v30  ;;  %v6277_v44 = vpop.permute.xlu1 %6276 }
 0x70a   : > { %v6262_v16 = vpop.permute.xlu0 %6261  ;;  %v1686_v3 = vmul.f32 %v6487_v5, %v7971_v2  ;;  %v8143_v2 = vld [vmem:[#allocation8] sm:$0xff]  ;;  %v6279_v54 = vunpack.i.h.bf16 %v6277_v44  ;;  %v6278_v61 = vunpack.i.l.bf16 %v6277_v44 }
 0x70b   : > { %5222 = vmatprep.mubr.f32.mxu1 %v1680_v0  ;;  %v6264_v60 = vunpack.i.h.bf16 %v6262_v16  ;;  %v6263_v45 = vunpack.i.l.bf16 %v6262_v16  ;;  %5254 = vmatprep.subr.mxu1 %v8143_v2 }
 0x70c   : > { %6296 = vrot.lane.b32.xlu0 %v7241_v43, %s6893_s15  ;;  %5223 = vmatmul.mubr.f32.gmra.mrb[28].mxu1 %v1682_v21  ;;  %v5846_v35 = vpack.c.bf16 %v6279_v54, %v6278_v61 }
 0x70d   : > { %5815 = vmatpush3.bf16.xpose.msk.msra.mxu0 %vm7295_vm2, %v5810_v14  ;;  %5225 = vmatprep.mubr.f32.mxu1 %v1684_v4  ;;  %v5828_v50 = vpack.c.bf16 %v6264_v60, %v6263_v45  ;;  %v3120_v51 = vpop.permute.xlu1 %3119 }
 0x70e   : > { %5818 = vmatprep.subr.msk.bf16.mxu0 %vm7295_vm2, %v5816_v33  ;;  %v6272_v22 = vpop.permute.xlu0 %6271 }
 0x70f   : > { %v6274_v14 = vunpack.i.h.bf16 %v6272_v22  ;;  %v6273_v46 = vunpack.i.l.bf16 %v6272_v22 }
 0x710   : > { %6311 = vrot.lane.b32.xlu0 %v7271_v58, %s6893_s15  ;;  %5226 = vmatmul.mubr.f32.gmra.mrb[30].mxu1 %v1686_v3 }
 0x711   : > { %v5840_v57 = vpack.c.bf16 %v6274_v14, %v6273_v46  ;;  %v3124_v40 = vpop.permute.xlu1 %3123 }
 0x712   : > { %v3118_v28 = vpop.permute.xlu0 %3117 }
 0x713   : > { %5450 = vmatprep.mubr.msk.f32.mxu0 %vm659_vm1, %v3118_v28 }
 0x715   : > { %5821 = vmatpush3.bf16.xpose.msk.msra.mxu0 %vm7295_vm2, %v5816_v33  ;;  %v3128_v0 = vpop.permute.xlu1 %3127 }
 0x716   : > { %5824 = vmatprep.subr.msk.bf16.mxu0 %vm7295_vm2, %v5822_v19  ;;  %v3122_v12 = vpop.permute.xlu0 %3121 }
 0x719   : > { %v3132_v21 = vpop.permute.xlu1 %3131 }
 0x71a   : > { %v3126_v16 = vpop.permute.xlu0 %3125 }
 0x71d   : > { %5827 = vmatpush3.bf16.xpose.msk.msra.mxu0 %vm7295_vm2, %v5822_v19  ;;  %v3136_v4 = vpop.permute.xlu1 %3135 }
 0x71e   : > { %5830 = vmatprep.subr.msk.bf16.mxu0 %vm7295_vm2, %v5828_v50  ;;  %v3130_v5 = vpop.permute.xlu0 %3129 }
 0x721   : > { %v3140_v22 = vpop.permute.xlu1 %3139 }
 0x722   : > { %v3134_v33 = vpop.permute.xlu0 %3133 }
 0x725   : > { %5833 = vmatpush3.bf16.xpose.msk.msra.mxu0 %vm7295_vm2, %v5828_v50  ;;  %v3144_v41 = vpop.permute.xlu1 %3143 }
 0x726   : > { %5836 = vmatprep.subr.msk.bf16.mxu0 %vm7295_vm2, %v5834_v25  ;;  %v3138_v3 = vpop.permute.xlu0 %3137 }
 0x729   : > { %v3148_v30 = vpop.permute.xlu1 %3147 }
 0x72a   : > { %v3142_v52 = vpop.permute.xlu0 %3141 }
 0x72d   : > { %5839 = vmatpush3.bf16.xpose.msk.msra.mxu0 %vm7295_vm2, %v5834_v25 }
 0x72e   : > { %5842 = vmatprep.subr.msk.bf16.mxu0 %vm7295_vm2, %v5840_v57  ;;  %v3146_v19 = vpop.permute.xlu0 %3145 }
 0x735   : > { %5845 = vmatpush3.bf16.xpose.msk.msra.mxu0 %vm7295_vm2, %v5840_v57 }
 0x736   : > { %5848 = vmatprep.subr.msk.bf16.mxu0 %vm7295_vm2, %v5846_v35 }
 0x73d   : > { %5851 = vmatpush3.bf16.xpose.msk.msra.mxu0 %vm7295_vm2, %v5846_v35 }
 0x744   : > { %5451 = vmatmul.mubr.msk.f32.vlgmr.msra.gmra.mrb[64].mxu0 %vm659_vm1, %v3120_v51 }
 0x745   : > { %5453 = vmatprep.mubr.msk.f32.mxu0 %vm659_vm1, %v3122_v12 }
 0x748   : > { %5454 = vmatmul.mubr.msk.f32.gmra.mrb[66].mxu0 %vm659_vm1, %v3124_v40 }
 0x749   : > { %5456 = vmatprep.mubr.msk.f32.mxu0 %vm659_vm1, %v3126_v16 }
 0x74c   : > { %5457 = vmatmul.mubr.msk.f32.gmra.mrb[68].mxu0 %vm659_vm1, %v3128_v0 }
 0x74d   : > { %5459 = vmatprep.mubr.msk.f32.mxu0 %vm659_vm1, %v3130_v5 }
 0x750   : > { %5460 = vmatmul.mubr.msk.f32.gmra.mrb[70].mxu0 %vm659_vm1, %v3132_v21 }
 0x751   : > { %5462 = vmatprep.mubr.msk.f32.mxu0 %vm659_vm1, %v3134_v33 }
 0x754   : > { %5463 = vmatmul.mubr.msk.f32.gmra.mrb[72].mxu0 %vm659_vm1, %v3136_v4 }
 0x755   : > { %5465 = vmatprep.mubr.msk.f32.mxu0 %vm659_vm1, %v3138_v3 }
 0x758   : > { %5466 = vmatmul.mubr.msk.f32.gmra.mrb[74].mxu0 %vm659_vm1, %v3140_v22 }
 0x759   : > { %5468 = vmatprep.mubr.msk.f32.mxu0 %vm659_vm1, %v3142_v52 }
 0x75a   : > { %v2574_v28 = vpop.xlane.xlu1 %2573 }
 0x75b   : > { %v2604_v60 = vsub.f32 %v8009_v42, %v2574_v28 }
 0x75c   : > { %5469 = vmatmul.mubr.msk.f32.gmra.mrb[76].mxu0 %vm659_vm1, %v3144_v41 }
 0x75d   : > { %v2621_v45 = vmul.f32 1.442695, %v2604_v60  ;;  %5471 = vmatprep.mubr.msk.f32.mxu0 %vm659_vm1, %v3146_v19 }
 0x75e   : > { %v2580_v18 = vpop.xlane.xlu1 %2579 }
 0x75f   : > { %6488 = vpow2.f32 %v2621_v45  ;;  %v2572_v50 = vpop.xlane.xlu0 %2571  ;;  %v2607_v7 = vsub.f32 %v8016_v23, %v2580_v18 }
 0x760   : > { %v2603_v9 = vsub.f32 %v8020_v20, %v2572_v50  ;;  %5472 = vmatmul.mubr.msk.f32.gmra.mrb[78].mxu0 %vm659_vm1, %v3148_v30 }
 0x761   : > { %v2627_v44 = vmul.f32 1.442695, %v2607_v7 }
 0x762   : > { %v2619_v26 = vmul.f32 1.442695, %v2603_v9  ;;  %v2584_v57 = vpop.xlane.xlu1 %2583 }
 0x763   : > { %v2576_v25 = vpop.xlane.xlu0 %2575  ;;  %v2609_v21 = vsub.f32 %v8026_v63, %v2584_v57 }
 0x764   : > { %6490 = vpow2.f32 %v2619_v26  ;;  %v2605_v42 = vsub.f32 %v8033_v24, %v2576_v25 }
 0x765   : > { %6492 = vpow2.f32 %v2627_v44  ;;  %v2631_v33 = vmul.f32 1.442695, %v2609_v21 }
 0x766   : > { %v2623_v20 = vmul.f32 1.442695, %v2605_v42  ;;  %v2588_v35 = vpop.xlane.xlu1 %2587 }
 0x767   : > { %v2578_v14 = vpop.xlane.xlu0 %2577  ;;  %v2611_v22 = vsub.f32 %v8038_v29, %v2588_v35 }
 0x768   : > { %v2606_v46 = vsub.f32 %v8044_v39, %v2578_v14 }
 0x769   : > { %v8184_v51 = vpop.eup %6488  ;;  %v2635_v52 = vmul.f32 1.442695, %v2611_v22 }
 0x76a   : > { %v2625_v54 = vmul.f32 1.442695, %v2606_v46  ;;  %2653 = vadd.xlane.f32.xlu0 %v8184_v51 }
 0x76b   : > { %v2582_v23 = vpop.xlane.xlu0 %2581 }
 0x76c   : > { %6494 = vpow2.f32 %v2625_v54  ;;  %v2608_v61 = vsub.f32 %v8056_v59, %v2582_v23  ;;  %v2592_v59 = vpop.xlane.xlu1 %2591 }
 0x76d   : > { %6496 = vpow2.f32 %v2623_v20  ;;  %v2613_v63 = vsub.f32 %v8050_v49, %v2592_v59 }
 0x76e   : > { %v8188_v40 = vpop.eup %6490  ;;  %v2629_v24 = vmul.f32 1.442695, %v2608_v61 }
 0x76f   : > { %2651 = vadd.xlane.f32.xlu1 %v8188_v40  ;;  %v2586_v12 = vpop.xlane.xlu0 %2585  ;;  %v8192_v0 = vpop.eup %6492  ;;  %v2639_v19 = vmul.f32 1.442695, %v2613_v63 }
 0x770   : > { %v2610_v39 = vsub.f32 %v8068_v8, %v2586_v12  ;;  %6498 = vpow2.f32 %v2629_v24  ;;  %v2596_v41 = vpop.xlane.xlu1 %2595 }
 0x771   : > { %v2615_v29 = vsub.f32 %v8062_v6, %v2596_v41 }
 0x772   : > { %v2633_v5 = vmul.f32 1.442695, %v2610_v39 }
 0x773   : > { %2659 = vadd.xlane.f32.xlu1 %v8192_v0  ;;  %v2590_v16 = vpop.xlane.xlu0 %2589  ;;  %v2643_v18 = vmul.f32 1.442695, %v2615_v29 }
 0x774   : > { %6500 = vpow2.f32 %v2633_v5  ;;  %v2600_v60 = vpop.xlane.xlu1 %2599  ;;  %v2612_v14 = vsub.f32 %v8079_v13, %v2590_v16 }
 0x775   : > { %6502 = vpow2.f32 %v2631_v33  ;;  %v2617_v50 = vsub.f32 %v8074_v47, %v2600_v60 }
 0x776   : > { %v8196_v4 = vpop.eup %6494  ;;  %6504 = vpow2.f32 %v2635_v52  ;;  %v2637_v54 = vmul.f32 1.442695, %v2612_v14 }
 0x777   : > { %2657 = vadd.xlane.f32.xlu0 %v8196_v4  ;;  %v2594_v3 = vpop.xlane.xlu0 %2593  ;;  %v8200_v8 = vpop.eup %6496  ;;  %6506 = vpow2.f32 %v2639_v19  ;;  %v2647_v9 = vmul.f32 1.442695, %v2617_v50 }
 0x778   : > { %6508 = vpow2.f32 %v2643_v18  ;;  %v6282_v42 = vpop.permute.xlu1 %6281  ;;  %v2614_v23 = vsub.f32 %v8087_v10, %v2594_v3 }
 0x779   : > { %6510 = vpow2.f32 %v2647_v9  ;;  %v6283_v57 = vunpack.i.l.bf16 %v6282_v42 }
 0x77a   : > { %v8204_v30 = vpop.eup %6498  ;;  %v2641_v13 = vmul.f32 1.442695, %v2614_v23 }
 0x77b   : > { %2655 = vadd.xlane.f32.xlu0 %v8200_v8  ;;  %v2598_v28 = vpop.xlane.xlu0 %2597 }
 0x77c   : > { %v2616_v24 = vsub.f32 %v8094_v17, %v2598_v28  ;;  %v6292_v9 = vpop.permute.xlu1 %6291 }
 0x77d   : > { %v6293_v14 = vunpack.i.l.bf16 %v6292_v9 }
 0x77e   : > { %v8208_v45 = vpop.eup %6500  ;;  %v2645_v16 = vmul.f32 1.442695, %v2616_v24  ;;  %v8965_v24 = vld [vmem:[#allocation22_spill] sm:$0xff] }
 0x77f   : > { %2661 = vadd.xlane.f32.xlu0 %v8204_v30  ;;  %v2602_v49 = vpop.xlane.xlu0 %2601  ;;  %v8214_v7 = vpop.eup %6502 }
 0x780   : > { %v2618_v6 = vsub.f32 %v8101_v34, %v2602_v49  ;;  %v8218_v26 = vpop.eup %6504  ;;  %v6284_v34 = vunpack.i.h.bf16 %v6282_v42  ;;  %v8963_v42 = vld [vmem:[#allocation20_spill] sm:$0xff]  ;;  %v6302_v23 = vpop.permute.xlu1 %6301 }
 0x781   : > { %v8221_v44 = vpop.eup %6506 }
 0x782   : > { %v2649_v25 = vmul.f32 1.442695, %v2618_v6  ;;  %v8224_v47 = vpop.eup %6508  ;;  %v5772_v12 = vpack.c.bf16 %v6284_v34, %v6283_v57  ;;  %v8962_v6 = vld [vmem:[#allocation21_spill] sm:$0xff] }
 0x783   : > { %2665 = vadd.xlane.f32.xlu0 %v8208_v45  ;;  %v8228_v46 = vpop.eup %6510  ;;  %v6287_v29 = vpop.permute.xlu0 %6286 }
 0x784   : > { %6316 = vrot.lane.b32.xlu1 %v7281_v62, %s6893_s15  ;;  %6512 = vpow2.f32 %v2649_v25  ;;  %v6289_v50 = vunpack.i.h.bf16 %v6287_v29  ;;  %v6288_v49 = vunpack.i.l.bf16 %v6287_v29  ;;  %v6294_v25 = vunpack.i.h.bf16 %v6292_v9  ;;  %s6802_s15 = scalar_lea.vmem %s8805_s24, 2048 }
 0x785   : > { %6514 = vpow2.f32 %v2637_v54  ;;  %v8964_v54 = vld [vmem:[#allocation23_spill] sm:$0xff]  ;;  %p6803_p10 = scmp.ne.s32.totalorder %s8805_s24, %s6802_s15 }
 0x786   : > { %6516 = vpow2.f32 %v2641_v13  ;;  %v5776_v34 = vpack.c.bf16 %v6289_v50, %v6288_v49  ;;  %v8972_v49 = vld [vmem:[#allocation31_spill] sm:$0xff] }
 0x787   : > { %2663 = vadd.xlane.f32.xlu0 %v8214_v7  ;;  %6518 = vpow2.f32 %v2645_v16  ;;  %v6297_v57 = vpop.permute.xlu0 %6296  ;;  %v6303_v16 = vunpack.i.l.bf16 %v6302_v23  ;;  %p6804_p3 = pnand %p6803_p10, %p7097_p5 }
 0x788   : > { %v6298_v13 = vunpack.i.l.bf16 %v6297_v57 }
 0x789   : > { %p6805_p7 = pneg %p6804_p3 }
 0x78b   : > { %2667 = vadd.xlane.f32.xlu0 %v8218_v26 }
 0x78e   : > { %v8232_v61 = vpop.eup %6512 }
 0x78f   : > { %2671 = vadd.xlane.f32.xlu0 %v8221_v44  ;;  %v8243_v59 = vpop.eup %6514 }
 0x790   : > { %v8246_v17 = vpop.eup %6516 }
 0x793   : > { %2675 = vadd.xlane.f32.xlu0 %v8224_v47 }
 0x797   : > { %2679 = vadd.xlane.f32.xlu0 %v8228_v46 }
 0x799   : > { %v5206_v20 = vpop.f32.mrb[16].mxu1 }
 0x79a   : > { %v1801_v35 = vpop.f32.mrb[17].mxu1 }
 0x79b   : > { %2681 = vadd.xlane.f32.xlu0 %v8232_v61  ;;  %5230 = vmatprep.mubr.msk.f32.mxu1 %vm659_vm1, %v1801_v35  ;;  %v6299_v35 = vunpack.i.h.bf16 %v6297_v57  ;;  %v8976_v57 = vld [vmem:[#allocation35_spill] sm:$0xff] }
 0x79c   : > { %5231 = vmatmul.mubr.msk.f32.vlgmr.msra.gmra.mrb[32].mxu1 %vm659_vm1, %v5206_v20  ;;  %v5780_v20 = vpack.c.bf16 %v6294_v25, %v6293_v14  ;;  %v8974_v14 = vld [vmem:[#allocation33_spill] sm:$0xff] }
 0x79d   : > { %5255 = vmatpush3.msra.mxu1 %v8143_v2  ;;  %v5209_v39 = vpop.f32.mrb[18].mxu1  ;;  %v8249_v2 = vpop.eup %6518 }
 0x79e   : > { %5773 = vmatprep.subr.bf16.mxu1 %v5772_v12  ;;  %v1811_v10 = vpop.f32.mrb[19].mxu1 }
 0x79f   : > { %5233 = vmatprep.mubr.msk.f32.mxu1 %vm659_vm1, %v1811_v10  ;;  %v6304_v10 = vunpack.i.h.bf16 %v6302_v23 }
 0x7a0   : > { %5234 = vmatmul.mubr.msk.f32.gmra.mrb[34].mxu1 %vm659_vm1, %v5209_v39  ;;  %v8966_v39 = vld [vmem:[#allocation25_spill] sm:$0xff] }
 0x7a1   : > { %v5212_v21 = vpop.f32.mrb[20].mxu1 }
 0x7a2   : > { %v1821_v5 = vpop.f32.mrb[21].mxu1 }
 0x7a3   : > { %5236 = vmatprep.mubr.msk.f32.mxu1 %vm659_vm1, %v1821_v5  ;;  %v6307_v5 = vpop.permute.xlu1 %6306 }
 0x7a4   : > { %5237 = vmatmul.mubr.msk.f32.gmra.mrb[36].mxu1 %vm659_vm1, %v5212_v21  ;;  %v8967_v21 = vld [vmem:[#allocation24_spill] sm:$0xff] }
 0x7a8   : > { %2669 = vadd.xlane.f32.xlu1 %v8243_v59 }
 0x7ac   : > { %2673 = vadd.xlane.f32.xlu1 %v8246_v17 }
 0x7b0   : > { %2677 = vadd.xlane.f32.xlu1 %v8249_v2 }
 0x7d3   : > { %v5215_v33 = vpop.f32.mrb[22].mxu1 }
 0x7d4   : > { %v1831_v22 = vpop.f32.mrb[23].mxu1 }
 0x7d5   : > { %5239 = vmatprep.mubr.msk.f32.mxu1 %vm659_vm1, %v1831_v22  ;;  %v5788_v22 = vpack.c.bf16 %v6304_v10, %v6303_v16 }
 0x7d6   : > { %5240 = vmatmul.mubr.msk.f32.gmra.mrb[38].mxu1 %vm659_vm1, %v5215_v33  ;;  %v8968_v33 = vld [vmem:[#allocation27_spill] sm:$0xff] }
 0x7d7   : > { %v5218_v3 = vpop.f32.mrb[24].mxu1 }
 0x7d8   : > { %v1841_v41 = vpop.f32.mrb[25].mxu1 }
 0x7d9   : > { %5242 = vmatprep.mubr.msk.f32.mxu1 %vm659_vm1, %v1841_v41  ;;  %v6308_v41 = vunpack.i.l.bf16 %v6307_v5 }
 0x7da   : > { %5243 = vmatmul.mubr.msk.f32.gmra.mrb[40].mxu1 %vm659_vm1, %v5218_v3  ;;  %v6309_v3 = vunpack.i.h.bf16 %v6307_v5 }
 0x7db   : > { %v5221_v52 = vpop.f32.mrb[26].mxu1 }
 0x7dc   : > { %v1851_v63 = vpop.f32.mrb[27].mxu1 }
 0x7dd   : > { %5245 = vmatprep.mubr.msk.f32.mxu1 %vm659_vm1, %v1851_v63  ;;  %v6312_v63 = vpop.permute.xlu0 %6311 }
 0x7de   : > { %5246 = vmatmul.mubr.msk.f32.gmra.mrb[42].mxu1 %vm659_vm1, %v5221_v52  ;;  %v8969_v52 = vld [vmem:[#allocation26_spill] sm:$0xff]  ;;  %v6314_v29 = vunpack.i.h.bf16 %v6312_v63 }
 0x7df   : > { %v5224_v28 = vpop.f32.mrb[28].mxu1 }
 0x7e0   : > { %v1861_v19 = vpop.f32.mrb[29].mxu1 }
 0x7e1   : > { %5248 = vmatprep.mubr.msk.f32.mxu1 %vm659_vm1, %v1861_v19  ;;  %v5792_v19 = vpack.c.bf16 %v6309_v3, %v6308_v41 }
 0x7e2   : > { %5249 = vmatmul.mubr.msk.f32.gmra.mrb[44].mxu1 %vm659_vm1, %v5224_v28  ;;  %v8970_v28 = vld [vmem:[#allocation29_spill] sm:$0xff] }
 0x7e3   : > { %v5227_v60 = vpop.f32.mrb[30].mxu1 }
 0x7e4   : > { %v1871_v18 = vpop.f32.mrb[31].mxu1 }
 0x7e5   : > { %5251 = vmatprep.mubr.msk.f32.mxu1 %vm659_vm1, %v1871_v18  ;;  %v8971_v18 = vld [vmem:[#allocation28_spill] sm:$0xff] }
 0x7e6   : > { %5252 = vmatmul.mubr.msk.f32.gmra.mrb[46].mxu1 %vm659_vm1, %v5227_v60  ;;  %v6313_v60 = vunpack.i.l.bf16 %v6312_v63 }
 0x7e7   : > { %5256 = vmatprep.mubr.msk.f32.mxu1 %vm659_vm1, %v8962_v6  ;;  %v8973_v6 = vld [vmem:[#allocation30_spill] sm:$0xff] }
 0x7e8   : > { %v5796_v25 = vpack.c.bf16 %v6314_v29, %v6313_v60 }
 0x7ea   : > { %5257 = vmatmul.mubr.msk.f32.vlgmr.msra.gmra.mrb[32].mxu1 %vm659_vm1, %v8963_v42 }
 0x7eb   : > { %5775 = vmatpush3.bf16.msra.mxu1 %v5772_v12  ;;  %5259 = vmatprep.mubr.msk.f32.mxu1 %vm659_vm1, %v8964_v54  ;;  %v5784_v12 = vpack.c.bf16 %v6299_v35, %v6298_v13  ;;  %v8977_v13 = vld [vmem:[#allocation34_spill] sm:$0xff] }
 0x7ec   : > { %5777 = vmatprep.subr.bf16.mxu1 %v5776_v34 }
 0x7ee   : > { %5260 = vmatmul.mubr.msk.f32.gmra.mrb[34].mxu1 %vm659_vm1, %v8965_v24 }
 0x7ef   : > { %5779 = vmatpush3.bf16.msra.mxu1 %v5776_v34  ;;  %5262 = vmatprep.mubr.msk.f32.mxu1 %vm659_vm1, %v8966_v39  ;;  %v8975_v34 = vld [vmem:[#allocation32_spill] sm:$0xff] }
 0x7f0   : > { %5781 = vmatprep.subr.bf16.mxu1 %v5780_v20 }
 0x7f2   : > { %5263 = vmatmul.mubr.msk.f32.gmra.mrb[36].mxu1 %vm659_vm1, %v8967_v21 }
 0x7f3   : > { %5783 = vmatpush3.bf16.msra.mxu1 %v5780_v20  ;;  %5265 = vmatprep.mubr.msk.f32.mxu1 %vm659_vm1, %v8968_v33 }
 0x7f4   : > { %5785 = vmatprep.subr.bf16.mxu1 %v5784_v12 }
 0x7f6   : > { %5266 = vmatmul.mubr.msk.f32.gmra.mrb[38].mxu1 %vm659_vm1, %v8969_v52 }
 0x7f7   : > { %5787 = vmatpush3.bf16.msra.mxu1 %v5784_v12  ;;  %5268 = vmatprep.mubr.msk.f32.mxu1 %vm659_vm1, %v8970_v28  ;;  %v2654_v50 = vpop.xlane.xlu0 %2653 }
 0x7f8   : > { %5789 = vmatprep.subr.bf16.mxu1 %v5788_v22 }
 0x7fa   : > { %5269 = vmatmul.mubr.msk.f32.gmra.mrb[40].mxu1 %vm659_vm1, %v8971_v18 }
 0x7fb   : > { %5791 = vmatpush3.bf16.msra.mxu1 %v5788_v22  ;;  %5271 = vmatprep.mubr.msk.f32.mxu1 %vm659_vm1, %v8972_v49 }
 0x7fc   : > { %5793 = vmatprep.subr.bf16.mxu1 %v5792_v19  ;;  %v2652_v9 = vpop.xlane.xlu1 %2651 }
 0x7fd   : > { %6520 = vrcp.f32 %v2652_v9  ;;  %v6664_v9 = vld [vmem:[#allocation5] sm:$0xff] }
 0x7fe   : > { %6522 = vrcp.f32 %v2654_v50  ;;  %5272 = vmatmul.mubr.msk.f32.gmra.mrb[42].mxu1 %vm659_vm1, %v8973_v6 }
 0x7ff   : > { %5795 = vmatpush3.bf16.msra.mxu1 %v5792_v19  ;;  %5274 = vmatprep.mubr.msk.f32.mxu1 %vm659_vm1, %v8974_v14  ;;  %v6665_v14 = vld [vmem:[#allocation5 + $0x8] sm:$0xff] }
 0x800   : > { %5797 = vmatprep.subr.bf16.mxu1 %v5796_v25  ;;  %v2660_v42 = vpop.xlane.xlu1 %2659 }
 0x801   : > { %6524 = vrcp.f32 %v2660_v42 }
 0x802   : > { %5275 = vmatmul.mubr.msk.f32.gmra.mrb[44].mxu1 %vm659_vm1, %v8975_v34 }
 0x803   : > { %5799 = vmatpush3.bf16.msra.mxu1 %v5796_v25  ;;  %5277 = vmatprep.mubr.msk.f32.mxu1 %vm659_vm1, %v8976_v57 }
 0x804   : > { %v6317_v54 = vpop.permute.xlu1 %6316  ;;  %v2658_v23 = vpop.xlane.xlu0 %2657 }
 0x805   : > { %v6319_v20 = vunpack.i.h.bf16 %v6317_v54  ;;  %v6318_v35 = vunpack.i.l.bf16 %v6317_v54  ;;  %6526 = vrcp.f32 %v2658_v23 }
 0x806   : > { %5278 = vmatmul.mubr.msk.f32.gmra.mrb[46].mxu1 %vm659_vm1, %v8977_v13 }
 0x807   : > { %v6521_v24 = vpop.eup %6520  ;;  %v5800_v39 = vpack.c.bf16 %v6319_v20, %v6318_v35 }
 0x808   : > { %v6523_v10 = vpop.eup %6522  ;;  %v2656_v16 = vpop.xlane.xlu0 %2655  ;;  %v2684_v21 = vmul.f32 %v6521_v24, %v8188_v40 }
 0x809   : > { %6528 = vrcp.f32 %v2656_v16  ;;  %5801 = vmatprep.subr.bf16.mxu1 %v5800_v39  ;;  %v2686_v12 = vmul.f32 %v6523_v10, %v8184_v51 }
 0x80a   : > { %5803 = vmatpush3.bf16.msra.mxu1 %v5800_v39  ;;  %5368 = vmatprep.mubr.f32.mxu1 %v2684_v21 }
 0x80b   : > { %v6525_v22 = vpop.eup %6524 }
 0x80c   : > { %v2662_v5 = vpop.xlane.xlu0 %2661  ;;  %v2692_v28 = vmul.f32 %v6525_v22, %v8192_v0 }
 0x80d   : > { %6530 = vrcp.f32 %v2662_v5  ;;  %5369 = vmatmul.mubr.f32.vlgmr.msra.gmra.mrb[48].mxu1 %v2686_v12 }
 0x80f   : > { %v6527_v3 = vpop.eup %6526 }
 0x810   : > { %v2666_v33 = vpop.xlane.xlu0 %2665  ;;  %v2690_v40 = vmul.f32 %v6527_v3, %v8196_v4  ;;  %v6666_v3 = vld [vmem:[#allocation5 + $0x20] sm:$0xff] }
 0x811   : > { %6532 = vrcp.f32 %v2666_v33 }
 0x813   : > { %v6529_v41 = vpop.eup %6528 }
 0x814   : > { %v2664_v52 = vpop.xlane.xlu0 %2663  ;;  %v2688_v63 = vmul.f32 %v6529_v41, %v8200_v8 }
 0x815   : > { %6534 = vrcp.f32 %v2664_v52 }
 0x816   : > { %5371 = vmatprep.mubr.f32.mxu1 %v2688_v63 }
 0x817   : > { %v6531_v19 = vpop.eup %6530  ;;  %v5452_v29 = vpop.f32.mrb[64].mxu0  ;;  %5372 = vmatmul.mubr.f32.gmra.mrb[50].mxu1 %v2690_v40 }
 0x818   : > { %v3311_v51 = vpop.f32.mrb[65].mxu0  ;;  %v2668_v60 = vpop.xlane.xlu0 %2667  ;;  %5374 = vmatprep.mubr.f32.mxu1 %v2692_v28  ;;  %v2694_v18 = vmul.f32 %v6531_v19, %v8204_v30  ;;  %v3391_v49 = vmul.f32 0.35355338, %v5452_v29 }
 0x819   : > { %v3390_v50 = vmul.f32 0.35355338, %v3311_v51  ;;  %6536 = vrcp.f32 %v2668_v60 }
 0x81a   : > { %v8303_v42 = vadd.f32 %v6665_v14, %v3391_v49 }
 0x81b   : > { %v8300_v6 = vadd.f32 %v6664_v9, %v3390_v50  ;;  %v5455_v8 = vpop.f32.mrb[66].mxu0  ;;  %5375 = vmatmul.mubr.f32.gmra.mrb[52].mxu1 %v2694_v18  ;;  %v6533_v0 = vpop.eup %6532  ;;  %v6667_v18 = vld [vmem:[#allocation5 + $0x30] sm:$0xff] }
 0x81c   : > { %v3321_v4 = vpop.f32.mrb[67].mxu0  ;;  %v2698_v23 = vmul.f32 %v6533_v0, %v8208_v45  ;;  %v3393_v35 = vmul.f32 0.35355338, %v5455_v8 }
 0x81d   : > { %3422 = vmax.xlane.f32.xlu0 %v8300_v6  ;;  %v3392_v34 = vmul.f32 0.35355338, %v3321_v4 }
 0x81e   : > { %v8317_v45 = vadd.f32 %v8041_v36, %v3393_v35  ;;  %v6670_v35 = vld [vmem:[#allocation5 + $0x60] sm:$0xff] }
 0x81f   : > { %v6535_v25 = vpop.eup %6534  ;;  %v5458_v57 = vpop.f32.mrb[68].mxu0  ;;  %v8309_v13 = vadd.f32 %v8030_v37, %v3392_v34 }
 0x820   : > { %v3331_v54 = vpop.f32.mrb[69].mxu0  ;;  %v2696_v30 = vmul.f32 %v6535_v25, %v8214_v7  ;;  %v3395_v22 = vmul.f32 0.35355338, %v5458_v57  ;;  %v6669_v57 = vld [vmem:[#allocation5 + $0x50] sm:$0xff] }
 0x821   : > { %3424 = vmax.xlane.f32.xlu0 %v8303_v42  ;;  %v3394_v21 = vmul.f32 0.35355338, %v3331_v54 }
 0x822   : > { %5377 = vmatprep.mubr.f32.mxu1 %v2696_v30  ;;  %v8332_v40 = vadd.f32 %v8053_v56, %v3395_v22 }
 0x823   : > { %v6537_v20 = vpop.eup %6536  ;;  %v5461_v24 = vpop.f32.mrb[70].mxu0  ;;  %5378 = vmatmul.mubr.f32.gmra.mrb[54].mxu1 %v2698_v23 }
 0x824   : > { %v3397_v39 = vmul.f32 0.35355338, %v5461_v24  ;;  %v3341_v10 = vpop.f32.mrb[71].mxu0  ;;  %v2700_v16 = vmul.f32 %v6537_v20, %v8218_v26  ;;  %v2672_v26 = vpop.xlane.xlu0 %2671 }
 0x825   : > { %3426 = vmax.xlane.f32.xlu0 %v8309_v13  ;;  %6538 = vrcp.f32 %v2672_v26 }
 0x826   : > { %v8314_v7 = vadd.f32 %v8065_v11, %v3397_v39  ;;  %5380 = vmatprep.mubr.f32.mxu1 %v2700_v16  ;;  %v8324_v11 = vadd.f32 %v6666_v3, %v3394_v21 }
 0x827   : > { %v5464_v12 = vpop.f32.mrb[72].mxu0 }
 0x828   : > { %v3399_v5 = vmul.f32 0.35355338, %v5464_v12  ;;  %3436 = vmax.xlane.f32.xlu1 %v8314_v7  ;;  %v3351_v37 = vpop.f32.mrb[73].mxu0  ;;  %v2676_v51 = vpop.xlane.xlu0 %2675 }
 0x829   : > { %3428 = vmax.xlane.f32.xlu0 %v8317_v45 }
 0x82a   : > { %v8322_v33 = vadd.f32 %v8076_v15, %v3399_v5  ;;  %v3396_v15 = vmul.f32 0.35355338, %v3341_v10  ;;  %v6671_v5 = vld [vmem:[#allocation5 + $0x70] sm:$0xff] }
 0x82b   : > { %v5467_v41 = vpop.f32.mrb[74].mxu0 }
 0x82c   : > { %v3401_v52 = vmul.f32 0.35355338, %v5467_v41  ;;  %3440 = vmax.xlane.f32.xlu1 %v8322_v33  ;;  %v3361_v36 = vpop.f32.mrb[75].mxu0  ;;  %v8339_v50 = vadd.f32 %v6667_v18, %v3396_v15  ;;  %v2680_v0 = vpop.xlane.xlu0 %2679 }
 0x82d   : > { %3430 = vmax.xlane.f32.xlu0 %v8324_v11  ;;  %v3400_v14 = vmul.f32 0.35355338, %v3361_v36 }
 0x82e   : > { %v8329_v63 = vadd.f32 %v8084_v1, %v3401_v52  ;;  %v3398_v1 = vmul.f32 0.35355338, %v3351_v37 }
 0x82f   : > { %v5470_v28 = vpop.f32.mrb[76].mxu0  ;;  %v8350_v54 = vadd.f32 %v6669_v57, %v3400_v14  ;;  %v6539_v20 = vpop.eup %6538 }
 0x830   : > { %v3403_v19 = vmul.f32 0.35355338, %v5470_v28  ;;  %3444 = vmax.xlane.f32.xlu1 %v8329_v63  ;;  %v3371_v29 = vpop.f32.mrb[77].mxu0  ;;  %v2704_v21 = vmul.f32 %v6539_v20, %v8221_v44 }
 0x831   : > { %3432 = vmax.xlane.f32.xlu0 %v8332_v40  ;;  %v3402_v30 = vmul.f32 0.35355338, %v3371_v29 }
 0x832   : > { %v8337_v60 = vadd.f32 %v8091_v55, %v3403_v19  ;;  %v6668_v55 = vld [vmem:[#allocation5 + $0x40] sm:$0xff] }
 0x833   : > { %v5473_v49 = vpop.f32.mrb[78].mxu0  ;;  %v8346_v25 = vadd.f32 %v6668_v55, %v3398_v1  ;;  %v8353_v24 = vadd.f32 %v6670_v35, %v3402_v30 }
 0x834   : > { %v3405_v9 = vmul.f32 0.35355338, %v5473_v49  ;;  %3448 = vmax.xlane.f32.xlu1 %v8337_v60  ;;  %v3381_v56 = vpop.f32.mrb[79].mxu0 }
 0x835   : > { %3434 = vmax.xlane.f32.xlu0 %v8339_v50  ;;  %v2670_v8 = vpop.xlane.xlu1 %2669  ;;  %v3404_v39 = vmul.f32 0.35355338, %v3381_v56 }
 0x836   : > { %v8344_v4 = vadd.f32 %v8098_v31, %v3405_v9  ;;  %6540 = vrcp.f32 %v2670_v8  ;;  %v2682_v31 = vpop.xlane.xlu0 %2681 }
 0x837   : > { %6542 = vrcp.f32 %v2676_v51  ;;  %v8358_v37 = vadd.f32 %v6671_v5, %v3404_v39 }
 0x838   : > { %3452 = vmax.xlane.f32.xlu1 %v8344_v4 }
 0x839   : > { %3438 = vmax.xlane.f32.xlu0 %v8346_v25  ;;  %v2674_v34 = vpop.xlane.xlu1 %2673 }
 0x83a   : > { %6544 = vrcp.f32 %v2674_v34 }
 0x83b   : > { %6546 = vrcp.f32 %v2680_v0 }
 0x83d   : > { %3442 = vmax.xlane.f32.xlu0 %v8350_v54  ;;  %v2678_v23 = vpop.xlane.xlu1 %2677 }
 0x83e   : > { %6548 = vrcp.f32 %v2678_v23 }
 0x83f   : > { %6550 = vrcp.f32 %v2682_v31 }
 0x840   : > { %v6541_v10 = vpop.eup %6540 }
 0x841   : > { %3446 = vmax.xlane.f32.xlu0 %v8353_v24  ;;  %v2702_v16 = vmul.f32 %v6541_v10, %v8243_v59  ;;  %v6543_v12 = vpop.eup %6542 }
 0x842   : > { %v2708_v3 = vmul.f32 %v6543_v12, %v8224_v47 }
 0x843   : > { %5381 = vmatmul.mubr.f32.gmra.mrb[56].mxu1 %v2702_v16 }
 0x844   : > { %v6545_v26 = vpop.eup %6544  ;;  %5383 = vmatprep.mubr.f32.mxu1 %v2704_v21 }
 0x845   : > { %3450 = vmax.xlane.f32.xlu0 %v8358_v37  ;;  %v2706_v22 = vmul.f32 %v6545_v26, %v8246_v17  ;;  %v6547_v41 = vpop.eup %6546  ;;  %v609_v17 = vld [vmem:[#allocation8 + $0x10] sm:$0xff] }
 0x846   : > { %v2712_v36 = vmul.f32 %v6547_v41, %v8228_v46  ;;  %5392 = vmatprep.subr.mxu1 %v609_v17 }
 0x847   : > { %5384 = vmatmul.mubr.f32.gmra.mrb[58].mxu1 %v2706_v22 }
 0x848   : > { %v6549_v52 = vpop.eup %6548  ;;  %5386 = vmatprep.mubr.f32.mxu1 %v2708_v3  ;;  %5393 = vmatpush3.msra.mxu1 %v609_v17 }
 0x849   : > { %6326 = vrot.lane.b32.xlu1 %v7221_v32, %s6894_s11  ;;  %v2710_v44 = vmul.f32 %v6549_v52, %v8249_v2  ;;  %v6551_v59 = vpop.eup %6550 }
 0x84a   : > { %v2714_v47 = vmul.f32 %v6551_v59, %v8232_v61 }
 0x84b   : > { %5387 = vmatmul.mubr.f32.gmra.mrb[60].mxu1 %v2710_v44 }
 0x84c   : > { %5389 = vmatprep.mubr.f32.mxu1 %v2712_v36 }
 0x84d   : > { %6336 = vrot.lane.b32.xlu1 %v7241_v43, %s6894_s11 }
 0x84f   : > { %5390 = vmatmul.mubr.f32.gmra.mrb[62].mxu1 %v2714_v47 }
 0x851   : > { %6346 = vrot.lane.b32.xlu1 %v7261_v53, %s6894_s11 }
 0x85b   : > { %6321 = vrot.lane.b32.xlu0 %v7211_v27, %s6894_s11 }
 0x85f   : > { %6331 = vrot.lane.b32.xlu0 %v7231_v38, %s6894_s11 }
 0x863   : > { %6341 = vrot.lane.b32.xlu0 %v7251_v48, %s6894_s11 }
 0x8aa   : > { %v3423_v32 = vpop.xlane.xlu0 %3422 }
 0x8ab   : > { %v3454_v43 = vsub.f32 %v8300_v6, %v3423_v32 }
 0x8ad   : > { %v3470_v46 = vmul.f32 1.442695, %v3454_v43 }
 0x8ae   : > { %v3425_v61 = vpop.xlane.xlu0 %3424 }
 0x8af   : > { %6552 = vpow2.f32 %v3470_v46  ;;  %v3455_v53 = vsub.f32 %v8303_v42, %v3425_v61 }
 0x8b1   : > { %v3472_v2 = vmul.f32 1.442695, %v3455_v53 }
 0x8b2   : > { %v3427_v15 = vpop.xlane.xlu0 %3426 }
 0x8b3   : > { %6554 = vpow2.f32 %v3472_v2  ;;  %v3456_v27 = vsub.f32 %v8309_v13, %v3427_v15 }
 0x8b5   : > { %v3437_v28 = vpop.xlane.xlu1 %3436  ;;  %v3474_v51 = vmul.f32 1.442695, %v3456_v27 }
 0x8b6   : > { %v3429_v19 = vpop.xlane.xlu0 %3428 }
 0x8b7   : > { %v3457_v38 = vsub.f32 %v8317_v45, %v3429_v19  ;;  %v3461_v45 = vsub.f32 %v8314_v7, %v3437_v28 }
 0x8b9   : > { %v8382_v29 = vpop.eup %6552  ;;  %v3476_v48 = vmul.f32 1.442695, %v3457_v38  ;;  %v3441_v42 = vpop.xlane.xlu1 %3440  ;;  %v3484_v55 = vmul.f32 1.442695, %v3461_v45 }
 0x8ba   : > { %v3431_v18 = vpop.xlane.xlu0 %3430  ;;  %3502 = vadd.xlane.f32.xlu1 %v8382_v29  ;;  %v3463_v7 = vsub.f32 %v8322_v33, %v3441_v42 }
 0x8bb   : > { %6556 = vpow2.f32 %v3476_v48  ;;  %v3458_v6 = vsub.f32 %v8324_v11, %v3431_v18 }
 0x8bc   : > { %6558 = vpow2.f32 %v3474_v51 }
 0x8bd   : > { %v8386_v1 = vpop.eup %6554  ;;  %v3478_v49 = vmul.f32 1.442695, %v3458_v6  ;;  %v8391_v8 = vpop.xlane.xlu1 %3444 }
 0x8be   : > { %v3433_v13 = vpop.xlane.xlu0 %3432  ;;  %3504 = vadd.xlane.f32.xlu0 %v8386_v1 }
 0x8bf   : > { %6560 = vpow2.f32 %v3478_v49  ;;  %v3459_v9 = vsub.f32 %v8332_v40, %v3433_v13 }
 0x8c1   : > { %v3480_v56 = vmul.f32 1.442695, %v3459_v9  ;;  %v8402_v40 = vpop.xlane.xlu1 %3448 }
 0x8c2   : > { %v3435_v0 = vpop.xlane.xlu0 %3434 }
 0x8c3   : > { %6562 = vpow2.f32 %v3480_v56  ;;  %v3460_v11 = vsub.f32 %v8339_v50, %v3435_v0  ;;  %v3488_v50 = vmul.f32 1.442695, %v3463_v7  ;;  %v3465_v56 = vsub.f32 %v8329_v63, %v8391_v8 }
 0x8c4   : > { %6564 = vpow2.f32 %v3484_v55  ;;  %v3467_v55 = vsub.f32 %v8337_v60, %v8402_v40 }
 0x8c5   : > { %v8394_v14 = vpop.eup %6556  ;;  %v3482_v57 = vmul.f32 1.442695, %v3460_v11  ;;  %v8411_v39 = vpop.xlane.xlu1 %3452 }
 0x8c6   : > { %v8396_v34 = vpop.xlane.xlu0 %3438  ;;  %3508 = vadd.xlane.f32.xlu1 %v8394_v14  ;;  %v8400_v30 = vpop.eup %6558  ;;  %v3469_v8 = vsub.f32 %v8344_v4, %v8411_v39 }
 0x8c7   : > { %6566 = vpow2.f32 %v3482_v57  ;;  %v3462_v49 = vsub.f32 %v8346_v25, %v8396_v34  ;;  %v3492_v25 = vmul.f32 1.442695, %v3465_v56  ;;  %v3496_v34 = vmul.f32 1.442695, %v3467_v55 }
 0x8c8   : > { %6568 = vpow2.f32 %v3488_v50  ;;  %v3500_v57 = vmul.f32 1.442695, %v3469_v8 }
 0x8c9   : > { %v8404_v31 = vpop.eup %6560  ;;  %v6327_v12 = vpop.permute.xlu1 %6326  ;;  %v3486_v0 = vmul.f32 1.442695, %v3462_v49 }
 0x8ca   : > { %v3443_v23 = vpop.xlane.xlu0 %3442  ;;  %3506 = vadd.xlane.f32.xlu1 %v8400_v30  ;;  %3510 = vadd.xlane.f32.xlu0 %v8404_v31  ;;  %v6329_v26 = vunpack.i.h.bf16 %v6327_v12  ;;  %v6328_v22 = vunpack.i.l.bf16 %v6327_v12 }
 0x8cb   : > { %v3464_v20 = vsub.f32 %v8350_v54, %v3443_v23 }
 0x8cc   : > { %v5856_v36 = vpack.c.bf16 %v6329_v26, %v6328_v22 }
 0x8cd   : > { %v8409_v35 = vpop.eup %6562  ;;  %v3490_v10 = vmul.f32 1.442695, %v3464_v20  ;;  %v6337_v32 = vpop.permute.xlu1 %6336 }
 0x8ce   : > { %v8413_v33 = vpop.xlane.xlu0 %3446  ;;  %3512 = vadd.xlane.f32.xlu1 %v8409_v35  ;;  %v8416_v16 = vpop.eup %6564  ;;  %v6339_v46 = vunpack.i.h.bf16 %v6337_v32  ;;  %v6338_v61 = vunpack.i.l.bf16 %v6337_v32 }
 0x8cf   : > { %6570 = vpow2.f32 %v3490_v10  ;;  %v3466_v40 = vsub.f32 %v8353_v24, %v8413_v33 }
 0x8d0   : > { %v5864_v28 = vpack.c.bf16 %v6339_v46, %v6338_v61  ;;  %6572 = vpow2.f32 %v3486_v0 }
 0x8d1   : > { %v8421_v5 = vpop.eup %6566  ;;  %v6347_v48 = vpop.permute.xlu1 %6346  ;;  %6574 = vpow2.f32 %v3492_v25  ;;  %v3494_v23 = vmul.f32 1.442695, %v3466_v40 }
 0x8d2   : > { %3516 = vadd.xlane.f32.xlu1 %v8416_v16  ;;  %v8419_v21 = vpop.xlane.xlu0 %3450  ;;  %v8424_v52 = vpop.eup %6568  ;;  %v6349_v18 = vunpack.i.h.bf16 %v6347_v48  ;;  %v6348_v6 = vunpack.i.l.bf16 %v6347_v48  ;;  %6576 = vpow2.f32 %v3496_v34 }
 0x8d3   : > { %v3468_v63 = vsub.f32 %v8358_v37, %v8419_v21 }
 0x8d4   : > { %v5872_v13 = vpack.c.bf16 %v6349_v18, %v6348_v6 }
 0x8d5   : > { %v3498_v60 = vmul.f32 1.442695, %v3468_v63 }
 0x8d6   : > { %3514 = vadd.xlane.f32.xlu1 %v8421_v5  ;;  %v6322_v54 = vpop.permute.xlu0 %6321 }
 0x8d7   : > { %v6324_v3 = vunpack.i.h.bf16 %v6322_v54  ;;  %v6323_v41 = vunpack.i.l.bf16 %v6322_v54  ;;  %6578 = vpow2.f32 %v3498_v60 }
 0x8d8   : > { %6580 = vpow2.f32 %v3500_v57 }
 0x8d9   : > { %v5852_v44 = vpack.c.bf16 %v6324_v3, %v6323_v41  ;;  %v8427_v43 = vpop.eup %6570  ;;  %6582 = vpow2.f32 %v3494_v23 }
 0x8da   : > { %3520 = vadd.xlane.f32.xlu1 %v8424_v52  ;;  %v6332_v59 = vpop.permute.xlu0 %6331  ;;  %v8452_v7 = vpop.eup %6572 }
 0x8db   : > { %v6334_v47 = vunpack.i.h.bf16 %v6332_v59  ;;  %v6333_v17 = vunpack.i.l.bf16 %v6332_v59  ;;  %5853 = vmatprep.subr.bf16.mxu0 %v5852_v44  ;;  %5884 = vmatprep.subr.bf16.mxu1 %v5852_v44  ;;  %v8457_v37 = vpop.eup %6574 }
 0x8dc   : > { %5855 = vmatpush3.bf16.msra.mxu0 %v5852_v44  ;;  %v8460_v50 = vpop.eup %6576 }
 0x8dd   : > { %5857 = vmatprep.subr.bf16.mxu0 %v5856_v36  ;;  %v5860_v53 = vpack.c.bf16 %v6334_v47, %v6333_v17 }
 0x8de   : > { %3522 = vadd.xlane.f32.xlu1 %v8427_v43  ;;  %v6342_v2 = vpop.permute.xlu0 %6341 }
 0x8df   : > { %v6344_v19 = vunpack.i.h.bf16 %v6342_v2  ;;  %v6343_v38 = vunpack.i.l.bf16 %v6342_v2 }
 0x8e0   : > { %6351 = vrot.lane.b32.xlu0 %v7271_v58, %s6894_s11  ;;  %5859 = vmatpush3.bf16.msra.mxu0 %v5856_v36  ;;  %v5370_v15 = vpop.f32.mrb[48].mxu1 }
 0x8e1   : > { %5861 = vmatprep.subr.bf16.mxu0 %v5860_v53  ;;  %v2829_v27 = vpop.f32.mrb[49].mxu1  ;;  %v5868_v51 = vpack.c.bf16 %v6344_v19, %v6343_v38  ;;  %v8463_v4 = vpop.eup %6578 }
 0x8e2   : > { %5394 = vmatprep.mubr.msk.f32.mxu1 %vm659_vm1, %v2829_v27  ;;  %v8466_v20 = vpop.eup %6580 }
 0x8e3   : > { %5395 = vmatmul.mubr.msk.f32.vlgmr.msra.gmra.mrb[32].mxu1 %vm659_vm1, %v5370_v15  ;;  %v8469_v24 = vpop.eup %6582 }
 0x8e4   : > { %5892 = vmatpush3.bf16.msra.mxu1 %v5852_v44  ;;  %5863 = vmatpush3.bf16.msra.mxu0 %v5860_v53 }
 0x8e5   : > { %5885 = vmatprep.subr.bf16.mxu1 %v5856_v36  ;;  %5865 = vmatprep.subr.bf16.mxu0 %v5864_v28 }
 0x8e8   : > { %5893 = vmatpush3.bf16.msra.mxu1 %v5856_v36  ;;  %5867 = vmatpush3.bf16.msra.mxu0 %v5864_v28 }
 0x8e9   : > { %5886 = vmatprep.subr.bf16.mxu1 %v5860_v53  ;;  %5869 = vmatprep.subr.bf16.mxu0 %v5868_v51 }
 0x8ea   : > { %v5373_v58 = vpop.f32.mrb[50].mxu1 }
 0x8eb   : > { %v2839_v42 = vpop.f32.mrb[51].mxu1 }
 0x8ec   : > { %5894 = vmatpush3.bf16.msra.mxu1 %v5860_v53  ;;  %5871 = vmatpush3.bf16.msra.mxu0 %v5868_v51 }
 0x8ed   : > { %5397 = vmatprep.mubr.msk.f32.mxu1 %vm659_vm1, %v2839_v42  ;;  %5887 = vmatprep.subr.bf16.mxu1 %v5864_v28 }
 0x8ee   : > { %5873 = vmatprep.subr.bf16.mxu0 %v5872_v13  ;;  %5398 = vmatmul.mubr.msk.f32.gmra.mrb[34].mxu1 %vm659_vm1, %v5373_v58  ;;  %v5376_v45 = vpop.f32.mrb[52].mxu1 }
 0x8ef   : > { %6356 = vrot.lane.b32.xlu1 %v7281_v62, %s6894_s11  ;;  %v2849_v9 = vpop.f32.mrb[53].mxu1  ;;  %s6895_s11 = smov [#allocation10]  }
 0x8f0   : > { %5895 = vmatpush3.bf16.msra.mxu1 %v5864_v28  ;;  %5875 = vmatpush3.bf16.msra.mxu0 %v5872_v13  ;;  %s6806_s13 = sshll.u32 %s6895_s11, 4  ;;  %s6807_s13 = int_to_ptr.vmem [resolvable:$false] %s6806_s13 }
 0x8f1   : > { %5400 = vmatprep.mubr.msk.f32.mxu1 %vm659_vm1, %v2849_v9  ;;  %5888 = vmatprep.subr.bf16.mxu1 %v5868_v51  ;;  %s6808_s19 = scalar_lea.vmem %s6807_s13, 4096  ;;  %p6809_p12 = scmp.lt.s32.totalorder %s8805_s24, %s6807_s13 }
 0x8f2   : > { %5401 = vmatmul.mubr.msk.f32.gmra.mrb[36].mxu1 %vm659_vm1, %v5376_v45  ;;  %p6810_p1 = scmp.lt.s32.totalorder %s6808_s19, %s6802_s15 }
 0x8f4   : > { %5896 = vmatpush3.bf16.msra.mxu1 %v5868_v51  ;;  %p6811_p2 = por %p6810_p1, %p6809_p12 }
 0x8f5   : > { %5889 = vmatprep.subr.bf16.mxu1 %v5872_v13 }
 0x8f6   : > { %v5379_v62 = vpop.f32.mrb[54].mxu1  ;;  %p6812_p4 = pnand %p6811_p2, %p6805_p7 }
 0x8f7   : > { %v2859_v11 = vpop.f32.mrb[55].mxu1 }
 0x8f8   : > { %5897 = vmatpush3.bf16.msra.mxu1 %v5872_v13  ;;  %5403 = vmatprep.mubr.msk.f32.mxu1 %vm659_vm1, %v2859_v11 }
 0x8f9   : > { %5404 = vmatmul.mubr.msk.f32.gmra.mrb[38].mxu1 %vm659_vm1, %v5379_v62 }
 0x8ff   : > { %3518 = vadd.xlane.f32.xlu0 %v8452_v7 }
 0x903   : > { %3524 = vadd.xlane.f32.xlu0 %v8457_v37 }
 0x907   : > { %3528 = vadd.xlane.f32.xlu0 %v8460_v50 }
 0x90b   : > { %3530 = vadd.xlane.f32.xlu0 %v8463_v4 }
 0x90f   : > { %3532 = vadd.xlane.f32.xlu0 %v8466_v20 }
 0x913   : > { %3526 = vadd.xlane.f32.xlu1 %v8469_v24 }
 0x916   : > { %v5382_v39 = vpop.f32.mrb[56].mxu1 }
 0x917   : > { %v2869_v33 = vpop.f32.mrb[57].mxu1 }
 0x918   : > { %5406 = vmatprep.mubr.msk.f32.mxu1 %vm659_vm1, %v2869_v33 }
 0x919   : > { %5407 = vmatmul.mubr.msk.f32.gmra.mrb[40].mxu1 %vm659_vm1, %v5382_v39 }
 0x91a   : > { %v5385_v10 = vpop.f32.mrb[58].mxu1 }
 0x91b   : > { %v2879_v21 = vpop.f32.mrb[59].mxu1 }
 0x91c   : > { %5409 = vmatprep.mubr.msk.f32.mxu1 %vm659_vm1, %v2879_v21 }
 0x91d   : > { %5410 = vmatmul.mubr.msk.f32.gmra.mrb[42].mxu1 %vm659_vm1, %v5385_v10 }
 0x91e   : > { %v5388_v12 = vpop.f32.mrb[60].mxu1 }
 0x91f   : > { %v2889_v54 = vpop.f32.mrb[61].mxu1 }
 0x920   : > { %5412 = vmatprep.mubr.msk.f32.mxu1 %vm659_vm1, %v2889_v54 }
 0x921   : > { %5413 = vmatmul.mubr.msk.f32.gmra.mrb[44].mxu1 %vm659_vm1, %v5388_v12 }
 0x922   : > { %v5391_v26 = vpop.f32.mrb[62].mxu1 }
 0x923   : > { %v2899_v22 = vpop.f32.mrb[63].mxu1 }
 0x924   : > { %5415 = vmatprep.mubr.msk.f32.mxu1 %vm659_vm1, %v2899_v22 }
 0x925   : > { %5416 = vmatmul.mubr.msk.f32.gmra.mrb[46].mxu1 %vm659_vm1, %v5391_v26 }
 0x947   : > { %v3503_v3 = vpop.xlane.xlu1 %3502 }
 0x948   : > { %6584 = vrcp.f32 %v3503_v3 }
 0x94b   : > { %v3505_v44 = vpop.xlane.xlu0 %3504 }
 0x94c   : > { %6586 = vrcp.f32 %v3505_v44 }
 0x952   : > { %v6585_v41 = vpop.eup %6584 }
 0x953   : > { %v3509_v59 = vpop.xlane.xlu1 %3508  ;;  %v3535_v36 = vmul.f32 %v6585_v41, %v8382_v29 }
 0x955   : > { %5506 = vmatprep.mubr.f32.mxu0 %v3535_v36 }
 0x956   : > { %v6587_v18 = vpop.eup %6586 }
 0x957   : > { %v3507_v47 = vpop.xlane.xlu1 %3506  ;;  %v3511_v17 = vpop.xlane.xlu0 %3510  ;;  %v3537_v58 = vmul.f32 %v6587_v18, %v8386_v1 }
 0x958   : > { %6588 = vrcp.f32 %v3507_v47 }
 0x959   : > { %6590 = vrcp.f32 %v3509_v59 }
 0x95a   : > { %6592 = vrcp.f32 %v3511_v17 }
 0x95b   : > { %v3513_v32 = vpop.xlane.xlu1 %3512  ;;  %v6352_v46 = vpop.permute.xlu0 %6351 }
 0x95c   : > { %v6354_v61 = vunpack.i.h.bf16 %v6352_v46  ;;  %v6353_v53 = vunpack.i.l.bf16 %v6352_v46  ;;  %6594 = vrcp.f32 %v3513_v32 }
 0x95e   : > { %v5876_v2 = vpack.c.bf16 %v6354_v61, %v6353_v53  ;;  %v8515_v61 = vld [vmem:[%s8859_s5] ss:$0 sm:$0xff] }
 0x95f   : > { %v3517_v15 = vpop.xlane.xlu1 %3516 }
 0x960   : > { %5877 = vmatprep.subr.bf16.mxu0 %v5876_v2  ;;  %5890 = vmatprep.subr.bf16.mxu1 %v5876_v2 }
 0x961   : > { %5879 = vmatpush3.bf16.msra.mxu0 %v5876_v2  ;;  %5898 = vmatpush3.bf16.msra.mxu1 %v5876_v2 }
 0x962   : > { %v6589_v6 = vpop.eup %6588 }
 0x963   : > { %v3515_v27 = vpop.xlane.xlu1 %3514  ;;  %v6591_v42 = vpop.eup %6590  ;;  %v3539_v49 = vmul.f32 %v6589_v6, %v8400_v30 }
 0x964   : > { %6596 = vrcp.f32 %v3515_v27  ;;  %v6593_v13 = vpop.eup %6592  ;;  %v3541_v45 = vmul.f32 %v6591_v42, %v8394_v14  ;;  %v6674_v42 = vld [vmem:[%s7154_s27 + $0x18] sm:$0xff] }
 0x965   : > { %6598 = vrcp.f32 %v3517_v15  ;;  %v3543_v56 = vmul.f32 %v6593_v13, %v8404_v31 }
 0x966   : > { %v6595_v9 = vpop.eup %6594 }
 0x967   : > { %v3521_v28 = vpop.xlane.xlu1 %3520  ;;  %v3545_v25 = vmul.f32 %v6595_v9, %v8409_v35 }
 0x968   : > { %6600 = vrcp.f32 %v3521_v28  ;;  %v6672_v28 = vld [vmem:[%s7154_s27 + $0x8] sm:$0xff] }
 0x96b   : > { %v3523_v19 = vpop.xlane.xlu1 %3522 }
 0x96c   : > { %6602 = vrcp.f32 %v3523_v19 }
 0x96e   : > { %v6597_v0 = vpop.eup %6596 }
 0x96f   : > { %v6357_v29 = vpop.permute.xlu1 %6356  ;;  %v6599_v55 = vpop.eup %6598  ;;  %v3547_v62 = vmul.f32 %v6597_v0, %v8421_v5 }
 0x970   : > { %v6359_v38 = vunpack.i.h.bf16 %v6357_v29  ;;  %v6358_v48 = vunpack.i.l.bf16 %v6357_v29  ;;  %v3549_v1 = vmul.f32 %v6599_v55, %v8416_v16 }
 0x972   : > { %v5880_v51 = vpack.c.bf16 %v6359_v38, %v6358_v48  ;;  %v6601_v11 = vpop.eup %6600  ;;  %v6673_v38 = vld [vmem:[%s7154_s27] sm:$0xff] }
 0x973   : > { %v3553_v5 = vmul.f32 %v6601_v11, %v8424_v52 }
 0x974   : > { %5881 = vmatprep.subr.bf16.mxu0 %v5880_v51  ;;  %5891 = vmatprep.subr.bf16.mxu1 %v5880_v51 }
 0x975   : > { %5883 = vmatpush3.bf16.msra.mxu0 %v5880_v51  ;;  %5899 = vmatpush3.bf16.msra.mxu1 %v5880_v51 }
 0x976   : > { %v6603_v34 = vpop.eup %6602 }
 0x977   : > { %v3555_v16 = vmul.f32 %v6603_v34, %v8427_v43 }
 0x978   : > { %5507 = vmatmul.mubr.f32.vlgmr.msra.gmra.mrb[80].mxu0 %v3537_v58 }
 0x979   : > { %5509 = vmatprep.mubr.f32.mxu0 %v3539_v49 }
 0x97c   : > { %5510 = vmatmul.mubr.f32.gmra.mrb[82].mxu0 %v3541_v45  ;;  %v6675_v45 = vld [vmem:[%s7154_s27 + $0x10] sm:$0xff] }
 0x97d   : > { %5512 = vmatprep.mubr.f32.mxu0 %v3543_v56 }
 0x980   : > { %5513 = vmatmul.mubr.f32.gmra.mrb[84].mxu0 %v3545_v25 }
 0x981   : > { %5515 = vmatprep.mubr.f32.mxu0 %v3547_v62 }
 0x984   : > { %5516 = vmatmul.mubr.f32.gmra.mrb[86].mxu0 %v3549_v1  ;;  %v6676_v1 = vld [vmem:[%s7154_s27 + $0x28] sm:$0xff] }
 0x98c   : > { %v3519_v30 = vpop.xlane.xlu0 %3518 }
 0x98d   : > { %6604 = vrcp.f32 %v3519_v30 }
 0x990   : > { %v3525_v14 = vpop.xlane.xlu0 %3524 }
 0x991   : > { %6606 = vrcp.f32 %v3525_v14 }
 0x994   : > { %v3529_v31 = vpop.xlane.xlu0 %3528 }
 0x997   : > { %v6605_v63 = vpop.eup %6604 }
 0x998   : > { %v3531_v8 = vpop.xlane.xlu0 %3530  ;;  %v3551_v35 = vmul.f32 %v6605_v63, %v8452_v7 }
 0x999   : > { %6608 = vrcp.f32 %v3531_v8 }
 0x99a   : > { %5518 = vmatprep.mubr.f32.mxu0 %v3551_v35 }
 0x99b   : > { %v6607_v60 = vpop.eup %6606  ;;  %5519 = vmatmul.mubr.f32.gmra.mrb[88].mxu0 %v3553_v5 }
 0x99c   : > { %v3533_v57 = vpop.xlane.xlu0 %3532  ;;  %5521 = vmatprep.mubr.f32.mxu0 %v3555_v16  ;;  %v3557_v40 = vmul.f32 %v6607_v60, %v8457_v37  ;;  %v610_v37 = vld [vmem:[#allocation8 + $0x18] sm:$0xff] }
 0x99d   : > { %6610 = vrcp.f32 %v3533_v57  ;;  %5530 = vmatprep.subr.mxu1 %v610_v37  ;;  %v6678_v16 = vld [vmem:[%s7154_s27 + $0x38] sm:$0xff]  ;;  %v6679_v57 = vld [vmem:[%s7154_s27 + $0x30] sm:$0xff] }
 0x99e   : > { %6612 = vrcp.f32 %v3529_v31  ;;  %v6677_v31 = vld [vmem:[%s7154_s27 + $0x20] sm:$0xff] }
 0x99f   : > { %5522 = vmatmul.mubr.f32.gmra.mrb[90].mxu0 %v3557_v40 }
 0x9a0   : > { %v3527_v23 = vpop.xlane.xlu1 %3526 }
 0x9a1   : > { %6614 = vrcp.f32 %v3527_v23 }
 0x9a3   : > { %v6609_v39 = vpop.eup %6608 }
 0x9a4   : > { %v3563_v7 = vmul.f32 %v6609_v39, %v8463_v4 }
 0x9a6   : > { %5527 = vmatprep.mubr.f32.mxu1 %v3563_v7 }
 0x9a7   : > { %v6611_v33 = vpop.eup %6610 }
 0x9a8   : > { %v3565_v52 = vmul.f32 %v6611_v33, %v8466_v20  ;;  %v6613_v10 = vpop.eup %6612 }
 0x9a9   : > { %v3561_v12 = vmul.f32 %v6613_v10, %v8460_v50 }
 0x9aa   : > { %5528 = vmatmul.mubr.f32.vlgmr.msra.gmra.mrb[64].mxu1 %v3565_v52 }
 0x9ab   : > { %v6615_v43 = vpop.eup %6614  ;;  %5531 = vmatpush3.msra.mxu1 %v610_v37  ;;  %v6681_v37 = vld [vmem:[%s7154_s27 + $0x40] sm:$0xff] }
 0x9ac   : > { %v3559_v21 = vmul.f32 %v6615_v43, %v8469_v24 }
 0x9ae   : > { %5524 = vmatprep.mubr.f32.mxu0 %v3559_v21  ;;  %v6680_v21 = vld [vmem:[%s7154_s27 + $0x48] sm:$0xff] }
 0x9af   : > { %5525 = vmatmul.mubr.f32.gmra.mrb[92].mxu0 %v3561_v12 }
 0xa4b   : > { %v5508_v54 = vpop.f32.mrb[80].mxu0 }
 0xa4c   : > { %v3680_v26 = vpop.f32.mrb[81].mxu0 }
 0xa4d   : > { %5532 = vmatprep.mubr.msk.f32.mxu1 %vm659_vm1, %v3680_v26 }
 0xa4e   : > { %5533 = vmatmul.mubr.msk.f32.vlgmr.msra.gmra.mrb[32].mxu1 %vm659_vm1, %v5508_v54 }
 0xa4f   : > { %v5511_v4 = vpop.f32.mrb[82].mxu0 }
 0xa50   : > { %v3690_v20 = vpop.f32.mrb[83].mxu0 }
 0xa51   : > { %5535 = vmatprep.mubr.msk.f32.mxu1 %vm659_vm1, %v3690_v20 }
 0xa52   : > { %5536 = vmatmul.mubr.msk.f32.gmra.mrb[34].mxu1 %vm659_vm1, %v5511_v4 }
 0xa53   : > { %v5514_v24 = vpop.f32.mrb[84].mxu0 }
 0xa54   : > { %v3700_v22 = vpop.f32.mrb[85].mxu0 }
 0xa55   : > { %5538 = vmatprep.mubr.msk.f32.mxu1 %vm659_vm1, %v3700_v22 }
 0xa56   : > { %5539 = vmatmul.mubr.msk.f32.gmra.mrb[36].mxu1 %vm659_vm1, %v5514_v24 }
 0xa57   : > { %v5517_v50 = vpop.f32.mrb[86].mxu0 }
 0xa58   : > { %v3710_v3 = vpop.f32.mrb[87].mxu0 }
 0xa59   : > { %5541 = vmatprep.mubr.msk.f32.mxu1 %vm659_vm1, %v3710_v3  ;;  %v6682_v3 = vld [vmem:[%s7154_s27 + $0x58] sm:$0xff] }
 0xa5a   : > { %5542 = vmatmul.mubr.msk.f32.gmra.mrb[38].mxu1 %vm659_vm1, %v5517_v50 }
 0xa6e   : > { %v5520_v41 = vpop.f32.mrb[88].mxu0 }
 0xa6f   : > { %v3720_v44 = vpop.f32.mrb[89].mxu0 }
 0xa70   : > { %5544 = vmatprep.mubr.msk.f32.mxu1 %vm659_vm1, %v3720_v44  ;;  %v6683_v44 = vld [vmem:[%s7154_s27 + $0x50] sm:$0xff] }
 0xa71   : > { %5545 = vmatmul.mubr.msk.f32.gmra.mrb[40].mxu1 %vm659_vm1, %v5520_v41 }
 0xa72   : > { %v5523_v59 = vpop.f32.mrb[90].mxu0 }
 0xa73   : > { %v3730_v36 = vpop.f32.mrb[91].mxu0 }
 0xa74   : > { %5547 = vmatprep.mubr.msk.f32.mxu1 %vm659_vm1, %v3730_v36 }
 0xa75   : > { %5548 = vmatmul.mubr.msk.f32.gmra.mrb[42].mxu1 %vm659_vm1, %v5523_v59 }
 0xa7d   : > { %v5529_v47 = vpop.f32.mrb[64].mxu1 }
 0xa7e   : > { %v3750_v17 = vpop.f32.mrb[65].mxu1 }
 0xa82   : > { %v5526_v32 = vpop.f32.mrb[92].mxu0 }
 0xa83   : > { %v3740_v46 = vpop.f32.mrb[93].mxu0 }
 0xa84   : > { %5550 = vmatprep.mubr.msk.f32.mxu1 %vm659_vm1, %v3740_v46 }
 0xa85   : > { %5551 = vmatmul.mubr.msk.f32.gmra.mrb[44].mxu1 %vm659_vm1, %v5526_v32 }
 0xa86   : > { %5553 = vmatprep.mubr.msk.f32.mxu1 %vm659_vm1, %v3750_v17 }
 0xa89   : > { %5554 = vmatmul.mubr.msk.f32.gmra.mrb[46].mxu1 %vm659_vm1, %v5529_v47 }
 0xb21   : > { %v5534_v53 = vpop.f32.mrb[32].mxu1 }
 0xb22   : > { %v3976_v2 = vadd.f32 %v5534_v53, %v8515_v61  ;;  %v3873_v15 = vpop.f32.mrb[33].mxu1 }
 0xb23   : > { %v3975_v27 = vadd.f32 %v8515_v61, %v3873_v15 }
 0xb24   : > { %v8520_v19 = vadd.f32 %v6672_v28, %v3976_v2  ;;  %v6684_v2 = vld [vmem:[%s7154_s27 + $0x68] sm:$0xff] }
 0xb25   : > { %v5537_v29 = vpop.f32.mrb[34].mxu1  ;;  %v8523_v48 = vadd.f32 %v6673_v38, %v3975_v27  ;;  %v6685_v27 = vld [vmem:[%s7154_s27 + $0x60] sm:$0xff] }
 0xb26   : > { %v3978_v51 = vadd.f32 %v5537_v29, %v8515_v61  ;;  %v3883_v18 = vpop.f32.mrb[35].mxu1  ;;  %v4010_v6 = vsel %vm413_vm0, %v8520_v19, 0.0 }
 0xb27   : > { %v3977_v58 = vadd.f32 %v8515_v61, %v3883_v18  ;;  %4011 = vadd.xlane.f32.xlu0 %v4010_v6  ;;  %v4007_v25 = vsel %vm413_vm0, %v8523_v48, 0.0 }
 0xb28   : > { %v8530_v49 = vadd.f32 %v6674_v42, %v3978_v51  ;;  %v6686_v42 = vld [vmem:[%s7154_s27 + $0x78] sm:$0xff] }
 0xb29   : > { %v5540_v13 = vpop.f32.mrb[36].mxu1  ;;  %v8533_v9 = vadd.f32 %v6675_v45, %v3977_v58  ;;  %v6687_v45 = vld [vmem:[%s7154_s27 + $0x70] sm:$0xff] }
 0xb2a   : > { %v3980_v56 = vadd.f32 %v5540_v13, %v8515_v61  ;;  %v3893_v0 = vpop.f32.mrb[37].mxu1  ;;  %v4016_v55 = vsel %vm413_vm0, %v8530_v49, 0.0 }
 0xb2b   : > { %v3979_v62 = vadd.f32 %v8515_v61, %v3893_v0  ;;  %4008 = vadd.xlane.f32.xlu0 %v4007_v25  ;;  %4017 = vadd.xlane.f32.xlu1 %v4016_v55  ;;  %v4013_v8 = vsel %vm413_vm0, %v8533_v9, 0.0 }
 0xb2c   : > { %v8542_v30 = vadd.f32 %v6676_v1, %v3980_v56 }
 0xb2d   : > { %v5543_v14 = vpop.f32.mrb[38].mxu1  ;;  %v8545_v11 = vadd.f32 %v6677_v31, %v3979_v62 }
 0xb2e   : > { %v3982_v34 = vadd.f32 %v5543_v14, %v8515_v61  ;;  %v3903_v63 = vpop.f32.mrb[39].mxu1  ;;  %v4022_v35 = vsel %vm413_vm0, %v8542_v30, 0.0 }
 0xb2f   : > { %v3981_v5 = vadd.f32 %v8515_v61, %v3903_v63  ;;  %4014 = vadd.xlane.f32.xlu0 %v4013_v8  ;;  %4023 = vadd.xlane.f32.xlu1 %v4022_v35  ;;  %v4019_v23 = vsel %vm413_vm0, %v8545_v11, 0.0 }
 0xb30   : > { %v8554_v60 = vadd.f32 %v6678_v16, %v3982_v34 }
 0xb31   : > { %v8557_v40 = vadd.f32 %v6679_v57, %v3981_v5 }
 0xb32   : > { %v4028_v39 = vsel %vm413_vm0, %v8554_v60, 0.0 }
 0xb33   : > { %4020 = vadd.xlane.f32.xlu0 %v4019_v23  ;;  %4029 = vadd.xlane.f32.xlu1 %v4028_v39  ;;  %v4025_v7 = vsel %vm413_vm0, %v8557_v40, 0.0 }
 0xb37   : > { %4026 = vadd.xlane.f32.xlu0 %v4025_v7 }
 0xb44   : > { %v5546_v33 = vpop.f32.mrb[40].mxu1 }
 0xb45   : > { %v3984_v52 = vadd.f32 %v5546_v33, %v8515_v61  ;;  %v3913_v10 = vpop.f32.mrb[41].mxu1 }
 0xb46   : > { %v3983_v43 = vadd.f32 %v8515_v61, %v3913_v10 }
 0xb47   : > { %v8568_v12 = vadd.f32 %v6680_v21, %v3984_v52 }
 0xb48   : > { %v8571_v54 = vadd.f32 %v6681_v37, %v3983_v43  ;;  %v5549_v26 = vpop.f32.mrb[42].mxu1 }
 0xb49   : > { %v3986_v4 = vadd.f32 %v5549_v26, %v8515_v61  ;;  %v3923_v20 = vpop.f32.mrb[43].mxu1  ;;  %v4034_v24 = vsel %vm413_vm0, %v8568_v12, 0.0 }
 0xb4a   : > { %v3985_v22 = vadd.f32 %v8515_v61, %v3923_v20  ;;  %4035 = vadd.xlane.f32.xlu1 %v4034_v24  ;;  %v4031_v50 = vsel %vm413_vm0, %v8571_v54, 0.0 }
 0xb4b   : > { %v8580_v41 = vadd.f32 %v6682_v3, %v3986_v4  ;;  %4032 = vadd.xlane.f32.xlu0 %v4031_v50 }
 0xb4c   : > { %v8583_v59 = vadd.f32 %v6683_v44, %v3985_v22 }
 0xb4d   : > { %v4040_v36 = vsel %vm413_vm0, %v8580_v41, 0.0 }
 0xb4e   : > { %4041 = vadd.xlane.f32.xlu1 %v4040_v36  ;;  %v4037_v47 = vsel %vm413_vm0, %v8583_v59, 0.0 }
 0xb4f   : > { %4038 = vadd.xlane.f32.xlu0 %v4037_v47 }
 0xb58   : > { %v5552_v17 = vpop.f32.mrb[44].mxu1 }
 0xb59   : > { %v3988_v32 = vadd.f32 %v5552_v17, %v8515_v61  ;;  %v3933_v46 = vpop.f32.mrb[45].mxu1 }
 0xb5a   : > { %v3987_v53 = vadd.f32 %v8515_v61, %v3933_v46 }
 0xb5b   : > { %v8592_v15 = vadd.f32 %v6684_v2, %v3988_v32 }
 0xb5c   : > { %v8595_v28 = vadd.f32 %v6685_v27, %v3987_v53  ;;  %v5555_v29 = vpop.f32.mrb[46].mxu1 }
 0xb5d   : > { %v3990_v38 = vadd.f32 %v5555_v29, %v8515_v61  ;;  %v3943_v51 = vpop.f32.mrb[47].mxu1  ;;  %v4046_v18 = vsel %vm413_vm0, %v8592_v15, 0.0 }
 0xb5e   : > { %v3989_v6 = vadd.f32 %v8515_v61, %v3943_v51  ;;  %4047 = vadd.xlane.f32.xlu1 %v4046_v18  ;;  %v4043_v58 = vsel %vm413_vm0, %v8595_v28, 0.0 }
 0xb5f   : > { %v8604_v13 = vadd.f32 %v6686_v42, %v3990_v38  ;;  %4044 = vadd.xlane.f32.xlu0 %v4043_v58 }
 0xb60   : > { %v8607_v56 = vadd.f32 %v6687_v45, %v3989_v6 }
 0xb61   : > { %v4052_v0 = vsel %vm413_vm0, %v8604_v13, 0.0 }
 0xb62   : > { %4053 = vadd.xlane.f32.xlu1 %v4052_v0  ;;  %v4049_v25 = vsel %vm413_vm0, %v8607_v56, 0.0 }
 0xb63   : > { %4050 = vadd.xlane.f32.xlu0 %v4049_v25 }
 0xbb4   : > { %v4012_v61 = vpop.xlane.xlu0 %4011 }
 0xbb5   : > { %v4057_v55 = vmul.f32 0.03125, %v4012_v61 }
 0xbb7   : > { %v8614_v62 = vsub.f32 %v8520_v19, %v4057_v55 }
 0xbb8   : > { %v4009_v1 = vpop.xlane.xlu0 %4008  ;;  %v4018_v14 = vpop.xlane.xlu1 %4017 }
 0xbb9   : > { %v4056_v31 = vmul.f32 0.03125, %v4009_v1  ;;  %v4059_v34 = vmul.f32 0.03125, %v4018_v14  ;;  %v4089_v63 = vmul.f32 %v8614_v62, %v8614_v62 }
 0xbbb   : > { %v8619_v8 = vsub.f32 %v8523_v48, %v4056_v31  ;;  %v8622_v35 = vsub.f32 %v8530_v49, %v4059_v34  ;;  %v4107_v5 = vsel %vm413_vm0, %v4089_v63, 0.0 }
 0xbbc   : > { %v4015_v16 = vpop.xlane.xlu0 %4014  ;;  %v4024_v57 = vpop.xlane.xlu1 %4023  ;;  %4108 = vadd.xlane.f32.xlu1 %v4107_v5 }
 0xbbd   : > { %v4058_v19 = vmul.f32 0.03125, %v4015_v16  ;;  %v4061_v23 = vmul.f32 0.03125, %v4024_v57  ;;  %v4091_v39 = vmul.f32 %v8622_v35, %v8622_v35  ;;  %v4088_v7 = vmul.f32 %v8619_v8, %v8619_v8 }
 0xbbf   : > { %v8630_v33 = vsub.f32 %v8533_v9, %v4058_v19  ;;  %v8633_v48 = vsub.f32 %v8542_v30, %v4061_v23  ;;  %v4113_v49 = vsel %vm413_vm0, %v4091_v39, 0.0  ;;  %v4104_v52 = vsel %vm413_vm0, %v4088_v7, 0.0 }
 0xbc0   : > { %v4021_v10 = vpop.xlane.xlu0 %4020  ;;  %v4030_v43 = vpop.xlane.xlu1 %4029  ;;  %4114 = vadd.xlane.f32.xlu1 %v4113_v49  ;;  %4105 = vadd.xlane.f32.xlu0 %v4104_v52 }
 0xbc1   : > { %v4060_v21 = vmul.f32 0.03125, %v4021_v10  ;;  %v4063_v37 = vmul.f32 0.03125, %v4030_v43  ;;  %v4093_v26 = vmul.f32 %v8633_v48, %v8633_v48  ;;  %v4090_v9 = vmul.f32 %v8630_v33, %v8630_v33 }
 0xbc3   : > { %v8642_v4 = vsub.f32 %v8545_v11, %v4060_v21  ;;  %v8645_v30 = vsub.f32 %v8554_v60, %v4063_v37  ;;  %v4119_v20 = vsel %vm413_vm0, %v4093_v26, 0.0  ;;  %v4110_v24 = vsel %vm413_vm0, %v4090_v9, 0.0 }
 0xbc4   : > { %v4027_v22 = vpop.xlane.xlu0 %4026  ;;  %4120 = vadd.xlane.f32.xlu1 %v4119_v20  ;;  %4111 = vadd.xlane.f32.xlu0 %v4110_v24 }
 0xbc5   : > { %v4062_v50 = vmul.f32 0.03125, %v4027_v22  ;;  %v4095_v3 = vmul.f32 %v8645_v30, %v8645_v30  ;;  %v4092_v44 = vmul.f32 %v8642_v4, %v8642_v4 }
 0xbc7   : > { %v8654_v11 = vsub.f32 %v8557_v40, %v4062_v50  ;;  %v4125_v60 = vsel %vm413_vm0, %v4095_v3, 0.0  ;;  %v4116_v36 = vsel %vm413_vm0, %v4092_v44, 0.0 }
 0xbc8   : > { %4126 = vadd.xlane.f32.xlu1 %v4125_v60  ;;  %4117 = vadd.xlane.f32.xlu0 %v4116_v36 }
 0xbc9   : > { %v4094_v47 = vmul.f32 %v8654_v11, %v8654_v11 }
 0xbcb   : > { %v4122_v17 = vsel %vm413_vm0, %v4094_v47, 0.0 }
 0xbcc   : > { %4123 = vadd.xlane.f32.xlu0 %v4122_v17 }
 0xbd7   : > { %v4036_v32 = vpop.xlane.xlu1 %4035 }
 0xbd8   : > { %v4065_v46 = vmul.f32 0.03125, %v4036_v32  ;;  %v4033_v53 = vpop.xlane.xlu0 %4032 }
 0xbd9   : > { %v4064_v2 = vmul.f32 0.03125, %v4033_v53 }
 0xbda   : > { %v8662_v27 = vsub.f32 %v8568_v12, %v4065_v46 }
 0xbdb   : > { %v8665_v40 = vsub.f32 %v8571_v54, %v4064_v2  ;;  %v4042_v29 = vpop.xlane.xlu1 %4041 }
 0xbdc   : > { %v4067_v38 = vmul.f32 0.03125, %v4042_v29  ;;  %v4039_v51 = vpop.xlane.xlu0 %4038  ;;  %v4097_v18 = vmul.f32 %v8662_v27, %v8662_v27  ;;  %v8712_v29 = vld [vmem:[%s8860_s6] ss:$0 sm:$0xff] }
 0xbdd   : > { %v4066_v6 = vmul.f32 0.03125, %v4039_v51  ;;  %v4096_v58 = vmul.f32 %v8665_v40, %v8665_v40 }
 0xbde   : > { %v8672_v42 = vsub.f32 %v8580_v41, %v4067_v38  ;;  %v4131_v45 = vsel %vm413_vm0, %v4097_v18, 0.0 }
 0xbdf   : > { %v8676_v12 = vsub.f32 %v8583_v59, %v4066_v6  ;;  %4132 = vadd.xlane.f32.xlu1 %v4131_v45  ;;  %v4128_v54 = vsel %vm413_vm0, %v4096_v58, 0.0  ;;  %v8718_v58 = vld [vmem:[%s8861_s7] ss:$0 sm:$0xff] }
 0xbe0   : > { %4129 = vadd.xlane.f32.xlu0 %v4128_v54  ;;  %v4099_v0 = vmul.f32 %v8672_v42, %v8672_v42 }
 0xbe1   : > { %v4098_v25 = vmul.f32 %v8676_v12, %v8676_v12 }
 0xbe2   : > { %v4137_v61 = vsel %vm413_vm0, %v4099_v0, 0.0 }
 0xbe3   : > { %4138 = vadd.xlane.f32.xlu1 %v4137_v61  ;;  %v4134_v41 = vsel %vm413_vm0, %v4098_v25, 0.0 }
 0xbe4   : > { %4135 = vadd.xlane.f32.xlu0 %v4134_v41 }
 0xbeb   : > { %v4048_v55 = vpop.xlane.xlu1 %4047 }
 0xbec   : > { %v4069_v1 = vmul.f32 0.03125, %v4048_v55  ;;  %v4045_v59 = vpop.xlane.xlu0 %4044 }
 0xbed   : > { %v4068_v14 = vmul.f32 0.03125, %v4045_v59 }
 0xbee   : > { %v8686_v31 = vsub.f32 %v8592_v15, %v4069_v1 }
 0xbef   : > { %v8689_v34 = vsub.f32 %v8595_v28, %v4068_v14  ;;  %v4054_v63 = vpop.xlane.xlu1 %4053 }
 0xbf0   : > { %v4071_v5 = vmul.f32 0.03125, %v4054_v63  ;;  %v4051_v16 = vpop.xlane.xlu0 %4050  ;;  %v4101_v57 = vmul.f32 %v8686_v31, %v8686_v31 }
 0xbf1   : > { %v4070_v19 = vmul.f32 0.03125, %v4051_v16  ;;  %v4100_v23 = vmul.f32 %v8689_v34, %v8689_v34 }
 0xbf2   : > { %v8696_v39 = vsub.f32 %v8604_v13, %v4071_v5  ;;  %v4143_v7 = vsel %vm413_vm0, %v4101_v57, 0.0 }
 0xbf3   : > { %v8700_v15 = vsub.f32 %v8607_v56, %v4070_v19  ;;  %4144 = vadd.xlane.f32.xlu1 %v4143_v7  ;;  %v4140_v28 = vsel %vm413_vm0, %v4100_v23, 0.0 }
 0xbf4   : > { %4141 = vadd.xlane.f32.xlu0 %v4140_v28  ;;  %v4103_v49 = vmul.f32 %v8696_v39, %v8696_v39 }
 0xbf5   : > { %v4102_v52 = vmul.f32 %v8700_v15, %v8700_v15 }
 0xbf6   : > { %v4149_v10 = vsel %vm413_vm0, %v4103_v49, 0.0 }
 0xbf7   : > { %4150 = vadd.xlane.f32.xlu1 %v4149_v10  ;;  %v4146_v13 = vsel %vm413_vm0, %v4102_v52, 0.0 }
 0xbf8   : > { %4147 = vadd.xlane.f32.xlu0 %v4146_v13 }
 0xc49   : > { %v4109_v43 = vpop.xlane.xlu1 %4108 }
 0xc4a   : > { %v4153_v21 = vmul.f32 0.03125, %v4109_v43 }
 0xc4c   : > { %v4169_v56 = vadd.f32 1e-05, %v4153_v21 }
 0xc4d   : > { %v4115_v37 = vpop.xlane.xlu1 %4114  ;;  %v4106_v26 = vpop.xlane.xlu0 %4105 }
 0xc4e   : > { %6616 = vrsqrt.f32 %v4169_v56  ;;  %v4155_v9 = vmul.f32 0.03125, %v4115_v37  ;;  %v4152_v20 = vmul.f32 0.03125, %v4106_v26 }
 0xc50   : > { %v4171_v24 = vadd.f32 1e-05, %v4155_v9  ;;  %v4168_v22 = vadd.f32 1e-05, %v4152_v20 }
 0xc51   : > { %v4121_v50 = vpop.xlane.xlu1 %4120  ;;  %v4112_v3 = vpop.xlane.xlu0 %4111 }
 0xc52   : > { %6618 = vrsqrt.f32 %v4171_v24  ;;  %v4157_v44 = vmul.f32 0.03125, %v4121_v50  ;;  %v4154_v60 = vmul.f32 0.03125, %v4112_v3 }
 0xc53   : > { %6620 = vrsqrt.f32 %v4168_v22 }
 0xc54   : > { %v4173_v36 = vadd.f32 1e-05, %v4157_v44  ;;  %v4170_v47 = vadd.f32 1e-05, %v4154_v60 }
 0xc55   : > { %v4127_v17 = vpop.xlane.xlu1 %4126  ;;  %v4118_v32 = vpop.xlane.xlu0 %4117 }
 0xc56   : > { %6622 = vrsqrt.f32 %v4173_v36  ;;  %v4159_v46 = vmul.f32 0.03125, %v4127_v17  ;;  %v4156_v53 = vmul.f32 0.03125, %v4118_v32 }
 0xc57   : > { %6624 = vrsqrt.f32 %v4170_v47 }
 0xc58   : > { %v6617_v2 = vpop.eup %6616  ;;  %v4175_v38 = vadd.f32 1e-05, %v4159_v46  ;;  %v4172_v51 = vadd.f32 1e-05, %v4156_v53 }
 0xc59   : > { %v4201_v18 = vmul.f32 %v6617_v2, %v8614_v62  ;;  %v4124_v6 = vpop.xlane.xlu0 %4123 }
 0xc5a   : > { %6626 = vrsqrt.f32 %v4175_v38  ;;  %v4158_v45 = vmul.f32 0.03125, %v4124_v6 }
 0xc5b   : > { %v4224_v54 = vmul.f32 %v8712_v29, %v4201_v18  ;;  %6628 = vrsqrt.f32 %v4172_v51 }
 0xc5c   : > { %v6619_v0 = vpop.eup %6618  ;;  %v4174_v25 = vadd.f32 1e-05, %v4158_v45 }
 0xc5d   : > { %v6621_v61 = vpop.eup %6620  ;;  %v4247_v41 = vadd.f32 %v8718_v58, %v4224_v54  ;;  %v4203_v55 = vmul.f32 %v6619_v0, %v8622_v35 }
 0xc5e   : > { %v4200_v62 = vmul.f32 %v6621_v61, %v8619_v8  ;;  %6630 = vrsqrt.f32 %v4174_v25 }
 0xc5f   : > { %4263 = vst.msk [vmem:[%s8726_s16 + $0x8] sm:$0xff] %vm413_vm0, %v4247_v41  ;;  %v4226_v1 = vmul.f32 %v8712_v29, %v4203_v55 }
 0xc60   : > { %v6623_v59 = vpop.eup %6622  ;;  %v4223_v14 = vmul.f32 %v8712_v29, %v4200_v62 }
 0xc61   : > { %v6625_v63 = vpop.eup %6624  ;;  %v4249_v35 = vadd.f32 %v8718_v58, %v4226_v1  ;;  %v4205_v8 = vmul.f32 %v6623_v59, %v8633_v48 }
 0xc62   : > { %v4246_v5 = vadd.f32 %v8718_v58, %v4223_v14  ;;  %v4202_v16 = vmul.f32 %v6625_v63, %v8630_v33 }
 0xc63   : > { %4265 = vst.msk [vmem:[%s8726_s16 + $0x18] sm:$0xff] %vm413_vm0, %v4249_v35  ;;  %v4228_v57 = vmul.f32 %v8712_v29, %v4205_v8 }
 0xc64   : > { %v6627_v19 = vpop.eup %6626  ;;  %4262 = vst.msk [vmem:[%s8726_s16] sm:$0xff] %vm413_vm0, %v4246_v5  ;;  %v4225_v23 = vmul.f32 %v8712_v29, %v4202_v16 }
 0xc65   : > { %v6629_v7 = vpop.eup %6628  ;;  %v4251_v28 = vadd.f32 %v8718_v58, %v4228_v57  ;;  %v4207_v48 = vmul.f32 %v6627_v19, %v8645_v30 }
 0xc66   : > { %v4248_v49 = vadd.f32 %v8718_v58, %v4225_v23  ;;  %v4204_v33 = vmul.f32 %v6629_v7, %v8642_v4 }
 0xc67   : > { %4267 = vst.msk [vmem:[%s8726_s16 + $0x28] sm:$0xff] %vm413_vm0, %v4251_v28  ;;  %v4230_v52 = vmul.f32 %v8712_v29, %v4207_v48 }
 0xc68   : > { %v6631_v10 = vpop.eup %6630  ;;  %4264 = vst.msk [vmem:[%s8726_s16 + $0x10] sm:$0xff] %vm413_vm0, %v4248_v49  ;;  %v4227_v13 = vmul.f32 %v8712_v29, %v4204_v33 }
 0xc69   : > { %v4253_v43 = vadd.f32 %v8718_v58, %v4230_v52  ;;  %v4206_v21 = vmul.f32 %v6631_v10, %v8654_v11 }
 0xc6a   : > { %v4250_v30 = vadd.f32 %v8718_v58, %v4227_v13 }
 0xc6b   : > { %4269 = vst.msk [vmem:[%s8726_s16 + $0x38] sm:$0xff] %vm413_vm0, %v4253_v43  ;;  %v4229_v4 = vmul.f32 %v8712_v29, %v4206_v21 }
 0xc6c   : > { %4266 = vst.msk [vmem:[%s8726_s16 + $0x20] sm:$0xff] %vm413_vm0, %v4250_v30  ;;  %v4133_v56 = vpop.xlane.xlu1 %4132 }
 0xc6d   : > { %v4252_v37 = vadd.f32 %v8718_v58, %v4229_v4  ;;  %v4161_v26 = vmul.f32 0.03125, %v4133_v56  ;;  %v4130_v9 = vpop.xlane.xlu0 %4129 }
 0xc6e   : > { %v4160_v20 = vmul.f32 0.03125, %v4130_v9 }
 0xc6f   : > { %4268 = vst.msk [vmem:[%s8726_s16 + $0x30] sm:$0xff] %vm413_vm0, %v4252_v37  ;;  %v4177_v24 = vadd.f32 1e-05, %v4161_v26 }
 0xc70   : > { %v4176_v22 = vadd.f32 1e-05, %v4160_v20  ;;  %v4139_v50 = vpop.xlane.xlu1 %4138 }
 0xc71   : > { %6632 = vrsqrt.f32 %v4177_v24  ;;  %v4163_v11 = vmul.f32 0.03125, %v4139_v50  ;;  %v4136_v3 = vpop.xlane.xlu0 %4135 }
 0xc72   : > { %6634 = vrsqrt.f32 %v4176_v22  ;;  %v4162_v44 = vmul.f32 0.03125, %v4136_v3 }
 0xc73   : > { %v4179_v60 = vadd.f32 1e-05, %v4163_v11 }
 0xc74   : > { %v4178_v36 = vadd.f32 1e-05, %v4162_v44 }
 0xc75   : > { %6636 = vrsqrt.f32 %v4179_v60 }
 0xc76   : > { %6638 = vrsqrt.f32 %v4178_v36 }
 0xc7b   : > { %v6633_v47 = vpop.eup %6632 }
 0xc7c   : > { %v6635_v17 = vpop.eup %6634  ;;  %v4209_v32 = vmul.f32 %v6633_v47, %v8662_v27 }
 0xc7d   : > { %v4208_v46 = vmul.f32 %v6635_v17, %v8665_v40 }
 0xc7e   : > { %v4232_v53 = vmul.f32 %v8712_v29, %v4209_v32 }
 0xc7f   : > { %v6637_v2 = vpop.eup %6636  ;;  %v4231_v38 = vmul.f32 %v8712_v29, %v4208_v46 }
 0xc80   : > { %v6639_v51 = vpop.eup %6638  ;;  %v4255_v18 = vadd.f32 %v8718_v58, %v4232_v53  ;;  %v4211_v6 = vmul.f32 %v6637_v2, %v8672_v42  ;;  %v4145_v45 = vpop.xlane.xlu1 %4144 }
 0xc81   : > { %v4254_v54 = vadd.f32 %v8718_v58, %v4231_v38  ;;  %v4210_v0 = vmul.f32 %v6639_v51, %v8676_v12  ;;  %v4165_v27 = vmul.f32 0.03125, %v4145_v45  ;;  %v4142_v25 = vpop.xlane.xlu0 %4141 }
 0xc82   : > { %4271 = vst.msk [vmem:[%s8726_s16 + $0x48] sm:$0xff] %vm413_vm0, %v4255_v18  ;;  %v4234_v40 = vmul.f32 %v8712_v29, %v4211_v6  ;;  %v4164_v61 = vmul.f32 0.03125, %v4142_v25 }
 0xc83   : > { %4270 = vst.msk [vmem:[%s8726_s16 + $0x40] sm:$0xff] %vm413_vm0, %v4254_v54  ;;  %v4233_v41 = vmul.f32 %v8712_v29, %v4210_v0  ;;  %v4181_v55 = vadd.f32 1e-05, %v4165_v27 }
 0xc84   : > { %v4257_v42 = vadd.f32 %v8718_v58, %v4234_v40  ;;  %v4180_v62 = vadd.f32 1e-05, %v4164_v61  ;;  %v4151_v1 = vpop.xlane.xlu1 %4150 }
 0xc85   : > { %v4256_v12 = vadd.f32 %v8718_v58, %v4233_v41  ;;  %6640 = vrsqrt.f32 %v4181_v55  ;;  %v4167_v59 = vmul.f32 0.03125, %v4151_v1  ;;  %v4148_v14 = vpop.xlane.xlu0 %4147 }
 0xc86   : > { %4273 = vst.msk [vmem:[%s8726_s16 + $0x58] sm:$0xff] %vm413_vm0, %v4257_v42  ;;  %6642 = vrsqrt.f32 %v4180_v62  ;;  %v4166_v63 = vmul.f32 0.03125, %v4148_v14 }
 0xc87   : > { %4272 = vst.msk [vmem:[%s8726_s16 + $0x50] sm:$0xff] %vm413_vm0, %v4256_v12  ;;  %v4183_v35 = vadd.f32 1e-05, %v4167_v59 }
 0xc88   : > { %v4182_v8 = vadd.f32 1e-05, %v4166_v63 }
 0xc89   : > { %6644 = vrsqrt.f32 %v4183_v35 }
 0xc8a   : > { %6646 = vrsqrt.f32 %v4182_v8 }
 0xc8f   : > { %v6641_v5 = vpop.eup %6640 }
 0xc90   : > { %v6643_v16 = vpop.eup %6642  ;;  %v4213_v57 = vmul.f32 %v6641_v5, %v8686_v31 }
 0xc91   : > { %v4212_v19 = vmul.f32 %v6643_v16, %v8689_v34 }
 0xc92   : > { %v4236_v23 = vmul.f32 %v8712_v29, %v4213_v57 }
 0xc93   : > { %v6645_v7 = vpop.eup %6644  ;;  %v4235_v28 = vmul.f32 %v8712_v29, %v4212_v19 }
 0xc94   : > { %v6647_v48 = vpop.eup %6646  ;;  %v4259_v49 = vadd.f32 %v8718_v58, %v4236_v23  ;;  %v4215_v33 = vmul.f32 %v6645_v7, %v8696_v39 }
 0xc95   : > { %v4258_v52 = vadd.f32 %v8718_v58, %v4235_v28  ;;  %v4214_v10 = vmul.f32 %v6647_v48, %v8700_v15 }
 0xc96   : > { %4275 = vst.msk [vmem:[%s8726_s16 + $0x68] sm:$0xff] %vm413_vm0, %v4259_v49  ;;  %v4238_v31 = vmul.f32 %v8712_v29, %v4215_v33 }
 0xc97   : > { %4274 = vst.msk [vmem:[%s8726_s16 + $0x60] sm:$0xff] %vm413_vm0, %v4258_v52  ;;  %v4237_v34 = vmul.f32 %v8712_v29, %v4214_v10 }
 0xc98   : > { %v4261_v13 = vadd.f32 %v8718_v58, %v4238_v31 }
 0xc99   : > { %v4260_v39 = vadd.f32 %v8718_v58, %v4237_v34 }
 0xc9a   : > { %4277 = vst.msk [vmem:[%s8726_s16 + $0x78] sm:$0xff] %vm413_vm0, %v4261_v13 }
 0xc9b   : > { %4276 = vst.msk [vmem:[%s8726_s16 + $0x70] sm:$0xff] %vm413_vm0, %v4260_v39 }
 0xc9c   : > { %6815 = shalt.err (!%p6812_p4)
}
 0xc9d   : > { %s6816_s27 = scalar_lea.hbm %s8803_s14, 2048  ;;  %s6820_s18 = scalar_lea.hbm %s8862_s8, 4096 }
 0xc9e   : > { %p6817_p9 = scmp.ne.s32.totalorder %s8803_s14, %s6816_s27  ;;  %p6821_p8 = scmp.lt.u32.totalorder %s8803_s14, %s8862_s8 }
 0xc9f   : > { %p6822_p13 = scmp.lt.u32.totalorder %s6820_s18, %s6816_s27  ;;  %p6824_p10 = scmp.lt.u32.totalorder %s6816_s27, %s8803_s14 }
 0xca0   : > { %p6818_p0 = pnand %p6817_p9, %p7097_p5 }
 0xca1   : > { %p6823_p6 = por %p6822_p13, %p6821_p8 }
 0xca2   : > { %p6819_p11 = pneg %p6818_p0 }
 0xca3   : > { %p6825_p3 = por %p6824_p10, %p6823_p6 }
 0xca5   : > { %p6826_p7 = pnand %p6825_p3, %p6819_p11 }
 0xca7   : > { %6829 = shalt.err (!%p6826_p7)
}
 0xca8   : > { %s6896_s25 = smov 128   ;;  %s6897_s20 = smov 8  }
 0xca9   : > { %5962 = dma.vmem_to_hbm [thread:$0]  (%p7097_p5), %s8805_s24, 2048, %s8803_s14, %s4279_s9, %s6896_s25, %s6896_s25, %s6897_s20  }
 0xcaa PF: > { %s8978_s15 = sld [smem:[#allocation15_spill]]  ;;  %s8979_s11 = sld [smem:[#allocation16_spill]] }
 0xcab   : > { %p8981_p1 = scmp.ge.s32.totalorder %s6876_s30, 2 }
 0xcb0   : > { %s4307_s13 = sand.u32 1, %s8978_s15   ;;  %p8980_p12 = scmp.ne.s32.totalorder %s8979_s11, 0 }
 0xcb1   : > { %s4308_s19 = scalar_lea.sflag [#allocation4], %s4307_s13 }
 0xcb2   : > { %p5979_p2 = pnand %p8981_p1, %p8980_p12 }
 0xcb4   : > { %6859 = dma.done.wait (!%p5979_p2), %s4308_s19, 2048  }
 0xcb5   : > { %6861 = vsyncadd (!%p5979_p2), %s4308_s19, 4294965248  ;;  %p23_p4 = scmp.ge.s32.totalorder %s7083_s26, 4   ;;  %s8982_s27 = smov %s6868_s28 }
 0xcb6   : > { %s8983_s28 = smov %s6872_s29  ;;  %s8984_s29 = smov %s7093_s22 }
 0xcb7   : > { %s8985_s30 = smov %s7083_s26  ;;  %25 = sbr.rel (!%p23_p4) target bundleno = 7 (0x7), region = 109 }
 0xcbe   :  { %4313 = vsyncpa [#allocation3], 1 }
 0xcbf   :  { %4315 = vsyncpa [#allocation3 + $0x1], 1 }
 0xcc0   :  { %4316 = vsyncpa [#allocation6], 1 }
 0xcc1   :  { %4317 = vsyncpa [#allocation9], 1 }
 0xcc2   :  { %4318 = vsyncpa [#allocation4], 1 }
 0xcc3   :  { %4320 = vsyncpa [#allocation4 + $0x1], 1 }

</bundles_post_ra>
